<compile_context>
chip_gen: v7x
topology: tpu7x:2x2x1
jax: 0.10.0
libtpu: 0.0.40
codegen_flags: <defaults>
</compile_context>

<pallas_src>
import numpy as np
import jax
import jax.numpy as jnp
from jax import lax
from jax.experimental import pallas as pl
from jax.experimental.pallas import tpu as pltpu

# ----------------------------- model dimensions ------------------------------
N_BATCH   = 2      # outfits
T_ITEMS   = 4      # items per outfit (fc1 expects embed_size * 4)
C_IN      = 3
IMG       = 16
EMBED     = 256    # stands in for embed_size = 1000
REP_DIM   = 512    # stands in for ResNet-50's 2048-d representation
SEM_DIM   = 256    # stands in for the hard-coded 1000-d VSE common space
VOCAB     = 64
MAX_WORDS = 8

HW    = IMG * IMG          # 256 patches per image
NT    = N_BATCH * T_ITEMS  # 8 images
K_RAW = 9 * C_IN           # 27
K_PAD = 32                 # im2col K padded only to 32 (full-array dim in BlockSpec)


# ------------------------------ fused Pallas kernel ----------------------------
def _fused_kernel(p_ref, cw_ref, cb_ref, wc_ref, bc_ref, w1_ref, b1_ref,
                  g_ref, be_ref, w2_ref, b2_ref, cnt_ref, tab_ref, wlen_ref,
                  wim_ref, bim_ref, cmc_ref, cmr_ref, out_ref, vse_ref, rep_ref):
    # ---------------- backbone: conv-as-matmul + ReLU + global average pool ----
    # rep rows are item-major: rows [t*N, (t+1)*N) hold item t for all N outfits.
    @pl.loop(0, NT)
    def _(i):
        row0 = pl.multiple_of(i * HW, HW)
        patch = p_ref[pl.ds(row0, HW), :]                       # (HW, K_PAD) bf16
        act = jnp.dot(patch, cw_ref[...],
                      preferred_element_type=jnp.float32)       # (HW, REP_DIM) f32
        act = jnp.maximum(act + cb_ref[...], 0.0)
        rep_ref[pl.ds(i, 1), :] = jnp.mean(act, axis=0, keepdims=True)

    rep = rep_ref[...]                                          # (NT, REP_DIM) f32
    rep_bf = rep.astype(jnp.bfloat16)                           # bf16 MXU operand

    # ---------------- score head: cnn.fc -> fc1 -> BN -> ReLU -> fc2 -> sigmoid
    feats = jnp.dot(rep_bf, wc_ref[...],
                    preferred_element_type=jnp.float32) + bc_ref[...]   # (NT, EMBED)
    # features.reshape(N, T*EMBED) @ W1 realized as ONE matmul against the
    # host-rearranged W1 (EMBED, T*EMBED) followed by 4 diagonal-block slice-adds.
    hb = jnp.dot(feats.astype(jnp.bfloat16), w1_ref[...],
                 preferred_element_type=jnp.float32)            # (NT, T*EMBED)
    h = b1_ref[...]
    for t in range(T_ITEMS):
        h = h + hb[t * N_BATCH:(t + 1) * N_BATCH,
                   t * EMBED:(t + 1) * EMBED]                   # (N, EMBED)

    # BatchNorm1d, training-mode batch stats (biased var), eps=1e-5 — all in f32
    mean = jnp.mean(h, axis=0, keepdims=True)
    var = jnp.mean((h - mean) ** 2, axis=0, keepdims=True)
    hn = (h - mean) * lax.rsqrt(var + 1e-5) * g_ref[...] + be_ref[...]
    hr = jnp.maximum(hn, 0.0)
    logit = jnp.dot(hr, w2_ref[...],
                    preferred_element_type=jnp.float32) + b2_ref[...]   # (N, 1)
    out_ref[...] = jax.nn.sigmoid(logit)

    # ---------------- VSE loss ------------------------------------------------
    # semantic embedding: bag-of-words sum / word_length, then L2-normalize
    inv_wl = pl.reciprocal(wlen_ref[...], approx=True)          # (NT, 1), EUP slot
    s = jnp.dot(cnt_ref[...], tab_ref[...],
                preferred_element_type=jnp.float32) * inv_wl    # (NT, SEM)
    s = s * lax.rsqrt(jnp.maximum(jnp.sum(s * s, axis=1, keepdims=True), 1e-24))
    # visual embedding: image_embedding(rep), L2-normalize
    v = jnp.dot(rep_bf, wim_ref[...],
                preferred_element_type=jnp.float32) + bim_ref[...]      # (NT, SEM)
    v = v * lax.rsqrt(jnp.maximum(jnp.sum(v * v, axis=1, keepdims=True), 1e-24))

    scores = lax.dot_general(s, v, (((1,), (1,)), ((), ())),
                             preferred_element_type=jnp.float32)        # (NT, NT)
    row = lax.broadcasted_iota(jnp.int32, (NT, NT), 0)
    col = lax.broadcasted_iota(jnp.int32, (NT, NT), 1)
    eye = (row == col).astype(jnp.float32)
    diag_c = jnp.sum(scores * eye, axis=1, keepdims=True)               # (NT, 1)
    diag_r = jnp.sum(scores * eye, axis=0, keepdims=True)               # (1, NT)

    # device-side replacement for torch.masked_select: rows/cols with <2 caption
    # words contribute zero cost; the normalizer is (#valid rows)^2 (== torch's
    # semb.shape[0]**2 after masked_select).
    valid = (1.0 - eye) * (cmc_ref[...] * cmr_ref[...])
    cost_s = jnp.clip(0.2 - diag_c + scores, 0.0, 1e6) * valid   # torch clamp(0, 1e6)
    cost_im = jnp.clip(0.2 - diag_r + scores, 0.0, 1e6) * valid
    n_valid = jnp.sum(cmc_ref[...])
    denom = jnp.maximum(n_valid * n_valid, 1.0)
    loss = (jnp.sum(cost_s) + jnp.sum(cost_im)) / denom
    vse_ref[...] = jnp.reshape(loss, (1, 1))


# ------------------------------ pallas_call wrapper ----------------------------
def _full_spec(a):
    nd = a.ndim
    return pl.BlockSpec(a.shape, lambda i, _nd=nd: (0,) * _nd)


def fused_forward(patches, counts, wlen, cm_col, cm_row, p):
    args = (patches, p["conv_w"], p["conv_b"],
            p["fc_cnn_w"], p["fc_cnn_b"],
            p["fc1_w_arr"], p["fc1_b"],
            p["bn_gamma"], p["bn_beta"],
            p["fc2_w"], p["fc2_b"],
            counts, p["sem_table"], wlen,
            p["img_emb_w"], p["img_emb_b"],
            cm_col, cm_row)
    return pl.pallas_call(
        _fused_kernel,
        grid=(1,),
        in_specs=[_full_spec(a) for a in args],
        out_specs=(pl.BlockSpec((N_BATCH, 1), lambda i: (0, 0)),
                   pl.BlockSpec((1, 1), lambda i: (0, 0))),
        out_shape=(jax.ShapeDtypeStruct((N_BATCH, 1), jnp.float32),
                   jax.ShapeDtypeStruct((1, 1), jnp.float32)),
        scratch_shapes=[pltpu.VMEM((NT, REP_DIM), jnp.float32)],   # rep stays on-chip
        compiler_params=pltpu.CompilerParams(
            dimension_semantics=("arbitrary",)),
    )(*args)


# --------------------------------- glue ---------------------------------------
def im2col_3x3(x):
    """x: (B, H, W, C), pad=1, stride=1 -> (B*H*W, 9*C)."""
    B, H, W, C = x.shape
    xp = jnp.pad(x, ((0, 0), (1, 1), (1, 1), (0, 0)))
    cols = []
    for dy in range(3):
        for dx in range(3):
            cols.append(xp[:, dy:dy + H, dx:dx + W, :])
    p = jnp.concatenate(cols, axis=-1)
    return p.reshape(B * H * W, 9 * C)


def xavier_uniform(key, fan_in, fan_out):
    bound = float(np.sqrt(6.0 / (fan_in + fan_out)))
    return jax.random.uniform(key, (fan_in, fan_out), jnp.float32, -bound, bound)


@jax.jit
def compat_forward(images, names, p):
    N, T, C, H, W = images.shape
    # ------- backbone input (stand-in for ResNet-50) ---------------------------
    # item-major (t, n) ordering so the fused head can use contiguous row slices
    imgs_tn = jnp.transpose(images, (1, 0, 2, 3, 4)).reshape(T * N, C, H, W)
    x = jnp.transpose(imgs_tn, (0, 2, 3, 1))                     # NCHW -> NHWC
    patches = im2col_3x3(x)                                      # (TN*HW, 27)
    patches = jnp.pad(patches, ((0, 0), (0, K_PAD - K_RAW)))     # K padded to 32 only
    patches = patches.astype(jnp.bfloat16)

    # ------- caption features (tiny XLA preprocessing, all under jit) ---------
    names_tn = jnp.transpose(names.reshape(N, T, MAX_WORDS), (1, 0, 2))
    names_tn = names_tn.reshape(T * N, MAX_WORDS)
    mask = (names_tn > 0)
    wl = jnp.sum(mask, axis=1).astype(jnp.float32)               # (NT,)
    cap_mask = (wl >= 2.0).astype(jnp.float32)                   # torch.ge(sum, 2)
    wl = jnp.where(wl == 0, jnp.float32(0.1), wl)[:, None]       # (NT, 1)
    counts = jnp.sum(jax.nn.one_hot(names_tn, VOCAB, dtype=jnp.float32)
                     * mask[..., None].astype(jnp.float32), axis=1)   # (NT, VOCAB)

    # ------- single fused backbone + head + VSE kernel -------------------------
    out, vse = fused_forward(patches, counts.astype(jnp.bfloat16), wl,
                             cap_mask[:, None], cap_mask[None, :], p)
    return out, vse[0, 0]


# --------------------------------- main ----------------------------------------
if __name__ == "__main__":
    key = jax.random.PRNGKey(0)
    keys = jax.random.split(key, 10)

    # inputs (PyTorch layout: images (N, T, C, H, W) NCHW per item)
    images = jax.random.normal(keys[0], (N_BATCH, T_ITEMS, C_IN, IMG, IMG), jnp.float32)

    # names: one padded (0-padded) word-id sequence per item, ids in [1, VOCAB)
    lengths = [3, 5, 2, 4, 0, 6, 1, 3]
    rng = np.random.RandomState(0)
    names_np = np.zeros((N_BATCH * T_ITEMS, MAX_WORDS), dtype=np.int32)
    for i, l in enumerate(lengths):
        if l > 0:
            names_np[i, :l] = rng.randint(1, VOCAB, size=l)
    names = jnp.asarray(names_np)

    # deterministic parameter init (shapes per CompatModel.__init__, scaled down)
    conv_w_raw = jax.random.normal(keys[1], (K_RAW, REP_DIM), jnp.float32) \
                 * (1.0 / np.sqrt(K_RAW))
    conv_w = jnp.zeros((K_PAD, REP_DIM), jnp.float32).at[:K_RAW].set(conv_w_raw)

    fc1_w = xavier_uniform(keys[3], T_ITEMS * EMBED, EMBED)      # (4E, E), torch W1^T
    # rearranged so ONE (NT,E)@(E,4E) matmul + diagonal-block adds == reshape@W1
    fc1_w_arr = jnp.concatenate(
        [fc1_w[t * EMBED:(t + 1) * EMBED, :] for t in range(T_ITEMS)], axis=1)

    params = {
        "conv_w":    conv_w.astype(jnp.bfloat16),                # bf16 MXU operand
        "conv_b":    jnp.zeros((1, REP_DIM), jnp.float32),
        "fc_cnn_w":  xavier_uniform(keys[2], REP_DIM, EMBED).astype(jnp.bfloat16),
        "fc_cnn_b":  jnp.zeros((1, EMBED), jnp.float32),
        "fc1_w_arr": fc1_w_arr.astype(jnp.bfloat16),             # (EMBED, 4*EMBED)
        "fc1_b":     jnp.zeros((1, EMBED), jnp.float32),
        "fc2_w":     xavier_uniform(keys[4], EMBED, 1),          # tiny: kept f32
        "fc2_b":     jnp.zeros((1, 1), jnp.float32),
        "bn_gamma":  jnp.ones((1, EMBED), jnp.float32),
        "bn_beta":   jnp.zeros((1, EMBED), jnp.float32),
        "sem_table": jax.random.normal(keys[5], (VOCAB, SEM_DIM),
                                       jnp.float32).astype(jnp.bfloat16),
        "img_emb_w": jax.random.uniform(keys[6], (REP_DIM, SEM_DIM), jnp.float32,
                                        -1.0 / np.sqrt(REP_DIM),
                                        1.0 / np.sqrt(REP_DIM)).astype(jnp.bfloat16),
        "img_emb_b": jax.random.uniform(keys[7], (1, SEM_DIM), jnp.float32,
                                        -1.0 / np.sqrt(REP_DIM), 1.0 / np.sqrt(REP_DIM)),
    }

    out, vse_loss = compat_forward(images, names, params)
    out = jax.block_until_ready(out)
    vse_loss = jax.block_until_ready(vse_loss)
    assert out.shape == (N_BATCH, 1)
    assert np.all(np.isfinite(np.asarray(out))) and np.isfinite(float(vse_loss))
    print("KERNEL_OK")
</pallas_src>

<mosaic_0001>
module attributes {stable_mosaic.version = 11 : i64} {
  func.func @_fused_kernel(%arg0: i32, %arg1: memref<2048x32xbf16, #tpu.memory_space<vmem>>, %arg2: memref<32x512xbf16, #tpu.memory_space<vmem>>, %arg3: memref<1x512xf32, #tpu.memory_space<vmem>>, %arg4: memref<512x256xbf16, #tpu.memory_space<vmem>>, %arg5: memref<1x256xf32, #tpu.memory_space<vmem>>, %arg6: memref<256x1024xbf16, #tpu.memory_space<vmem>>, %arg7: memref<1x256xf32, #tpu.memory_space<vmem>>, %arg8: memref<1x256xf32, #tpu.memory_space<vmem>>, %arg9: memref<1x256xf32, #tpu.memory_space<vmem>>, %arg10: memref<256x1xf32, #tpu.memory_space<vmem>>, %arg11: memref<1x1xf32, #tpu.memory_space<vmem>>, %arg12: memref<8x64xbf16, #tpu.memory_space<vmem>>, %arg13: memref<64x256xbf16, #tpu.memory_space<vmem>>, %arg14: memref<8x1xf32, #tpu.memory_space<vmem>>, %arg15: memref<512x256xbf16, #tpu.memory_space<vmem>>, %arg16: memref<1x256xf32, #tpu.memory_space<vmem>>, %arg17: memref<8x1xf32, #tpu.memory_space<vmem>>, %arg18: memref<1x8xf32, #tpu.memory_space<vmem>>, %arg19: memref<2x1xf32, #tpu.memory_space<vmem>>, %arg20: memref<1x1xf32, #tpu.memory_space<vmem>>, %arg21: memref<8x512xf32, #tpu.memory_space<vmem>>) attributes {dimension_semantics = [#tpu.dimension_semantics<arbitrary>], iteration_bounds = array<i64: 1>, scalar_prefetch = 0 : i64, scratch_operands = 1 : i64, tpu.core_type = #tpu.core_type<tc>, window_params = [{pipeline_mode = #tpu.pipeline_mode<synchronous>, transform_indices = @transform_0, window_bounds = array<i64: 2048, 32>}, {pipeline_mode = #tpu.pipeline_mode<synchronous>, transform_indices = @transform_1, window_bounds = array<i64: 32, 512>}, {pipeline_mode = #tpu.pipeline_mode<synchronous>, transform_indices = @transform_2, window_bounds = array<i64: 1, 512>}, {pipeline_mode = #tpu.pipeline_mode<synchronous>, transform_indices = @transform_3, window_bounds = array<i64: 512, 256>}, {pipeline_mode = #tpu.pipeline_mode<synchronous>, transform_indices = @transform_4, window_bounds = array<i64: 1, 256>}, {pipeline_mode = #tpu.pipeline_mode<synchronous>, transform_indices = @transform_5, window_bounds = array<i64: 256, 1024>}, {pipeline_mode = #tpu.pipeline_mode<synchronous>, transform_indices = @transform_6, window_bounds = array<i64: 1, 256>}, {pipeline_mode = #tpu.pipeline_mode<synchronous>, transform_indices = @transform_7, window_bounds = array<i64: 1, 256>}, {pipeline_mode = #tpu.pipeline_mode<synchronous>, transform_indices = @transform_8, window_bounds = array<i64: 1, 256>}, {pipeline_mode = #tpu.pipeline_mode<synchronous>, transform_indices = @transform_9, window_bounds = array<i64: 256, 1>}, {pipeline_mode = #tpu.pipeline_mode<synchronous>, transform_indices = @transform_10, window_bounds = array<i64: 1, 1>}, {pipeline_mode = #tpu.pipeline_mode<synchronous>, transform_indices = @transform_11, window_bounds = array<i64: 8, 64>}, {pipeline_mode = #tpu.pipeline_mode<synchronous>, transform_indices = @transform_12, window_bounds = array<i64: 64, 256>}, {pipeline_mode = #tpu.pipeline_mode<synchronous>, transform_indices = @transform_13, window_bounds = array<i64: 8, 1>}, {pipeline_mode = #tpu.pipeline_mode<synchronous>, transform_indices = @transform_14, window_bounds = array<i64: 512, 256>}, {pipeline_mode = #tpu.pipeline_mode<synchronous>, transform_indices = @transform_15, window_bounds = array<i64: 1, 256>}, {pipeline_mode = #tpu.pipeline_mode<synchronous>, transform_indices = @transform_16, window_bounds = array<i64: 8, 1>}, {pipeline_mode = #tpu.pipeline_mode<synchronous>, transform_indices = @transform_17, window_bounds = array<i64: 1, 8>}, {pipeline_mode = #tpu.pipeline_mode<synchronous>, transform_indices = @transform_18, window_bounds = array<i64: 2, 1>}, {pipeline_mode = #tpu.pipeline_mode<synchronous>, transform_indices = @transform_19, window_bounds = array<i64: 1, 1>}]} {
    %c0_i32 = arith.constant 0 : i32
    %c8_i32 = arith.constant 8 : i32
    %0 = arith.addi %c0_i32, %c8_i32 : i32
    %c1_i32 = arith.constant 1 : i32
    scf.for %arg22 = %c0_i32 to %0 step %c1_i32  : i32 {
      %c1_i32_67 = arith.constant 1 : i32
      %143 = arith.muli %arg22, %c1_i32_67 : i32
      %c0_i32_68 = arith.constant 0 : i32
      %144 = arith.addi %c0_i32_68, %143 : i32
      %c256_i32 = arith.constant 256 : i32
      %145 = arith.muli %144, %c256_i32 : i32
      %146 = tpu.assume_multiple %145, 256 : i32
      %147 = arith.index_cast %146 : i32 to index
      %c0_69 = arith.constant 0 : index
      %148 = vector.load %arg1[%147, %c0_69] : memref<2048x32xbf16, #tpu.memory_space<vmem>>, vector<256x32xbf16>
      %c0_70 = arith.constant 0 : index
      %c0_71 = arith.constant 0 : index
      %149 = vector.load %arg2[%c0_70, %c0_71] : memref<32x512xbf16, #tpu.memory_space<vmem>>, vector<32x512xbf16>
      %cst_72 = arith.constant dense<0.000000e+00> : vector<256x512xf32>
      %150 = tpu.matmul %148, %149, %cst_72 {dimension_numbers = #tpu.dot_dimension_numbers<[1], [0], [0], [1], [0, 0, 1, 1], [], []>} : vector<256x32xbf16>, vector<32x512xbf16>, vector<256x512xf32> -> vector<256x512xf32>
      %c0_73 = arith.constant 0 : index
      %c0_74 = arith.constant 0 : index
      %151 = vector.load %arg3[%c0_73, %c0_74] : memref<1x512xf32, #tpu.memory_space<vmem>>, vector<1x512xf32>
      %152 = vector.broadcast %151 : vector<1x512xf32> to vector<256x512xf32>
      %153 = arith.addf %150, %152 : vector<256x512xf32>
      %cst_75 = arith.constant 0.000000e+00 : f32
      %154 = vector.broadcast %cst_75 : f32 to vector<256x512xf32>
      %155 = arith.maximumf %153, %154 : vector<256x512xf32>
      %cst_76 = arith.constant dense<0.000000e+00> : vector<512xf32>
      %156 = vector.multi_reduction <add>, %155, %cst_76 [0] : vector<256x512xf32> to vector<512xf32>
      %157 = vector.shape_cast %156 : vector<512xf32> to vector<1x512xf32>
      %cst_77 = arith.constant 2.560000e+02 : f32
      %158 = vector.broadcast %cst_77 : f32 to vector<1x512xf32>
      %159 = arith.divf %157, %158 : vector<1x512xf32>
      %160 = arith.index_cast %144 : i32 to index
      %c0_78 = arith.constant 0 : index
      %161 = vector.load %arg21[%160, %c0_78] : memref<8x512xf32, #tpu.memory_space<vmem>>, vector<1x512xf32>
      tpu.vector_store %arg21[%160, %c0_78], %159 {strides = array<i32>} : memref<8x512xf32, #tpu.memory_space<vmem>>, vector<1x512xf32>,
    }
    %c8_i32_0 = arith.constant 8 : i32
    %c0 = arith.constant 0 : index
    %c0_1 = arith.constant 0 : index
    %1 = vector.load %arg21[%c0, %c0_1] : memref<8x512xf32, #tpu.memory_space<vmem>>, vector<8x512xf32>
    %2 = arith.truncf %1 : vector<8x512xf32> to vector<8x512xbf16>
    %c0_2 = arith.constant 0 : index
    %c0_3 = arith.constant 0 : index
    %3 = vector.load %arg4[%c0_2, %c0_3] : memref<512x256xbf16, #tpu.memory_space<vmem>>, vector<512x256xbf16>
    %cst = arith.constant dense<0.000000e+00> : vector<8x256xf32>
    %4 = tpu.matmul %2, %3, %cst {dimension_numbers = #tpu.dot_dimension_numbers<[1], [0], [0], [1], [0, 0, 1, 1], [], []>} : vector<8x512xbf16>, vector<512x256xbf16>, vector<8x256xf32> -> vector<8x256xf32>
    %c0_4 = arith.constant 0 : index
    %c0_5 = arith.constant 0 : index
    %5 = vector.load %arg5[%c0_4, %c0_5] : memref<1x256xf32, #tpu.memory_space<vmem>>, vector<1x256xf32>
    %6 = vector.broadcast %5 : vector<1x256xf32> to vector<8x256xf32>
    %7 = arith.addf %4, %6 : vector<8x256xf32>
    %8 = arith.truncf %7 : vector<8x256xf32> to vector<8x256xbf16>
    %c0_6 = arith.constant 0 : index
    %c0_7 = arith.constant 0 : index
    %9 = vector.load %arg6[%c0_6, %c0_7] : memref<256x1024xbf16, #tpu.memory_space<vmem>>, vector<256x1024xbf16>
    %cst_8 = arith.constant dense<0.000000e+00> : vector<8x1024xf32>
    %10 = tpu.matmul %8, %9, %cst_8 {dimension_numbers = #tpu.dot_dimension_numbers<[1], [0], [0], [1], [0, 0, 1, 1], [], []>} : vector<8x256xbf16>, vector<256x1024xbf16>, vector<8x1024xf32> -> vector<8x1024xf32>
    %c0_9 = arith.constant 0 : index
    %c0_10 = arith.constant 0 : index
    %11 = vector.load %arg7[%c0_9, %c0_10] : memref<1x256xf32, #tpu.memory_space<vmem>>, vector<1x256xf32>
    %12 = vector.extract_strided_slice %10 {offsets = [0, 0], sizes = [2, 256], strides = [1, 1]} : vector<8x1024xf32> to vector<2x256xf32>
    %13 = vector.broadcast %11 : vector<1x256xf32> to vector<2x256xf32>
    %14 = arith.addf %13, %12 : vector<2x256xf32>
    %15 = vector.extract_strided_slice %10 {offsets = [2, 256], sizes = [2, 256], strides = [1, 1]} : vector<8x1024xf32> to vector<2x256xf32>
    %16 = arith.addf %14, %15 : vector<2x256xf32>
    %17 = vector.extract_strided_slice %10 {offsets = [4, 512], sizes = [2, 256], strides = [1, 1]} : vector<8x1024xf32> to vector<2x256xf32>
    %18 = arith.addf %16, %17 : vector<2x256xf32>
    %19 = vector.extract_strided_slice %10 {offsets = [6, 768], sizes = [2, 256], strides = [1, 1]} : vector<8x1024xf32> to vector<2x256xf32>
    %20 = arith.addf %18, %19 : vector<2x256xf32>
    %cst_11 = arith.constant dense<0.000000e+00> : vector<256xf32>
    %21 = vector.multi_reduction <add>, %20, %cst_11 [0] : vector<2x256xf32> to vector<256xf32>
    %22 = vector.shape_cast %21 : vector<256xf32> to vector<1x256xf32>
    %cst_12 = arith.constant 2.000000e+00 : f32
    %23 = vector.broadcast %cst_12 : f32 to vector<1x256xf32>
    %24 = arith.divf %22, %23 : vector<1x256xf32>
    %25 = vector.broadcast %24 : vector<1x256xf32> to vector<2x256xf32>
    %26 = arith.subf %20, %25 : vector<2x256xf32>
    %27 = arith.mulf %26, %26 : vector<2x256xf32>
    %cst_13 = arith.constant dense<0.000000e+00> : vector<256xf32>
    %28 = vector.multi_reduction <add>, %27, %cst_13 [0] : vector<2x256xf32> to vector<256xf32>
    %29 = vector.shape_cast %28 : vector<256xf32> to vector<1x256xf32>
    %cst_14 = arith.constant 2.000000e+00 : f32
    %30 = vector.broadcast %cst_14 : f32 to vector<1x256xf32>
    %31 = arith.divf %29, %30 : vector<1x256xf32>
    %32 = vector.broadcast %24 : vector<1x256xf32> to vector<2x256xf32>
    %33 = arith.subf %20, %32 : vector<2x256xf32>
    %cst_15 = arith.constant 9.99999974E-6 : f32
    %34 = vector.broadcast %cst_15 : f32 to vector<1x256xf32>
    %35 = arith.addf %31, %34 : vector<1x256xf32>
    %36 = math.rsqrt %35 : vector<1x256xf32>
    %37 = vector.broadcast %36 : vector<1x256xf32> to vector<2x256xf32>
    %38 = arith.mulf %33, %37 : vector<2x256xf32>
    %c0_16 = arith.constant 0 : index
    %c0_17 = arith.constant 0 : index
    %39 = vector.load %arg8[%c0_16, %c0_17] : memref<1x256xf32, #tpu.memory_space<vmem>>, vector<1x256xf32>
    %40 = vector.broadcast %39 : vector<1x256xf32> to vector<2x256xf32>
    %41 = arith.mulf %38, %40 : vector<2x256xf32>
    %c0_18 = arith.constant 0 : index
    %c0_19 = arith.constant 0 : index
    %42 = vector.load %arg9[%c0_18, %c0_19] : memref<1x256xf32, #tpu.memory_space<vmem>>, vector<1x256xf32>
    %43 = vector.broadcast %42 : vector<1x256xf32> to vector<2x256xf32>
    %44 = arith.addf %41, %43 : vector<2x256xf32>
    %cst_20 = arith.constant 0.000000e+00 : f32
    %45 = vector.broadcast %cst_20 : f32 to vector<2x256xf32>
    %46 = arith.maximumf %44, %45 : vector<2x256xf32>
    %c0_21 = arith.constant 0 : index
    %c0_22 = arith.constant 0 : index
    %47 = vector.load %arg10[%c0_21, %c0_22] : memref<256x1xf32, #tpu.memory_space<vmem>>, vector<256x1xf32>
    %cst_23 = arith.constant dense<0.000000e+00> : vector<2x1xf32>
    %48 = tpu.matmul %46, %47, %cst_23 {dimension_numbers = #tpu.dot_dimension_numbers<[1], [0], [0], [1], [0, 0, 1, 1], [], []>} : vector<2x256xf32>, vector<256x1xf32>, vector<2x1xf32> -> vector<2x1xf32>
    %c0_24 = arith.constant 0 : index
    %c0_25 = arith.constant 0 : index
    %49 = vector.load %arg11[%c0_24, %c0_25] : memref<1x1xf32, #tpu.memory_space<vmem>>, vector<1x1xf32>
    %50 = vector.broadcast %49 : vector<1x1xf32> to vector<2x1xf32>
    %51 = arith.addf %48, %50 : vector<2x1xf32>
    %52 = arith.negf %51 : vector<2x1xf32>
    %53 = math.exp %52 : vector<2x1xf32>
    %cst_26 = arith.constant 1.000000e+00 : f32
    %54 = vector.broadcast %cst_26 : f32 to vector<2x1xf32>
    %55 = arith.addf %54, %53 : vector<2x1xf32>
    %56 = arith.divf %54, %55 : vector<2x1xf32>
    %c0_27 = arith.constant 0 : index
    %c0_28 = arith.constant 0 : index
    %57 = vector.load %arg19[%c0_27, %c0_28] : memref<2x1xf32, #tpu.memory_space<vmem>>, vector<2x1xf32>
    tpu.vector_store %arg19[%c0_27, %c0_28], %56 {strides = array<i32>} : memref<2x1xf32, #tpu.memory_space<vmem>>, vector<2x1xf32>,
    %c0_29 = arith.constant 0 : index
    %c0_30 = arith.constant 0 : index
    %58 = vector.load %arg14[%c0_29, %c0_30] : memref<8x1xf32, #tpu.memory_space<vmem>>, vector<8x1xf32>
    %59 = tpu.reciprocal %58 {approx = true} : vector<8x1xf32> -> vector<8x1xf32>
    %c0_31 = arith.constant 0 : index
    %c0_32 = arith.constant 0 : index
    %60 = vector.load %arg12[%c0_31, %c0_32] : memref<8x64xbf16, #tpu.memory_space<vmem>>, vector<8x64xbf16>
    %c0_33 = arith.constant 0 : index
    %c0_34 = arith.constant 0 : index
    %61 = vector.load %arg13[%c0_33, %c0_34] : memref<64x256xbf16, #tpu.memory_space<vmem>>, vector<64x256xbf16>
    %cst_35 = arith.constant dense<0.000000e+00> : vector<8x256xf32>
    %62 = tpu.matmul %60, %61, %cst_35 {dimension_numbers = #tpu.dot_dimension_numbers<[1], [0], [0], [1], [0, 0, 1, 1], [], []>} : vector<8x64xbf16>, vector<64x256xbf16>, vector<8x256xf32> -> vector<8x256xf32>
    %63 = vector.broadcast %59 : vector<8x1xf32> to vector<8x256xf32>
    %64 = arith.mulf %62, %63 : vector<8x256xf32>
    %65 = arith.mulf %64, %64 : vector<8x256xf32>
    %cst_36 = arith.constant dense<0.000000e+00> : vector<8xf32>
    %66 = vector.multi_reduction <add>, %65, %cst_36 [1] : vector<8x256xf32> to vector<8xf32>
    %67 = vector.shape_cast %66 : vector<8xf32> to vector<8x1xf32>
    %cst_37 = arith.constant 1.000000e-24 : f32
    %68 = vector.broadcast %cst_37 : f32 to vector<8x1xf32>
    %69 = arith.maximumf %67, %68 : vector<8x1xf32>
    %70 = math.rsqrt %69 : vector<8x1xf32>
    %71 = vector.broadcast %70 : vector<8x1xf32> to vector<8x256xf32>
    %72 = arith.mulf %64, %71 : vector<8x256xf32>
    %c0_38 = arith.constant 0 : index
    %c0_39 = arith.constant 0 : index
    %73 = vector.load %arg15[%c0_38, %c0_39] : memref<512x256xbf16, #tpu.memory_space<vmem>>, vector<512x256xbf16>
    %cst_40 = arith.constant dense<0.000000e+00> : vector<8x256xf32>
    %74 = tpu.matmul %2, %73, %cst_40 {dimension_numbers = #tpu.dot_dimension_numbers<[1], [0], [0], [1], [0, 0, 1, 1], [], []>} : vector<8x512xbf16>, vector<512x256xbf16>, vector<8x256xf32> -> vector<8x256xf32>
    %c0_41 = arith.constant 0 : index
    %c0_42 = arith.constant 0 : index
    %75 = vector.load %arg16[%c0_41, %c0_42] : memref<1x256xf32, #tpu.memory_space<vmem>>, vector<1x256xf32>
    %76 = vector.broadcast %75 : vector<1x256xf32> to vector<8x256xf32>
    %77 = arith.addf %74, %76 : vector<8x256xf32>
    %78 = arith.mulf %77, %77 : vector<8x256xf32>
    %cst_43 = arith.constant dense<0.000000e+00> : vector<8xf32>
    %79 = vector.multi_reduction <add>, %78, %cst_43 [1] : vector<8x256xf32> to vector<8xf32>
    %80 = vector.shape_cast %79 : vector<8xf32> to vector<8x1xf32>
    %cst_44 = arith.constant 1.000000e-24 : f32
    %81 = vector.broadcast %cst_44 : f32 to vector<8x1xf32>
    %82 = arith.maximumf %80, %81 : vector<8x1xf32>
    %83 = math.rsqrt %82 : vector<8x1xf32>
    %84 = vector.broadcast %83 : vector<8x1xf32> to vector<8x256xf32>
    %85 = arith.mulf %77, %84 : vector<8x256xf32>
    %cst_45 = arith.constant dense<0.000000e+00> : vector<8x8xf32>
    %86 = tpu.matmul %72, %85, %cst_45 {dimension_numbers = #tpu.dot_dimension_numbers<[1], [1], [0], [0], [0, 0, 1, 0], [], []>} : vector<8x256xf32>, vector<8x256xf32>, vector<8x8xf32> -> vector<8x8xf32>
    %87 = tpu.iota {dimensions = array<i32: 0>} : vector<8x8xi32>
    %88 = tpu.iota {dimensions = array<i32: 1>} : vector<8x8xi32>
    %89 = arith.cmpi eq, %87, %88 : vector<8x8xi32>
    %90 = arith.extui %89 : vector<8x8xi1> to vector<8x8xi32>
    %91 = arith.sitofp %90 : vector<8x8xi32> to vector<8x8xf32>
    %92 = arith.mulf %86, %91 : vector<8x8xf32>
    %cst_46 = arith.constant dense<0.000000e+00> : vector<8xf32>
    %93 = vector.multi_reduction <add>, %92, %cst_46 [1] : vector<8x8xf32> to vector<8xf32>
    %94 = vector.shape_cast %93 : vector<8xf32> to vector<8x1xf32>
    %95 = arith.mulf %86, %91 : vector<8x8xf32>
    %cst_47 = arith.constant dense<0.000000e+00> : vector<8xf32>
    %96 = vector.multi_reduction <add>, %95, %cst_47 [0] : vector<8x8xf32> to vector<8xf32>
    %97 = vector.shape_cast %96 : vector<8xf32> to vector<1x8xf32>
    %cst_48 = arith.constant 1.000000e+00 : f32
    %98 = vector.broadcast %cst_48 : f32 to vector<8x8xf32>
    %99 = arith.subf %98, %91 : vector<8x8xf32>
    %c0_49 = arith.constant 0 : index
    %c0_50 = arith.constant 0 : index
    %100 = vector.load %arg17[%c0_49, %c0_50] : memref<8x1xf32, #tpu.memory_space<vmem>>, vector<8x1xf32>
    %c0_51 = arith.constant 0 : index
    %c0_52 = arith.constant 0 : index
    %101 = vector.load %arg18[%c0_51, %c0_52] : memref<1x8xf32, #tpu.memory_space<vmem>>, vector<1x8xf32>
    %102 = vector.broadcast %100 : vector<8x1xf32> to vector<8x8xf32>
    %103 = vector.broadcast %101 : vector<1x8xf32> to vector<8x8xf32>
    %104 = arith.mulf %102, %103 : vector<8x8xf32>
    %105 = arith.mulf %99, %104 : vector<8x8xf32>
    %cst_53 = arith.constant 2.000000e-01 : f32
    %106 = vector.broadcast %cst_53 : f32 to vector<8x1xf32>
    %107 = arith.subf %106, %94 : vector<8x1xf32>
    %108 = vector.broadcast %107 : vector<8x1xf32> to vector<8x8xf32>
    %109 = arith.addf %108, %86 : vector<8x8xf32>
    %cst_54 = arith.constant 0.000000e+00 : f32
    %cst_55 = arith.constant 1.000000e+06 : f32
    %110 = vector.broadcast %cst_54 : f32 to vector<8x8xf32>
    %111 = arith.maximumf %110, %109 : vector<8x8xf32>
    %112 = vector.broadcast %cst_55 : f32 to vector<8x8xf32>
    %113 = arith.minimumf %112, %111 : vector<8x8xf32>
    %114 = arith.mulf %113, %105 : vector<8x8xf32>
    %cst_56 = arith.constant 2.000000e-01 : f32
    %115 = vector.broadcast %cst_56 : f32 to vector<1x8xf32>
    %116 = arith.subf %115, %97 : vector<1x8xf32>
    %117 = vector.broadcast %116 : vector<1x8xf32> to vector<8x8xf32>
    %118 = arith.addf %117, %86 : vector<8x8xf32>
    %cst_57 = arith.constant 0.000000e+00 : f32
    %cst_58 = arith.constant 1.000000e+06 : f32
    %119 = vector.broadcast %cst_57 : f32 to vector<8x8xf32>
    %120 = arith.maximumf %119, %118 : vector<8x8xf32>
    %121 = vector.broadcast %cst_58 : f32 to vector<8x8xf32>
    %122 = arith.minimumf %121, %120 : vector<8x8xf32>
    %123 = arith.mulf %122, %105 : vector<8x8xf32>
    %c0_59 = arith.constant 0 : index
    %c0_60 = arith.constant 0 : index
    %124 = vector.load %arg17[%c0_59, %c0_60] : memref<8x1xf32, #tpu.memory_space<vmem>>, vector<8x1xf32>
    %125 = vector.shape_cast %124 : vector<8x1xf32> to vector<1x8x1xf32>
    %cst_61 = arith.constant dense<0.000000e+00> : vector<1xf32>
    %126 = vector.multi_reduction <add>, %125, %cst_61 [1, 2] : vector<1x8x1xf32> to vector<1xf32>
    %127 = vector.shape_cast %126 : vector<1xf32> to vector<1x1x1xf32>
    %128 = vector.extract %127[0, 0, 0] : f32 from vector<1x1x1xf32>
    %129 = arith.mulf %128, %128 : f32
    %cst_62 = arith.constant 1.000000e+00 : f32
    %130 = arith.maximumf %129, %cst_62 : f32
    %131 = vector.shape_cast %114 : vector<8x8xf32> to vector<1x8x8xf32>
    %cst_63 = arith.constant dense<0.000000e+00> : vector<1xf32>
    %132 = vector.multi_reduction <add>, %131, %cst_63 [1, 2] : vector<1x8x8xf32> to vector<1xf32>
    %133 = vector.shape_cast %132 : vector<1xf32> to vector<1x1x1xf32>
    %134 = vector.extract %133[0, 0, 0] : f32 from vector<1x1x1xf32>
    %135 = vector.shape_cast %123 : vector<8x8xf32> to vector<1x8x8xf32>
    %cst_64 = arith.constant dense<0.000000e+00> : vector<1xf32>
    %136 = vector.multi_reduction <add>, %135, %cst_64 [1, 2] : vector<1x8x8xf32> to vector<1xf32>
    %137 = vector.shape_cast %136 : vector<1xf32> to vector<1x1x1xf32>
    %138 = vector.extract %137[0, 0, 0] : f32 from vector<1x1x1xf32>
    %139 = arith.addf %134, %138 : f32
    %140 = arith.divf %139, %130 : f32
    %141 = vector.broadcast %140 : f32 to vector<1x1xf32>
    %c0_65 = arith.constant 0 : index
    %c0_66 = arith.constant 0 : index
    %142 = vector.load %arg20[%c0_65, %c0_66] : memref<1x1xf32, #tpu.memory_space<vmem>>, vector<1x1xf32>
    tpu.vector_store %arg20[%c0_65, %c0_66], %141 {strides = array<i32>} : memref<1x1xf32, #tpu.memory_space<vmem>>, vector<1x1xf32>,
    return
  }
  func.func @transform_0(%arg0: i32) -> (i32, i32) {
    %c0_i32 = arith.constant 0 : i32
    %c0_i32_0 = arith.constant 0 : i32
    %c0_i32_1 = arith.constant 0 : i32
    return %c0_i32, %c0_i32_0 : i32, i32
  }
  func.func @transform_1(%arg0: i32) -> (i32, i32) {
    %c0_i32 = arith.constant 0 : i32
    %c0_i32_0 = arith.constant 0 : i32
    %c0_i32_1 = arith.constant 0 : i32
    return %c0_i32, %c0_i32_0 : i32, i32
  }
  func.func @transform_2(%arg0: i32) -> (i32, i32) {
    %c0_i32 = arith.constant 0 : i32
    %c0_i32_0 = arith.constant 0 : i32
    %c0_i32_1 = arith.constant 0 : i32
    return %c0_i32, %c0_i32_0 : i32, i32
  }
  func.func @transform_3(%arg0: i32) -> (i32, i32) {
    %c0_i32 = arith.constant 0 : i32
    %c0_i32_0 = arith.constant 0 : i32
    %c0_i32_1 = arith.constant 0 : i32
    return %c0_i32, %c0_i32_0 : i32, i32
  }
  func.func @transform_4(%arg0: i32) -> (i32, i32) {
    %c0_i32 = arith.constant 0 : i32
    %c0_i32_0 = arith.constant 0 : i32
    %c0_i32_1 = arith.constant 0 : i32
    return %c0_i32, %c0_i32_0 : i32, i32
  }
  func.func @transform_5(%arg0: i32) -> (i32, i32) {
    %c0_i32 = arith.constant 0 : i32
    %c0_i32_0 = arith.constant 0 : i32
    %c0_i32_1 = arith.constant 0 : i32
    return %c0_i32, %c0_i32_0 : i32, i32
  }
  func.func @transform_6(%arg0: i32) -> (i32, i32) {
    %c0_i32 = arith.constant 0 : i32
    %c0_i32_0 = arith.constant 0 : i32
    %c0_i32_1 = arith.constant 0 : i32
    return %c0_i32, %c0_i32_0 : i32, i32
  }
  func.func @transform_7(%arg0: i32) -> (i32, i32) {
    %c0_i32 = arith.constant 0 : i32
    %c0_i32_0 = arith.constant 0 : i32
    %c0_i32_1 = arith.constant 0 : i32
    return %c0_i32, %c0_i32_0 : i32, i32
  }
  func.func @transform_8(%arg0: i32) -> (i32, i32) {
    %c0_i32 = arith.constant 0 : i32
    %c0_i32_0 = arith.constant 0 : i32
    %c0_i32_1 = arith.constant 0 : i32
    return %c0_i32, %c0_i32_0 : i32, i32
  }
  func.func @transform_9(%arg0: i32) -> (i32, i32) {
    %c0_i32 = arith.constant 0 : i32
    %c0_i32_0 = arith.constant 0 : i32
    %c0_i32_1 = arith.constant 0 : i32
    return %c0_i32, %c0_i32_0 : i32, i32
  }
  func.func @transform_10(%arg0: i32) -> (i32, i32) {
    %c0_i32 = arith.constant 0 : i32
    %c0_i32_0 = arith.constant 0 : i32
    %c0_i32_1 = arith.constant 0 : i32
    return %c0_i32, %c0_i32_0 : i32, i32
  }
  func.func @transform_11(%arg0: i32) -> (i32, i32) {
    %c0_i32 = arith.constant 0 : i32
    %c0_i32_0 = arith.constant 0 : i32
    %c0_i32_1 = arith.constant 0 : i32
    return %c0_i32, %c0_i32_0 : i32, i32
  }
  func.func @transform_12(%arg0: i32) -> (i32, i32) {
    %c0_i32 = arith.constant 0 : i32
    %c0_i32_0 = arith.constant 0 : i32
    %c0_i32_1 = arith.constant 0 : i32
    return %c0_i32, %c0_i32_0 : i32, i32
  }
  func.func @transform_13(%arg0: i32) -> (i32, i32) {
    %c0_i32 = arith.constant 0 : i32
    %c0_i32_0 = arith.constant 0 : i32
    %c0_i32_1 = arith.constant 0 : i32
    return %c0_i32, %c0_i32_0 : i32, i32
  }
  func.func @transform_14(%arg0: i32) -> (i32, i32) {
    %c0_i32 = arith.constant 0 : i32
    %c0_i32_0 = arith.constant 0 : i32
    %c0_i32_1 = arith.constant 0 : i32
    return %c0_i32, %c0_i32_0 : i32, i32
  }
  func.func @transform_15(%arg0: i32) -> (i32, i32) {
    %c0_i32 = arith.constant 0 : i32
    %c0_i32_0 = arith.constant 0 : i32
    %c0_i32_1 = arith.constant 0 : i32
    return %c0_i32, %c0_i32_0 : i32, i32
  }
  func.func @transform_16(%arg0: i32) -> (i32, i32) {
    %c0_i32 = arith.constant 0 : i32
    %c0_i32_0 = arith.constant 0 : i32
    %c0_i32_1 = arith.constant 0 : i32
    return %c0_i32, %c0_i32_0 : i32, i32
  }
  func.func @transform_17(%arg0: i32) -> (i32, i32) {
    %c0_i32 = arith.constant 0 : i32
    %c0_i32_0 = arith.constant 0 : i32
    %c0_i32_1 = arith.constant 0 : i32
    return %c0_i32, %c0_i32_0 : i32, i32
  }
  func.func @transform_18(%arg0: i32) -> (i32, i32) {
    %c0_i32 = arith.constant 0 : i32
    %c0_i32_0 = arith.constant 0 : i32
    %c0_i32_1 = arith.constant 0 : i32
    return %c0_i32, %c0_i32_0 : i32, i32
  }
  func.func @transform_19(%arg0: i32) -> (i32, i32) {
    %c0_i32 = arith.constant 0 : i32
    %c0_i32_0 = arith.constant 0 : i32
    %c0_i32_1 = arith.constant 0 : i32
    return %c0_i32, %c0_i32_0 : i32, i32
  }
}

</mosaic_0001>

<bundles_post_ra>
// kernel: compat_forward.1
= control target key start
LH: loop header
LB: loop body
LE: loop exit
PB: predicated region body
PF: predicated region fallthrough
CT: control target
= control target key end

     0   :  { %s5528_s0 = inlined_call_operand.vmem [shape: bf16[2048,32], index: 0, kind: input, shape index: {}]   ;;  %s5529_s1 = inlined_call_operand.vmem [shape: bf16[32,512], index: 1, kind: input, shape index: {}]   ;;  %s5530_s2 = inlined_call_operand.vmem [shape: f32[1,512], index: 2, kind: input, shape index: {}]   ;;  %s5531_s3 = inlined_call_operand.vmem [shape: bf16[512,256], index: 3, kind: input, shape index: {}]   ;;  %s5532_s4 = inlined_call_operand.vmem [shape: f32[1,256], index: 4, kind: input, shape index: {}]   ;;  %s5533_s5 = inlined_call_operand.vmem [shape: bf16[256,1024], index: 5, kind: input, shape index: {}]   ;;  %s5534_s6 = inlined_call_operand.vmem [shape: f32[1,256], index: 6, kind: input, shape index: {}]   ;;  %s5535_s7 = inlined_call_operand.vmem [shape: f32[1,256], index: 7, kind: input, shape index: {}]   ;;  %s5536_s8 = inlined_call_operand.vmem [shape: f32[1,256], index: 8, kind: input, shape index: {}]   ;;  %s5537_s9 = inlined_call_operand.vmem [shape: f32[256,1], index: 9, kind: input, shape index: {}]   ;;  %s5538_s10 = inlined_call_operand.<no memory space> [shape: f32[1,1], index: 10, kind: input, shape index: {}]   ;;  %s5539_s11 = inlined_call_operand.vmem [shape: bf16[8,64], index: 11, kind: input, shape index: {}]   ;;  %s5540_s12 = inlined_call_operand.vmem [shape: bf16[64,256], index: 12, kind: input, shape index: {}]   ;;  %s5541_s13 = inlined_call_operand.vmem [shape: f32[8,1], index: 13, kind: input, shape index: {}]   ;;  %s5542_s14 = inlined_call_operand.vmem [shape: bf16[512,256], index: 14, kind: input, shape index: {}]   ;;  %s5543_s15 = inlined_call_operand.vmem [shape: f32[1,256], index: 15, kind: input, shape index: {}]   ;;  %s5544_s16 = inlined_call_operand.vmem [shape: f32[8,1], index: 16, kind: input, shape index: {}]   ;;  %s5545_s17 = inlined_call_operand.vmem [shape: f32[1,8], index: 17, kind: input, shape index: {}]   ;;  %s5546_s18 = inlined_call_operand.vmem [shape: f32[2,1], index: 18, kind: output, shape index: {0}]   ;;  %s5547_s19 = inlined_call_operand.hbm [shape: f32[1,1], index: 19, kind: output, shape index: {1}]  }
   0x1   :  { %5550 = sst [smem:[#allocation7_spill]] %s5528_s0  ;;  %v25_v0 = vstv %s5538_s10 }
   0x2   :  { %5551 = sst [smem:[#allocation8_spill]] %s5529_s1  ;;  %26 = vst [vmem:[#allocation3] sm:$0x1] %v25_v0 }
   0x3   :  { %5552 = sst [smem:[#allocation9_spill]] %s5530_s2 }
   0x4   :  { %5553 = sst [smem:[#allocation10_spill]] %s5531_s3 }
   0x5   :  { %27 = vsyncpa [#allocation5], 0  ;;  %s4270_s20 = smov 0  }
   0x6 LB: > { %s5554_s22 = sld [smem:[#allocation8_spill]]  ;;  %v4161_v3 = vmov 0   ;;  %s3448_s26 = sshll.u32 %s4159_s20, 8  ;;  %vm258_vm0 = vcmask 261120   ;;  %v118_v26 = vlaneseq  ;;  %s4159_s20 = sphi %s4270_s20, %s70_s20  }
   0x7   : > { %339 = vmatprep.mubr.bf16.mxu0 %v4161_v3  ;;  %532 = vmatprep.mubr.bf16.mxu1 %v4161_v3  ;;  %s72_s29 = sshra.s32 %s3448_s26, 3  ;;  %s5555_s3 = sld [smem:[#allocation7_spill]] }
   0x8   : > { %s3449_s2 = sshll.u32 %s72_s29, 2  ;;  %v4386_v27 = vshrl.u32 %v118_v26, 7  ;;  %s5556_s29 = sld [smem:[#allocation9_spill]]  ;;  %vm1005_vm1 = vcmp.lt.s32.totalorder %v118_v26, 512 }
   0x9   : > { %s1007_s0 = sshra.s32 %s4159_s20, 3  ;;  %s1010_s30 = sand.u32 7, %s4159_s20 }
   0xa   : > { %v4389_v28 = vsub.s32 0, %v4386_v27  ;;  %v128_v29 = vsub.s32 2, %v4386_v27  ;;  %v4396_v31 = vsub.s32 1, %v4386_v27  ;;  %v132_v32 = vsub.s32 3, %v4386_v27  ;;  %s3777_s21 = sshll.u32 %s1007_s0, 5  ;;  %s70_s20 = sadd.s32 1, %s4159_s20  }
   0xb   : > { %s1013_s1 = sadd.s32 %s3777_s21, %s1010_s30  ;;  %p67_p0 = scmp.ge.s32.totalorder %s70_s20, 8  }
   0xc   : > { %v3879_v1 = vld [vmem:[%s5554_s22 + $0x4] ss:$16 sps:$4 sm:$0xff]   ;;  %v3881_v2 = vld [vmem:[%s5554_s22 + $0xc] ss:$16 sps:$4 sm:$0xff]   ;;  %v3883_v4 = vld [vmem:[%s5554_s22] ss:$16 sps:$4 sm:$0xff]  }
   0xd   : > { %307 = vmatprep.subr.bf16.mxu0 %v3879_v1  ;;  %v3884_v5 = vld [vmem:[%s5554_s22 + $0x8] ss:$16 sps:$4 sm:$0xff]   ;;  %500 = vmatprep.subr.bf16.mxu1 %v3881_v2  ;;  %v3885_v6 = vld [vmem:[%s5554_s22 + $0x24] ss:$16 sps:$4 sm:$0xff]   ;;  %v3887_v7 = vld [vmem:[%s5554_s22 + $0x2c] ss:$16 sps:$4 sm:$0xff]   ;;  %s4305_s26 = scalar_lea.vmem %s5555_s3, %s3449_s2 }
   0xe   : > { %308 = vmatpush1.bf16.msra.mxu0 %v3883_v4  ;;  %501 = vmatpush1.bf16.msra.mxu1 %v3884_v5  ;;  %v3889_v8 = vld [vmem:[%s5554_s22 + $0x20] ss:$16 sps:$4 sm:$0xff]   ;;  %v3890_v9 = vld [vmem:[%s5554_s22 + $0x28] ss:$16 sps:$4 sm:$0xff]   ;;  %s1014_s2 = scalar_lea.vmem [#allocation2], %s1013_s1  ;;  %s5557_s24 = sld [smem:[#allocation10_spill]] (%p67_p0) }
   0xf   : > { %309 = vmatprep.subr.bf16.mxu0 %v3885_v6  ;;  %502 = vmatprep.subr.bf16.mxu1 %v3887_v7  ;;  %v3891_v10 = vld [vmem:[%s4305_s26] sm:$0xff]   ;;  %v3892_v11 = vld [vmem:[%s4305_s26 + $0x8] sm:$0xff]   ;;  %v3893_v12 = vld [vmem:[%s4305_s26 + $0x10] sm:$0xff]   ;;  %vm2717_vm2 = vcmask (%p67_p0), 523264   ;;  %vm2475_vm3 = vcmask (%p67_p0), 1041408   ;;  %vm2664_vm4 = vcmask (%p67_p0), 1024  }
  0x10   : > { %v3894_v13 = vld [vmem:[%s4305_s26 + $0x18] sm:$0xff]   ;;  %v3895_v14 = vld [vmem:[%s4305_s26 + $0x20] sm:$0xff]   ;;  %v3896_v15 = vld [vmem:[%s4305_s26 + $0x28] sm:$0xff]   ;;  %vm3343_vm6 = vcmask (%p67_p0), 64512   ;;  %vm3379_vm7 = vcmask (%p67_p0), 7168   ;;  %s4166_s23 = smov (%p67_p0), [#allocation4]  }
  0x11   : > { %v3897_v16 = vld [vmem:[%s4305_s26 + $0x30] sm:$0xff]   ;;  %v3898_v17 = vld [vmem:[%s4305_s26 + $0x38] sm:$0xff]   ;;  %v3899_v18 = vld [vmem:[%s4305_s26 + $0x40] sm:$0xff]   ;;  %s3428_s10 = sshll.u32 (%p67_p0), %s4166_s23, 4  ;;  %vm3418_vm8 = vcmask (%p67_p0), 0   ;;  %s3429_s10 = int_to_ptr.vmem [resolvable:$true] %s3428_s10 }
  0x12   : > { %310 = vmatpush1.bf16.msra.mxu0 %v3889_v8  ;;  %503 = vmatpush1.bf16.msra.mxu1 %v3890_v9  ;;  %v3900_v19 = vld [vmem:[%s4305_s26 + $0x48] sm:$0xff]   ;;  %v3901_v20 = vld [vmem:[%s4305_s26 + $0x50] sm:$0xff]   ;;  %v3902_v21 = vld [vmem:[%s4305_s26 + $0x58] sm:$0xff]   ;;  %s4129_s3 = scalar_lea.vmem (%p67_p0), %s3429_s10, 16  ;;  %p4134_p2 = scmp.lt.s32.totalorder (%p67_p0), %s3429_s10, %s3429_s10 }
  0x13   : > { %v3903_v22 = vld [vmem:[%s4305_s26 + $0x60] sm:$0xff]   ;;  %v3904_v23 = vld [vmem:[%s4305_s26 + $0x68] sm:$0xff]   ;;  %v3905_v24 = vld [vmem:[%s4305_s26 + $0x70] sm:$0xff]   ;;  %p4130_p1 = scmp.ne.s32.totalorder (%p67_p0), %s3429_s10, %s4129_s3 }
  0x14   : > { %v3906_v25 = vld [vmem:[%s4305_s26 + $0x78] sm:$0xff]   ;;  %v116_v30 = vld [vmem:[%s5556_s29] sm:$0xf] }
  0x15   : > { %3474 = vmatmul.mubr.msk.bf16.vlgmr.msra.gmra.mrb[0].mxu0 %vm258_vm0, %v3891_v10  ;;  %3490 = vmatmul.mubr.msk.bf16.vlgmr.msra.gmra.mrb[0].mxu1 %vm258_vm0, %v3891_v10  ;;  %v4400_v33 = vrot.slane %v116_v30, %v4389_v28  ;;  %v4402_v34 = vrot.slane %v116_v30, %v128_v29  ;;  %v4405_v35 = vrot.slane %v116_v30, %v4396_v31 }
  0x16   : > { %349 = vmatprep.mubr.bf16.mxu0 %v4161_v3  ;;  %542 = vmatprep.mubr.bf16.mxu1 %v4161_v3  ;;  %v4407_v36 = vrot.slane %v116_v30, %v132_v32 }
  0x1d   : > { %3475 = vmatmul.mubr.msk.bf16.gmra.mrb[4].mxu0 %vm258_vm0, %v3892_v11  ;;  %3491 = vmatmul.mubr.msk.bf16.gmra.mrb[4].mxu1 %vm258_vm0, %v3892_v11 }
  0x1e   : > { %359 = vmatprep.mubr.bf16.mxu0 %v4161_v3  ;;  %552 = vmatprep.mubr.bf16.mxu1 %v4161_v3 }
  0x25   : > { %3476 = vmatmul.mubr.msk.bf16.gmra.mrb[8].mxu0 %vm258_vm0, %v3893_v12  ;;  %3492 = vmatmul.mubr.msk.bf16.gmra.mrb[8].mxu1 %vm258_vm0, %v3893_v12 }
  0x26   : > { %369 = vmatprep.mubr.bf16.mxu0 %v4161_v3  ;;  %562 = vmatprep.mubr.bf16.mxu1 %v4161_v3 }
  0x2d   : > { %3477 = vmatmul.mubr.msk.bf16.gmra.mrb[12].mxu0 %vm258_vm0, %v3894_v13  ;;  %3493 = vmatmul.mubr.msk.bf16.gmra.mrb[12].mxu1 %vm258_vm0, %v3894_v13 }
  0x2e   : > { %379 = vmatprep.mubr.bf16.mxu0 %v4161_v3  ;;  %572 = vmatprep.mubr.bf16.mxu1 %v4161_v3 }
  0x35   : > { %3478 = vmatmul.mubr.msk.bf16.gmra.mrb[16].mxu0 %vm258_vm0, %v3895_v14  ;;  %3494 = vmatmul.mubr.msk.bf16.gmra.mrb[16].mxu1 %vm258_vm0, %v3895_v14 }
  0x36   : > { %389 = vmatprep.mubr.bf16.mxu0 %v4161_v3  ;;  %582 = vmatprep.mubr.bf16.mxu1 %v4161_v3 }
  0x3d   : > { %3479 = vmatmul.mubr.msk.bf16.gmra.mrb[20].mxu0 %vm258_vm0, %v3896_v15  ;;  %3495 = vmatmul.mubr.msk.bf16.gmra.mrb[20].mxu1 %vm258_vm0, %v3896_v15 }
  0x3e   : > { %399 = vmatprep.mubr.bf16.mxu0 %v4161_v3  ;;  %592 = vmatprep.mubr.bf16.mxu1 %v4161_v3 }
  0x45   : > { %3480 = vmatmul.mubr.msk.bf16.gmra.mrb[24].mxu0 %vm258_vm0, %v3897_v16  ;;  %3496 = vmatmul.mubr.msk.bf16.gmra.mrb[24].mxu1 %vm258_vm0, %v3897_v16 }
  0x46   : > { %409 = vmatprep.mubr.bf16.mxu0 %v4161_v3  ;;  %602 = vmatprep.mubr.bf16.mxu1 %v4161_v3 }
  0x4d   : > { %3481 = vmatmul.mubr.msk.bf16.gmra.mrb[28].mxu0 %vm258_vm0, %v3898_v17  ;;  %3497 = vmatmul.mubr.msk.bf16.gmra.mrb[28].mxu1 %vm258_vm0, %v3898_v17 }
  0x4e   : > { %419 = vmatprep.mubr.bf16.mxu0 %v4161_v3  ;;  %612 = vmatprep.mubr.bf16.mxu1 %v4161_v3 }
  0x55   : > { %3482 = vmatmul.mubr.msk.bf16.gmra.mrb[32].mxu0 %vm258_vm0, %v3899_v18  ;;  %3498 = vmatmul.mubr.msk.bf16.gmra.mrb[32].mxu1 %vm258_vm0, %v3899_v18 }
  0x56   : > { %429 = vmatprep.mubr.bf16.mxu0 %v4161_v3  ;;  %622 = vmatprep.mubr.bf16.mxu1 %v4161_v3 }
  0x5d   : > { %3483 = vmatmul.mubr.msk.bf16.gmra.mrb[36].mxu0 %vm258_vm0, %v3900_v19  ;;  %3499 = vmatmul.mubr.msk.bf16.gmra.mrb[36].mxu1 %vm258_vm0, %v3900_v19 }
  0x5e   : > { %439 = vmatprep.mubr.bf16.mxu0 %v4161_v3  ;;  %632 = vmatprep.mubr.bf16.mxu1 %v4161_v3 }
  0x65   : > { %3484 = vmatmul.mubr.msk.bf16.gmra.mrb[40].mxu0 %vm258_vm0, %v3901_v20  ;;  %3500 = vmatmul.mubr.msk.bf16.gmra.mrb[40].mxu1 %vm258_vm0, %v3901_v20 }
  0x66   : > { %449 = vmatprep.mubr.bf16.mxu0 %v4161_v3  ;;  %642 = vmatprep.mubr.bf16.mxu1 %v4161_v3 }
  0x6d   : > { %3485 = vmatmul.mubr.msk.bf16.gmra.mrb[44].mxu0 %vm258_vm0, %v3902_v21  ;;  %3501 = vmatmul.mubr.msk.bf16.gmra.mrb[44].mxu1 %vm258_vm0, %v3902_v21 }
  0x6e   : > { %459 = vmatprep.mubr.bf16.mxu0 %v4161_v3  ;;  %652 = vmatprep.mubr.bf16.mxu1 %v4161_v3 }
  0x75   : > { %3486 = vmatmul.mubr.msk.bf16.gmra.mrb[48].mxu0 %vm258_vm0, %v3903_v22  ;;  %3502 = vmatmul.mubr.msk.bf16.gmra.mrb[48].mxu1 %vm258_vm0, %v3903_v22 }
  0x76   : > { %469 = vmatprep.mubr.bf16.mxu0 %v4161_v3  ;;  %662 = vmatprep.mubr.bf16.mxu1 %v4161_v3 }
  0x7d   : > { %3487 = vmatmul.mubr.msk.bf16.gmra.mrb[52].mxu0 %vm258_vm0, %v3904_v23  ;;  %3503 = vmatmul.mubr.msk.bf16.gmra.mrb[52].mxu1 %vm258_vm0, %v3904_v23 }
  0x7e   : > { %479 = vmatprep.mubr.bf16.mxu0 %v4161_v3  ;;  %672 = vmatprep.mubr.bf16.mxu1 %v4161_v3 }
  0x85   : > { %3488 = vmatmul.mubr.msk.bf16.gmra.mrb[56].mxu0 %vm258_vm0, %v3905_v24  ;;  %3504 = vmatmul.mubr.msk.bf16.gmra.mrb[56].mxu1 %vm258_vm0, %v3905_v24 }
  0x86   : > { %489 = vmatprep.mubr.bf16.mxu0 %v4161_v3  ;;  %682 = vmatprep.mubr.bf16.mxu1 %v4161_v3 }
  0x8d   : > { %3489 = vmatmul.mubr.msk.bf16.gmra.mrb[60].mxu0 %vm258_vm0, %v3906_v25  ;;  %3505 = vmatmul.mubr.msk.bf16.gmra.mrb[60].mxu1 %vm258_vm0, %v3906_v25 }
  0xe8   : > { %v341_v37 = vpop.f32.mrb[0].mxu0  ;;  %v534_v38 = vpop.f32.mrb[0].mxu1 }
  0xe9   : > { %v342_v39 = vadd.f32 %v341_v37, %v4400_v33  ;;  %v535_v40 = vadd.f32 %v534_v38, %v4402_v34  ;;  %v343_v41 = vpop.f32.mrb[1].mxu0  ;;  %v536_v42 = vpop.f32.mrb[1].mxu1 }
  0xea   : > { %v344_v43 = vadd.f32 %v343_v41, %v4405_v35  ;;  %v537_v44 = vadd.f32 %v536_v42, %v4407_v36  ;;  %v345_v45 = vpop.f32.mrb[2].mxu0  ;;  %v538_v46 = vpop.f32.mrb[2].mxu1 }
  0xeb   : > { %v346_v47 = vadd.f32 %v345_v45, %v4400_v33  ;;  %v539_v48 = vadd.f32 %v538_v46, %v4402_v34  ;;  %v347_v49 = vpop.f32.mrb[3].mxu0  ;;  %v540_v50 = vpop.f32.mrb[3].mxu1  ;;  %v693_v53 = vmax.f32 %v342_v39, 0.0  ;;  %v695_v54 = vmax.f32 %v535_v40, 0.0 }
  0xec   : > { %v348_v51 = vadd.f32 %v347_v49, %v4405_v35  ;;  %v541_v52 = vadd.f32 %v540_v50, %v4407_v36  ;;  %v694_v57 = vmax.f32 %v344_v43, 0.0  ;;  %v696_v58 = vmax.f32 %v537_v44, 0.0 }
  0xed   : > { %v697_v55 = vmax.f32 %v346_v47, 0.0  ;;  %v699_v56 = vmax.f32 %v539_v48, 0.0 }
  0xee   : > { %v698_v59 = vmax.f32 %v348_v51, 0.0  ;;  %v700_v60 = vmax.f32 %v541_v52, 0.0 }
  0xef   : > { %v821_v61 = vadd.f32 %v697_v55, %v693_v53  ;;  %v895_v62 = vadd.f32 %v699_v56, %v695_v54 }
  0xf0   : > { %v858_v63 = vadd.f32 %v698_v59, %v694_v57  ;;  %v932_v0 = vadd.f32 %v700_v60, %v696_v58  ;;  %v351_v1 = vpop.f32.mrb[4].mxu0  ;;  %v544_v2 = vpop.f32.mrb[4].mxu1 }
  0xf1   : > { %v352_v3 = vadd.f32 %v351_v1, %v4400_v33  ;;  %v545_v4 = vadd.f32 %v544_v2, %v4402_v34  ;;  %v353_v5 = vpop.f32.mrb[5].mxu0  ;;  %v546_v6 = vpop.f32.mrb[5].mxu1 }
  0xf2   : > { %v354_v7 = vadd.f32 %v353_v5, %v4405_v35  ;;  %v547_v8 = vadd.f32 %v546_v6, %v4407_v36  ;;  %v355_v9 = vpop.f32.mrb[6].mxu0  ;;  %v548_v10 = vpop.f32.mrb[6].mxu1 }
  0xf3   : > { %v701_v11 = vmax.f32 %v352_v3, 0.0  ;;  %v703_v12 = vmax.f32 %v545_v4, 0.0  ;;  %v356_v13 = vadd.f32 %v355_v9, %v4400_v33  ;;  %v549_v14 = vadd.f32 %v548_v10, %v4402_v34  ;;  %v357_v15 = vpop.f32.mrb[7].mxu0  ;;  %v550_v16 = vpop.f32.mrb[7].mxu1 }
  0xf4   : > { %v702_v17 = vmax.f32 %v354_v7, 0.0  ;;  %v704_v18 = vmax.f32 %v547_v8, 0.0  ;;  %v358_v19 = vadd.f32 %v357_v15, %v4405_v35  ;;  %v551_v20 = vadd.f32 %v550_v16, %v4407_v36 }
  0xf5   : > { %v822_v21 = vadd.f32 %v821_v61, %v701_v11  ;;  %v896_v22 = vadd.f32 %v895_v62, %v703_v12  ;;  %v705_v23 = vmax.f32 %v356_v13, 0.0  ;;  %v707_v24 = vmax.f32 %v549_v14, 0.0 }
  0xf6   : > { %v859_v25 = vadd.f32 %v858_v63, %v702_v17  ;;  %v933_v29 = vadd.f32 %v932_v0, %v704_v18  ;;  %v706_v30 = vmax.f32 %v358_v19, 0.0  ;;  %v708_v32 = vmax.f32 %v551_v20, 0.0 }
  0xf7   : > { %v823_v37 = vadd.f32 %v822_v21, %v705_v23  ;;  %v897_v38 = vadd.f32 %v896_v22, %v707_v24 }
  0xf8   : > { %v860_v39 = vadd.f32 %v859_v25, %v706_v30  ;;  %v934_v40 = vadd.f32 %v933_v29, %v708_v32  ;;  %v361_v41 = vpop.f32.mrb[8].mxu0  ;;  %v554_v42 = vpop.f32.mrb[8].mxu1 }
  0xf9   : > { %v362_v43 = vadd.f32 %v361_v41, %v4400_v33  ;;  %v555_v44 = vadd.f32 %v554_v42, %v4402_v34  ;;  %v363_v45 = vpop.f32.mrb[9].mxu0  ;;  %v556_v46 = vpop.f32.mrb[9].mxu1 }
  0xfa   : > { %v364_v47 = vadd.f32 %v363_v45, %v4405_v35  ;;  %v557_v48 = vadd.f32 %v556_v46, %v4407_v36  ;;  %v365_v49 = vpop.f32.mrb[10].mxu0  ;;  %v558_v50 = vpop.f32.mrb[10].mxu1 }
  0xfb   : > { %v709_v51 = vmax.f32 %v362_v43, 0.0  ;;  %v711_v52 = vmax.f32 %v555_v44, 0.0  ;;  %v366_v53 = vadd.f32 %v365_v49, %v4400_v33  ;;  %v559_v54 = vadd.f32 %v558_v50, %v4402_v34  ;;  %v367_v55 = vpop.f32.mrb[11].mxu0  ;;  %v560_v56 = vpop.f32.mrb[11].mxu1 }
  0xfc   : > { %v710_v57 = vmax.f32 %v364_v47, 0.0  ;;  %v712_v58 = vmax.f32 %v557_v48, 0.0  ;;  %v368_v59 = vadd.f32 %v367_v55, %v4405_v35  ;;  %v561_v60 = vadd.f32 %v560_v56, %v4407_v36 }
  0xfd   : > { %v824_v61 = vadd.f32 %v823_v37, %v709_v51  ;;  %v898_v62 = vadd.f32 %v897_v38, %v711_v52  ;;  %v713_v63 = vmax.f32 %v366_v53, 0.0  ;;  %v715_v0 = vmax.f32 %v559_v54, 0.0 }
  0xfe   : > { %v861_v1 = vadd.f32 %v860_v39, %v710_v57  ;;  %v935_v2 = vadd.f32 %v934_v40, %v712_v58  ;;  %v714_v3 = vmax.f32 %v368_v59, 0.0  ;;  %v716_v4 = vmax.f32 %v561_v60, 0.0 }
  0xff   : > { %v825_v5 = vadd.f32 %v824_v61, %v713_v63  ;;  %v899_v6 = vadd.f32 %v898_v62, %v715_v0 }
 0x100   : > { %v862_v7 = vadd.f32 %v861_v1, %v714_v3  ;;  %v936_v8 = vadd.f32 %v935_v2, %v716_v4  ;;  %v371_v9 = vpop.f32.mrb[12].mxu0  ;;  %v564_v10 = vpop.f32.mrb[12].mxu1 }
 0x101   : > { %v372_v11 = vadd.f32 %v371_v9, %v4400_v33  ;;  %v565_v12 = vadd.f32 %v564_v10, %v4402_v34  ;;  %v373_v13 = vpop.f32.mrb[13].mxu0  ;;  %v566_v14 = vpop.f32.mrb[13].mxu1 }
 0x102   : > { %v374_v15 = vadd.f32 %v373_v13, %v4405_v35  ;;  %v567_v16 = vadd.f32 %v566_v14, %v4407_v36  ;;  %v375_v17 = vpop.f32.mrb[14].mxu0  ;;  %v568_v18 = vpop.f32.mrb[14].mxu1 }
 0x103   : > { %v717_v19 = vmax.f32 %v372_v11, 0.0  ;;  %v719_v20 = vmax.f32 %v565_v12, 0.0  ;;  %v376_v21 = vadd.f32 %v375_v17, %v4400_v33  ;;  %v569_v22 = vadd.f32 %v568_v18, %v4402_v34  ;;  %v377_v23 = vpop.f32.mrb[15].mxu0  ;;  %v570_v24 = vpop.f32.mrb[15].mxu1 }
 0x104   : > { %v718_v25 = vmax.f32 %v374_v15, 0.0  ;;  %v720_v29 = vmax.f32 %v567_v16, 0.0  ;;  %v378_v30 = vadd.f32 %v377_v23, %v4405_v35  ;;  %v571_v32 = vadd.f32 %v570_v24, %v4407_v36 }
 0x105   : > { %v826_v37 = vadd.f32 %v825_v5, %v717_v19  ;;  %v900_v38 = vadd.f32 %v899_v6, %v719_v20  ;;  %v721_v39 = vmax.f32 %v376_v21, 0.0  ;;  %v723_v40 = vmax.f32 %v569_v22, 0.0 }
 0x106   : > { %v863_v41 = vadd.f32 %v862_v7, %v718_v25  ;;  %v937_v42 = vadd.f32 %v936_v8, %v720_v29  ;;  %v722_v43 = vmax.f32 %v378_v30, 0.0  ;;  %v724_v44 = vmax.f32 %v571_v32, 0.0 }
 0x107   : > { %v827_v45 = vadd.f32 %v826_v37, %v721_v39  ;;  %v901_v46 = vadd.f32 %v900_v38, %v723_v40 }
 0x108   : > { %v864_v47 = vadd.f32 %v863_v41, %v722_v43  ;;  %v938_v48 = vadd.f32 %v937_v42, %v724_v44  ;;  %v381_v49 = vpop.f32.mrb[16].mxu0  ;;  %v574_v50 = vpop.f32.mrb[16].mxu1 }
 0x109   : > { %v382_v51 = vadd.f32 %v381_v49, %v4400_v33  ;;  %v575_v52 = vadd.f32 %v574_v50, %v4402_v34  ;;  %v383_v53 = vpop.f32.mrb[17].mxu0  ;;  %v576_v54 = vpop.f32.mrb[17].mxu1 }
 0x10a   : > { %v384_v55 = vadd.f32 %v383_v53, %v4405_v35  ;;  %v577_v56 = vadd.f32 %v576_v54, %v4407_v36  ;;  %v385_v57 = vpop.f32.mrb[18].mxu0  ;;  %v578_v58 = vpop.f32.mrb[18].mxu1 }
 0x10b   : > { %v725_v59 = vmax.f32 %v382_v51, 0.0  ;;  %v727_v60 = vmax.f32 %v575_v52, 0.0  ;;  %v386_v61 = vadd.f32 %v385_v57, %v4400_v33  ;;  %v579_v62 = vadd.f32 %v578_v58, %v4402_v34  ;;  %v387_v63 = vpop.f32.mrb[19].mxu0  ;;  %v580_v0 = vpop.f32.mrb[19].mxu1 }
 0x10c   : > { %v726_v1 = vmax.f32 %v384_v55, 0.0  ;;  %v728_v2 = vmax.f32 %v577_v56, 0.0  ;;  %v388_v3 = vadd.f32 %v387_v63, %v4405_v35  ;;  %v581_v4 = vadd.f32 %v580_v0, %v4407_v36 }
 0x10d   : > { %v828_v5 = vadd.f32 %v827_v45, %v725_v59  ;;  %v902_v6 = vadd.f32 %v901_v46, %v727_v60  ;;  %v729_v7 = vmax.f32 %v386_v61, 0.0  ;;  %v731_v8 = vmax.f32 %v579_v62, 0.0 }
 0x10e   : > { %v865_v9 = vadd.f32 %v864_v47, %v726_v1  ;;  %v939_v10 = vadd.f32 %v938_v48, %v728_v2  ;;  %v730_v11 = vmax.f32 %v388_v3, 0.0  ;;  %v732_v12 = vmax.f32 %v581_v4, 0.0 }
 0x10f   : > { %v829_v13 = vadd.f32 %v828_v5, %v729_v7  ;;  %v903_v14 = vadd.f32 %v902_v6, %v731_v8 }
 0x110   : > { %v866_v15 = vadd.f32 %v865_v9, %v730_v11  ;;  %v940_v16 = vadd.f32 %v939_v10, %v732_v12  ;;  %v391_v17 = vpop.f32.mrb[20].mxu0  ;;  %v584_v18 = vpop.f32.mrb[20].mxu1 }
 0x111   : > { %v392_v19 = vadd.f32 %v391_v17, %v4400_v33  ;;  %v585_v20 = vadd.f32 %v584_v18, %v4402_v34  ;;  %v393_v21 = vpop.f32.mrb[21].mxu0  ;;  %v586_v22 = vpop.f32.mrb[21].mxu1 }
 0x112   : > { %v394_v23 = vadd.f32 %v393_v21, %v4405_v35  ;;  %v587_v24 = vadd.f32 %v586_v22, %v4407_v36  ;;  %v395_v25 = vpop.f32.mrb[22].mxu0  ;;  %v588_v29 = vpop.f32.mrb[22].mxu1 }
 0x113   : > { %v733_v30 = vmax.f32 %v392_v19, 0.0  ;;  %v735_v32 = vmax.f32 %v585_v20, 0.0  ;;  %v396_v37 = vadd.f32 %v395_v25, %v4400_v33  ;;  %v589_v38 = vadd.f32 %v588_v29, %v4402_v34  ;;  %v397_v39 = vpop.f32.mrb[23].mxu0  ;;  %v590_v40 = vpop.f32.mrb[23].mxu1 }
 0x114   : > { %v734_v41 = vmax.f32 %v394_v23, 0.0  ;;  %v736_v42 = vmax.f32 %v587_v24, 0.0  ;;  %v398_v43 = vadd.f32 %v397_v39, %v4405_v35  ;;  %v591_v44 = vadd.f32 %v590_v40, %v4407_v36 }
 0x115   : > { %v830_v45 = vadd.f32 %v829_v13, %v733_v30  ;;  %v904_v46 = vadd.f32 %v903_v14, %v735_v32  ;;  %v737_v47 = vmax.f32 %v396_v37, 0.0  ;;  %v739_v48 = vmax.f32 %v589_v38, 0.0 }
 0x116   : > { %v867_v49 = vadd.f32 %v866_v15, %v734_v41  ;;  %v941_v50 = vadd.f32 %v940_v16, %v736_v42  ;;  %v738_v51 = vmax.f32 %v398_v43, 0.0  ;;  %v740_v52 = vmax.f32 %v591_v44, 0.0 }
 0x117   : > { %v831_v53 = vadd.f32 %v830_v45, %v737_v47  ;;  %v905_v54 = vadd.f32 %v904_v46, %v739_v48 }
 0x118   : > { %v868_v55 = vadd.f32 %v867_v49, %v738_v51  ;;  %v942_v56 = vadd.f32 %v941_v50, %v740_v52  ;;  %v401_v57 = vpop.f32.mrb[24].mxu0  ;;  %v594_v58 = vpop.f32.mrb[24].mxu1 }
 0x119   : > { %v402_v59 = vadd.f32 %v401_v57, %v4400_v33  ;;  %v595_v60 = vadd.f32 %v594_v58, %v4402_v34  ;;  %v403_v61 = vpop.f32.mrb[25].mxu0  ;;  %v596_v62 = vpop.f32.mrb[25].mxu1 }
 0x11a   : > { %v404_v63 = vadd.f32 %v403_v61, %v4405_v35  ;;  %v597_v0 = vadd.f32 %v596_v62, %v4407_v36  ;;  %v405_v1 = vpop.f32.mrb[26].mxu0  ;;  %v598_v2 = vpop.f32.mrb[26].mxu1 }
 0x11b   : > { %v741_v3 = vmax.f32 %v402_v59, 0.0  ;;  %v743_v4 = vmax.f32 %v595_v60, 0.0  ;;  %v406_v5 = vadd.f32 %v405_v1, %v4400_v33  ;;  %v599_v6 = vadd.f32 %v598_v2, %v4402_v34  ;;  %v407_v7 = vpop.f32.mrb[27].mxu0  ;;  %v600_v8 = vpop.f32.mrb[27].mxu1 }
 0x11c   : > { %v742_v9 = vmax.f32 %v404_v63, 0.0  ;;  %v744_v10 = vmax.f32 %v597_v0, 0.0  ;;  %v408_v11 = vadd.f32 %v407_v7, %v4405_v35  ;;  %v601_v12 = vadd.f32 %v600_v8, %v4407_v36 }
 0x11d   : > { %v832_v13 = vadd.f32 %v831_v53, %v741_v3  ;;  %v906_v14 = vadd.f32 %v905_v54, %v743_v4  ;;  %v745_v15 = vmax.f32 %v406_v5, 0.0  ;;  %v747_v16 = vmax.f32 %v599_v6, 0.0 }
 0x11e   : > { %v869_v17 = vadd.f32 %v868_v55, %v742_v9  ;;  %v943_v18 = vadd.f32 %v942_v56, %v744_v10  ;;  %v746_v19 = vmax.f32 %v408_v11, 0.0  ;;  %v748_v20 = vmax.f32 %v601_v12, 0.0 }
 0x11f   : > { %v833_v21 = vadd.f32 %v832_v13, %v745_v15  ;;  %v907_v22 = vadd.f32 %v906_v14, %v747_v16 }
 0x120   : > { %v870_v23 = vadd.f32 %v869_v17, %v746_v19  ;;  %v944_v24 = vadd.f32 %v943_v18, %v748_v20  ;;  %v411_v25 = vpop.f32.mrb[28].mxu0  ;;  %v604_v29 = vpop.f32.mrb[28].mxu1 }
 0x121   : > { %v412_v30 = vadd.f32 %v411_v25, %v4400_v33  ;;  %v605_v32 = vadd.f32 %v604_v29, %v4402_v34  ;;  %v413_v37 = vpop.f32.mrb[29].mxu0  ;;  %v606_v38 = vpop.f32.mrb[29].mxu1 }
 0x122   : > { %v414_v39 = vadd.f32 %v413_v37, %v4405_v35  ;;  %v607_v40 = vadd.f32 %v606_v38, %v4407_v36  ;;  %v415_v41 = vpop.f32.mrb[30].mxu0  ;;  %v608_v42 = vpop.f32.mrb[30].mxu1 }
 0x123   : > { %v749_v43 = vmax.f32 %v412_v30, 0.0  ;;  %v751_v44 = vmax.f32 %v605_v32, 0.0  ;;  %v416_v45 = vadd.f32 %v415_v41, %v4400_v33  ;;  %v609_v46 = vadd.f32 %v608_v42, %v4402_v34  ;;  %v417_v47 = vpop.f32.mrb[31].mxu0  ;;  %v610_v48 = vpop.f32.mrb[31].mxu1 }
 0x124   : > { %v750_v49 = vmax.f32 %v414_v39, 0.0  ;;  %v752_v50 = vmax.f32 %v607_v40, 0.0  ;;  %v418_v51 = vadd.f32 %v417_v47, %v4405_v35  ;;  %v611_v52 = vadd.f32 %v610_v48, %v4407_v36 }
 0x125   : > { %v834_v53 = vadd.f32 %v833_v21, %v749_v43  ;;  %v908_v54 = vadd.f32 %v907_v22, %v751_v44  ;;  %v753_v55 = vmax.f32 %v416_v45, 0.0  ;;  %v755_v56 = vmax.f32 %v609_v46, 0.0 }
 0x126   : > { %v871_v57 = vadd.f32 %v870_v23, %v750_v49  ;;  %v945_v58 = vadd.f32 %v944_v24, %v752_v50  ;;  %v754_v59 = vmax.f32 %v418_v51, 0.0  ;;  %v756_v60 = vmax.f32 %v611_v52, 0.0 }
 0x127   : > { %v835_v61 = vadd.f32 %v834_v53, %v753_v55  ;;  %v909_v62 = vadd.f32 %v908_v54, %v755_v56 }
 0x128   : > { %v872_v63 = vadd.f32 %v871_v57, %v754_v59  ;;  %v946_v0 = vadd.f32 %v945_v58, %v756_v60  ;;  %v421_v1 = vpop.f32.mrb[32].mxu0  ;;  %v614_v2 = vpop.f32.mrb[32].mxu1 }
 0x129   : > { %v422_v3 = vadd.f32 %v421_v1, %v4400_v33  ;;  %v615_v4 = vadd.f32 %v614_v2, %v4402_v34  ;;  %v423_v5 = vpop.f32.mrb[33].mxu0  ;;  %v616_v6 = vpop.f32.mrb[33].mxu1 }
 0x12a   : > { %v424_v7 = vadd.f32 %v423_v5, %v4405_v35  ;;  %v617_v8 = vadd.f32 %v616_v6, %v4407_v36  ;;  %v425_v9 = vpop.f32.mrb[34].mxu0  ;;  %v618_v10 = vpop.f32.mrb[34].mxu1 }
 0x12b   : > { %v757_v11 = vmax.f32 %v422_v3, 0.0  ;;  %v759_v12 = vmax.f32 %v615_v4, 0.0  ;;  %v426_v13 = vadd.f32 %v425_v9, %v4400_v33  ;;  %v619_v14 = vadd.f32 %v618_v10, %v4402_v34  ;;  %v427_v15 = vpop.f32.mrb[35].mxu0  ;;  %v620_v16 = vpop.f32.mrb[35].mxu1 }
 0x12c   : > { %v758_v17 = vmax.f32 %v424_v7, 0.0  ;;  %v760_v18 = vmax.f32 %v617_v8, 0.0  ;;  %v428_v19 = vadd.f32 %v427_v15, %v4405_v35  ;;  %v621_v20 = vadd.f32 %v620_v16, %v4407_v36 }
 0x12d   : > { %v836_v21 = vadd.f32 %v835_v61, %v757_v11  ;;  %v910_v22 = vadd.f32 %v909_v62, %v759_v12  ;;  %v761_v23 = vmax.f32 %v426_v13, 0.0  ;;  %v763_v24 = vmax.f32 %v619_v14, 0.0 }
 0x12e   : > { %v873_v25 = vadd.f32 %v872_v63, %v758_v17  ;;  %v947_v29 = vadd.f32 %v946_v0, %v760_v18  ;;  %v762_v30 = vmax.f32 %v428_v19, 0.0  ;;  %v764_v32 = vmax.f32 %v621_v20, 0.0 }
 0x12f   : > { %v837_v37 = vadd.f32 %v836_v21, %v761_v23  ;;  %v911_v38 = vadd.f32 %v910_v22, %v763_v24 }
 0x130   : > { %v874_v39 = vadd.f32 %v873_v25, %v762_v30  ;;  %v948_v40 = vadd.f32 %v947_v29, %v764_v32  ;;  %v431_v41 = vpop.f32.mrb[36].mxu0  ;;  %v624_v42 = vpop.f32.mrb[36].mxu1 }
 0x131   : > { %v432_v43 = vadd.f32 %v431_v41, %v4400_v33  ;;  %v625_v44 = vadd.f32 %v624_v42, %v4402_v34  ;;  %v433_v45 = vpop.f32.mrb[37].mxu0  ;;  %v626_v46 = vpop.f32.mrb[37].mxu1 }
 0x132   : > { %v434_v47 = vadd.f32 %v433_v45, %v4405_v35  ;;  %v627_v48 = vadd.f32 %v626_v46, %v4407_v36  ;;  %v435_v49 = vpop.f32.mrb[38].mxu0  ;;  %v628_v50 = vpop.f32.mrb[38].mxu1 }
 0x133   : > { %v765_v51 = vmax.f32 %v432_v43, 0.0  ;;  %v767_v52 = vmax.f32 %v625_v44, 0.0  ;;  %v436_v53 = vadd.f32 %v435_v49, %v4400_v33  ;;  %v629_v54 = vadd.f32 %v628_v50, %v4402_v34  ;;  %v437_v55 = vpop.f32.mrb[39].mxu0  ;;  %v630_v56 = vpop.f32.mrb[39].mxu1 }
 0x134   : > { %v766_v57 = vmax.f32 %v434_v47, 0.0  ;;  %v768_v58 = vmax.f32 %v627_v48, 0.0  ;;  %v438_v59 = vadd.f32 %v437_v55, %v4405_v35  ;;  %v631_v60 = vadd.f32 %v630_v56, %v4407_v36 }
 0x135   : > { %v838_v61 = vadd.f32 %v837_v37, %v765_v51  ;;  %v912_v62 = vadd.f32 %v911_v38, %v767_v52  ;;  %v769_v63 = vmax.f32 %v436_v53, 0.0  ;;  %v771_v0 = vmax.f32 %v629_v54, 0.0 }
 0x136   : > { %v875_v1 = vadd.f32 %v874_v39, %v766_v57  ;;  %v949_v2 = vadd.f32 %v948_v40, %v768_v58  ;;  %v770_v3 = vmax.f32 %v438_v59, 0.0  ;;  %v772_v4 = vmax.f32 %v631_v60, 0.0 }
 0x137   : > { %v839_v5 = vadd.f32 %v838_v61, %v769_v63  ;;  %v913_v6 = vadd.f32 %v912_v62, %v771_v0 }
 0x138   : > { %v876_v7 = vadd.f32 %v875_v1, %v770_v3  ;;  %v950_v8 = vadd.f32 %v949_v2, %v772_v4  ;;  %v441_v9 = vpop.f32.mrb[40].mxu0  ;;  %v634_v10 = vpop.f32.mrb[40].mxu1 }
 0x139   : > { %v442_v11 = vadd.f32 %v441_v9, %v4400_v33  ;;  %v635_v12 = vadd.f32 %v634_v10, %v4402_v34  ;;  %v443_v13 = vpop.f32.mrb[41].mxu0  ;;  %v636_v14 = vpop.f32.mrb[41].mxu1 }
 0x13a   : > { %v444_v15 = vadd.f32 %v443_v13, %v4405_v35  ;;  %v637_v16 = vadd.f32 %v636_v14, %v4407_v36  ;;  %v445_v17 = vpop.f32.mrb[42].mxu0  ;;  %v638_v18 = vpop.f32.mrb[42].mxu1 }
 0x13b   : > { %v773_v19 = vmax.f32 %v442_v11, 0.0  ;;  %v775_v20 = vmax.f32 %v635_v12, 0.0  ;;  %v446_v21 = vadd.f32 %v445_v17, %v4400_v33  ;;  %v639_v22 = vadd.f32 %v638_v18, %v4402_v34  ;;  %v447_v23 = vpop.f32.mrb[43].mxu0  ;;  %v640_v24 = vpop.f32.mrb[43].mxu1 }
 0x13c   : > { %v774_v25 = vmax.f32 %v444_v15, 0.0  ;;  %v776_v29 = vmax.f32 %v637_v16, 0.0  ;;  %v448_v30 = vadd.f32 %v447_v23, %v4405_v35  ;;  %v641_v32 = vadd.f32 %v640_v24, %v4407_v36 }
 0x13d   : > { %v840_v37 = vadd.f32 %v839_v5, %v773_v19  ;;  %v914_v38 = vadd.f32 %v913_v6, %v775_v20  ;;  %v777_v39 = vmax.f32 %v446_v21, 0.0  ;;  %v779_v40 = vmax.f32 %v639_v22, 0.0 }
 0x13e   : > { %v877_v41 = vadd.f32 %v876_v7, %v774_v25  ;;  %v951_v42 = vadd.f32 %v950_v8, %v776_v29  ;;  %v778_v43 = vmax.f32 %v448_v30, 0.0  ;;  %v780_v44 = vmax.f32 %v641_v32, 0.0 }
 0x13f   : > { %v841_v45 = vadd.f32 %v840_v37, %v777_v39  ;;  %v915_v46 = vadd.f32 %v914_v38, %v779_v40 }
 0x140   : > { %v878_v47 = vadd.f32 %v877_v41, %v778_v43  ;;  %v952_v48 = vadd.f32 %v951_v42, %v780_v44  ;;  %v451_v49 = vpop.f32.mrb[44].mxu0  ;;  %v644_v50 = vpop.f32.mrb[44].mxu1 }
 0x141   : > { %v452_v51 = vadd.f32 %v451_v49, %v4400_v33  ;;  %v645_v52 = vadd.f32 %v644_v50, %v4402_v34  ;;  %v453_v53 = vpop.f32.mrb[45].mxu0  ;;  %v646_v54 = vpop.f32.mrb[45].mxu1 }
 0x142   : > { %v454_v55 = vadd.f32 %v453_v53, %v4405_v35  ;;  %v647_v56 = vadd.f32 %v646_v54, %v4407_v36  ;;  %v455_v57 = vpop.f32.mrb[46].mxu0  ;;  %v648_v58 = vpop.f32.mrb[46].mxu1 }
 0x143   : > { %v781_v59 = vmax.f32 %v452_v51, 0.0  ;;  %v783_v60 = vmax.f32 %v645_v52, 0.0  ;;  %v456_v61 = vadd.f32 %v455_v57, %v4400_v33  ;;  %v649_v62 = vadd.f32 %v648_v58, %v4402_v34  ;;  %v457_v63 = vpop.f32.mrb[47].mxu0  ;;  %v650_v0 = vpop.f32.mrb[47].mxu1 }
 0x144   : > { %v782_v1 = vmax.f32 %v454_v55, 0.0  ;;  %v784_v2 = vmax.f32 %v647_v56, 0.0  ;;  %v458_v3 = vadd.f32 %v457_v63, %v4405_v35  ;;  %v651_v4 = vadd.f32 %v650_v0, %v4407_v36 }
 0x145   : > { %v842_v5 = vadd.f32 %v841_v45, %v781_v59  ;;  %v916_v6 = vadd.f32 %v915_v46, %v783_v60  ;;  %v785_v7 = vmax.f32 %v456_v61, 0.0  ;;  %v787_v8 = vmax.f32 %v649_v62, 0.0 }
 0x146   : > { %v879_v9 = vadd.f32 %v878_v47, %v782_v1  ;;  %v953_v10 = vadd.f32 %v952_v48, %v784_v2  ;;  %v786_v11 = vmax.f32 %v458_v3, 0.0  ;;  %v788_v12 = vmax.f32 %v651_v4, 0.0 }
 0x147   : > { %v843_v13 = vadd.f32 %v842_v5, %v785_v7  ;;  %v917_v14 = vadd.f32 %v916_v6, %v787_v8 }
 0x148   : > { %v880_v15 = vadd.f32 %v879_v9, %v786_v11  ;;  %v954_v16 = vadd.f32 %v953_v10, %v788_v12  ;;  %v461_v17 = vpop.f32.mrb[48].mxu0  ;;  %v654_v18 = vpop.f32.mrb[48].mxu1 }
 0x149   : > { %v462_v19 = vadd.f32 %v461_v17, %v4400_v33  ;;  %v655_v20 = vadd.f32 %v654_v18, %v4402_v34  ;;  %v463_v21 = vpop.f32.mrb[49].mxu0  ;;  %v656_v22 = vpop.f32.mrb[49].mxu1 }
 0x14a   : > { %v464_v23 = vadd.f32 %v463_v21, %v4405_v35  ;;  %v657_v24 = vadd.f32 %v656_v22, %v4407_v36  ;;  %v465_v25 = vpop.f32.mrb[50].mxu0  ;;  %v658_v29 = vpop.f32.mrb[50].mxu1 }
 0x14b   : > { %v789_v30 = vmax.f32 %v462_v19, 0.0  ;;  %v791_v32 = vmax.f32 %v655_v20, 0.0  ;;  %v466_v37 = vadd.f32 %v465_v25, %v4400_v33  ;;  %v659_v38 = vadd.f32 %v658_v29, %v4402_v34  ;;  %v467_v39 = vpop.f32.mrb[51].mxu0  ;;  %v660_v40 = vpop.f32.mrb[51].mxu1 }
 0x14c   : > { %v790_v41 = vmax.f32 %v464_v23, 0.0  ;;  %v792_v42 = vmax.f32 %v657_v24, 0.0  ;;  %v468_v43 = vadd.f32 %v467_v39, %v4405_v35  ;;  %v661_v44 = vadd.f32 %v660_v40, %v4407_v36 }
 0x14d   : > { %v844_v45 = vadd.f32 %v843_v13, %v789_v30  ;;  %v918_v46 = vadd.f32 %v917_v14, %v791_v32  ;;  %v793_v47 = vmax.f32 %v466_v37, 0.0  ;;  %v795_v48 = vmax.f32 %v659_v38, 0.0 }
 0x14e   : > { %v881_v49 = vadd.f32 %v880_v15, %v790_v41  ;;  %v955_v50 = vadd.f32 %v954_v16, %v792_v42  ;;  %v794_v51 = vmax.f32 %v468_v43, 0.0  ;;  %v796_v52 = vmax.f32 %v661_v44, 0.0 }
 0x14f   : > { %v845_v53 = vadd.f32 %v844_v45, %v793_v47  ;;  %v919_v54 = vadd.f32 %v918_v46, %v795_v48 }
 0x150   : > { %v882_v55 = vadd.f32 %v881_v49, %v794_v51  ;;  %v956_v56 = vadd.f32 %v955_v50, %v796_v52  ;;  %v471_v57 = vpop.f32.mrb[52].mxu0  ;;  %v664_v58 = vpop.f32.mrb[52].mxu1 }
 0x151   : > { %v472_v59 = vadd.f32 %v471_v57, %v4400_v33  ;;  %v665_v60 = vadd.f32 %v664_v58, %v4402_v34  ;;  %v473_v61 = vpop.f32.mrb[53].mxu0  ;;  %v666_v62 = vpop.f32.mrb[53].mxu1 }
 0x152   : > { %v474_v63 = vadd.f32 %v473_v61, %v4405_v35  ;;  %v667_v0 = vadd.f32 %v666_v62, %v4407_v36  ;;  %v475_v1 = vpop.f32.mrb[54].mxu0  ;;  %v668_v2 = vpop.f32.mrb[54].mxu1 }
 0x153   : > { %v797_v3 = vmax.f32 %v472_v59, 0.0  ;;  %v799_v4 = vmax.f32 %v665_v60, 0.0  ;;  %v476_v5 = vadd.f32 %v475_v1, %v4400_v33  ;;  %v669_v6 = vadd.f32 %v668_v2, %v4402_v34  ;;  %v477_v7 = vpop.f32.mrb[55].mxu0  ;;  %v670_v8 = vpop.f32.mrb[55].mxu1 }
 0x154   : > { %v798_v9 = vmax.f32 %v474_v63, 0.0  ;;  %v800_v10 = vmax.f32 %v667_v0, 0.0  ;;  %v478_v11 = vadd.f32 %v477_v7, %v4405_v35  ;;  %v671_v12 = vadd.f32 %v670_v8, %v4407_v36 }
 0x155   : > { %v846_v13 = vadd.f32 %v845_v53, %v797_v3  ;;  %v920_v14 = vadd.f32 %v919_v54, %v799_v4  ;;  %v801_v15 = vmax.f32 %v476_v5, 0.0  ;;  %v803_v16 = vmax.f32 %v669_v6, 0.0 }
 0x156   : > { %v883_v17 = vadd.f32 %v882_v55, %v798_v9  ;;  %v957_v18 = vadd.f32 %v956_v56, %v800_v10  ;;  %v802_v19 = vmax.f32 %v478_v11, 0.0  ;;  %v804_v20 = vmax.f32 %v671_v12, 0.0 }
 0x157   : > { %v847_v21 = vadd.f32 %v846_v13, %v801_v15  ;;  %v921_v22 = vadd.f32 %v920_v14, %v803_v16 }
 0x158   : > { %v884_v23 = vadd.f32 %v883_v17, %v802_v19  ;;  %v958_v24 = vadd.f32 %v957_v18, %v804_v20  ;;  %v481_v25 = vpop.f32.mrb[56].mxu0  ;;  %v674_v29 = vpop.f32.mrb[56].mxu1 }
 0x159   : > { %v482_v30 = vadd.f32 %v481_v25, %v4400_v33  ;;  %v675_v32 = vadd.f32 %v674_v29, %v4402_v34  ;;  %v483_v37 = vpop.f32.mrb[57].mxu0  ;;  %v676_v38 = vpop.f32.mrb[57].mxu1 }
 0x15a   : > { %v484_v39 = vadd.f32 %v483_v37, %v4405_v35  ;;  %v677_v40 = vadd.f32 %v676_v38, %v4407_v36  ;;  %v485_v41 = vpop.f32.mrb[58].mxu0  ;;  %v678_v42 = vpop.f32.mrb[58].mxu1 }
 0x15b   : > { %v805_v43 = vmax.f32 %v482_v30, 0.0  ;;  %v807_v44 = vmax.f32 %v675_v32, 0.0  ;;  %v486_v45 = vadd.f32 %v485_v41, %v4400_v33  ;;  %v679_v46 = vadd.f32 %v678_v42, %v4402_v34  ;;  %v487_v47 = vpop.f32.mrb[59].mxu0  ;;  %v680_v48 = vpop.f32.mrb[59].mxu1 }
 0x15c   : > { %v806_v49 = vmax.f32 %v484_v39, 0.0  ;;  %v808_v50 = vmax.f32 %v677_v40, 0.0  ;;  %v488_v51 = vadd.f32 %v487_v47, %v4405_v35  ;;  %v681_v52 = vadd.f32 %v680_v48, %v4407_v36 }
 0x15d   : > { %v848_v53 = vadd.f32 %v847_v21, %v805_v43  ;;  %v922_v54 = vadd.f32 %v921_v22, %v807_v44  ;;  %v809_v55 = vmax.f32 %v486_v45, 0.0  ;;  %v811_v56 = vmax.f32 %v679_v46, 0.0 }
 0x15e   : > { %v885_v57 = vadd.f32 %v884_v23, %v806_v49  ;;  %v959_v58 = vadd.f32 %v958_v24, %v808_v50  ;;  %v810_v59 = vmax.f32 %v488_v51, 0.0  ;;  %v812_v60 = vmax.f32 %v681_v52, 0.0 }
 0x15f   : > { %v849_v61 = vadd.f32 %v848_v53, %v809_v55  ;;  %v923_v62 = vadd.f32 %v922_v54, %v811_v56  ;;  %v4162_v48 = vmov 1966171168  }
 0x160   : > { %v886_v63 = vadd.f32 %v885_v57, %v810_v59  ;;  %v960_v0 = vadd.f32 %v959_v58, %v812_v60  ;;  %v491_v1 = vpop.f32.mrb[60].mxu0  ;;  %v684_v2 = vpop.f32.mrb[60].mxu1  ;;  %v981_v49 = vunpack.c.l.s4 %v4162_v48  ;;  %v3947_v48 = vld [vmem:[%s5557_s24 + $0xc0] ss:$8 sps:$4 sm:$0xff] (%p67_p0)  }
 0x161   : > { %v492_v3 = vadd.f32 %v491_v1, %v4400_v33  ;;  %v685_v4 = vadd.f32 %v684_v2, %v4402_v34  ;;  %v493_v5 = vpop.f32.mrb[61].mxu0  ;;  %v686_v6 = vpop.f32.mrb[61].mxu1 }
 0x162   : > { %v494_v7 = vadd.f32 %v493_v5, %v4405_v35  ;;  %v687_v8 = vadd.f32 %v686_v6, %v4407_v36  ;;  %v495_v9 = vpop.f32.mrb[62].mxu0  ;;  %v688_v10 = vpop.f32.mrb[62].mxu1  ;;  %v982_v58 = vunpack.c.0.s8 %v981_v49 }
 0x163   : > { %v813_v11 = vmax.f32 %v492_v3, 0.0  ;;  %v815_v12 = vmax.f32 %v685_v4, 0.0  ;;  %v496_v13 = vadd.f32 %v495_v9, %v4400_v33  ;;  %v689_v14 = vadd.f32 %v688_v10, %v4402_v34  ;;  %v497_v15 = vpop.f32.mrb[63].mxu0  ;;  %v690_v16 = vpop.f32.mrb[63].mxu1 }
 0x164   : > { %v814_v17 = vmax.f32 %v494_v7, 0.0  ;;  %v816_v18 = vmax.f32 %v687_v8, 0.0  ;;  %v498_v19 = vadd.f32 %v497_v15, %v4405_v35  ;;  %v691_v20 = vadd.f32 %v690_v16, %v4407_v36  ;;  %v3915_v15 = vld [vmem:[%s5557_s24 + $0x24] ss:$8 sps:$4 sm:$0xff] (%p67_p0)   ;;  %v3917_v16 = vld [vmem:[%s5557_s24 + $0x20] ss:$8 sps:$4 sm:$0xff] (%p67_p0)  }
 0x165   : > { %v850_v21 = vadd.f32 %v849_v61, %v813_v11  ;;  %v924_v22 = vadd.f32 %v923_v62, %v815_v12  ;;  %v817_v23 = vmax.f32 %v496_v13, 0.0  ;;  %v819_v24 = vmax.f32 %v689_v14, 0.0  ;;  %v3909_v11 = vld [vmem:[%s5557_s24 + $0x4] ss:$8 sps:$4 sm:$0xff] (%p67_p0)   ;;  %v3911_v12 = vld [vmem:[%s5557_s24] ss:$8 sps:$4 sm:$0xff] (%p67_p0)  }
 0x166   : > { %v887_v25 = vadd.f32 %v886_v63, %v814_v17  ;;  %v961_v29 = vadd.f32 %v960_v0, %v816_v18  ;;  %v818_v30 = vmax.f32 %v498_v19, 0.0  ;;  %v820_v32 = vmax.f32 %v691_v20, 0.0  ;;  %1421 = vmatprep.subr.bf16.mxu0 (%p67_p0), %v3909_v11  ;;  %v3912_v13 = vld [vmem:[%s5557_s24 + $0x14] ss:$8 sps:$4 sm:$0xff] (%p67_p0)   ;;  %v3914_v14 = vld [vmem:[%s5557_s24 + $0x10] ss:$8 sps:$4 sm:$0xff] (%p67_p0)  }
 0x167   : > { %v851_v37 = vadd.f32 %v850_v21, %v817_v23  ;;  %v925_v33 = vadd.f32 %v924_v22, %v819_v24  ;;  %v985_v3 = vsub.s32 %v982_v58, %v4386_v27  ;;  %1422 = vmatpush1.bf16.msra.mxu0 (%p67_p0), %v3911_v12  ;;  %v3918_v17 = vld [vmem:[%s5557_s24 + $0x34] ss:$8 sps:$4 sm:$0xff] (%p67_p0)   ;;  %v3920_v18 = vld [vmem:[%s5557_s24 + $0x30] ss:$8 sps:$4 sm:$0xff] (%p67_p0)   ;;  %v3921_v19 = vld [vmem:[%s5557_s24 + $0x44] ss:$8 sps:$4 sm:$0xff] (%p67_p0)  }
 0x168   : > { %v888_v38 = vadd.f32 %v887_v25, %v818_v30  ;;  %v962_v34 = vadd.f32 %v961_v29, %v820_v32  ;;  %1423 = vmatprep.subr.bf16.mxu0 (%p67_p0), %v3912_v13  ;;  %v3923_v20 = vld [vmem:[%s5557_s24 + $0x40] ss:$8 sps:$4 sm:$0xff] (%p67_p0)   ;;  %v3924_v21 = vld [vmem:[%s5557_s24 + $0x54] ss:$8 sps:$4 sm:$0xff] (%p67_p0)   ;;  %v3926_v22 = vld [vmem:[%s5557_s24 + $0x50] ss:$8 sps:$4 sm:$0xff] (%p67_p0)  }
 0x169   : > { %v852_v39 = vrot.slane %v851_v37, 4  ;;  %v926_v40 = vrot.slane %v925_v33, 4  ;;  %v3927_v23 = vld [vmem:[%s5557_s24 + $0x64] ss:$8 sps:$4 sm:$0xff] (%p67_p0)   ;;  %v3929_v29 = vld [vmem:[%s5557_s24 + $0x60] ss:$8 sps:$4 sm:$0xff] (%p67_p0)  }
 0x16a   : > { %v889_v41 = vrot.slane %v888_v38, 4  ;;  %v963_v42 = vrot.slane %v962_v34, 4  ;;  %v3930_v30 = vld [vmem:[%s5557_s24 + $0x74] ss:$8 sps:$4 sm:$0xff] (%p67_p0)   ;;  %v3932_v32 = vld [vmem:[%s5557_s24 + $0x70] ss:$8 sps:$4 sm:$0xff] (%p67_p0)  }
 0x16b   : > { %v853_v43 = vadd.f32 %v852_v39, %v851_v37  ;;  %v927_v35 = vadd.f32 %v926_v40, %v925_v33  ;;  %1424 = vmatpush1.bf16.msra.mxu0 (%p67_p0), %v3914_v14  ;;  %v3933_v37 = vld [vmem:[%s5557_s24 + $0x84] ss:$8 sps:$4 sm:$0xff] (%p67_p0)   ;;  %v3935_v33 = vld [vmem:[%s5557_s24 + $0x80] ss:$8 sps:$4 sm:$0xff] (%p67_p0)  }
 0x16c   : > { %v890_v44 = vadd.f32 %v889_v41, %v888_v38  ;;  %v964_v36 = vadd.f32 %v963_v42, %v962_v34  ;;  %1425 = vmatprep.subr.bf16.mxu0 (%p67_p0), %v3915_v15  ;;  %v3936_v38 = vld [vmem:[%s5557_s24 + $0x94] ss:$8 sps:$4 sm:$0xff] (%p67_p0)   ;;  %v3938_v34 = vld [vmem:[%s5557_s24 + $0x90] ss:$8 sps:$4 sm:$0xff] (%p67_p0)   ;;  %v3939_v39 = vld [vmem:[%s5557_s24 + $0xa4] ss:$8 sps:$4 sm:$0xff] (%p67_p0)  }
 0x16d   : > { %v854_v45 = vrot.slane %v853_v43, 2  ;;  %v928_v46 = vrot.slane %v927_v35, 2  ;;  %v3941_v40 = vld [vmem:[%s5557_s24 + $0xa0] ss:$8 sps:$4 sm:$0xff] (%p67_p0)   ;;  %v3942_v41 = vld [vmem:[%s5557_s24 + $0xb4] ss:$8 sps:$4 sm:$0xff] (%p67_p0)  }
 0x16e   : > { %v891_v47 = vrot.slane %v890_v44, 2  ;;  %v965_v50 = vrot.slane %v964_v36, 2  ;;  %v3944_v42 = vld [vmem:[%s5557_s24 + $0xb0] ss:$8 sps:$4 sm:$0xff] (%p67_p0)   ;;  %v3951_v58 = vld [vmem:[%s5557_s24 + $0xe4] ss:$8 sps:$4 sm:$0xff] (%p67_p0)  }
 0x16f   : > { %v855_v51 = vadd.f32 %v854_v45, %v853_v43  ;;  %v929_v52 = vadd.f32 %v928_v46, %v927_v35  ;;  %1426 = vmatpush1.bf16.msra.mxu0 (%p67_p0), %v3917_v16  ;;  %v3945_v43 = vld [vmem:[%s5557_s24 + $0xc4] ss:$8 sps:$4 sm:$0xff] (%p67_p0)   ;;  %v3957_v12 = vld [vmem:[%s5557_s24 + $0x100] ss:$8 sps:$4 sm:$0xff] (%p67_p0)   ;;  %v3962_v16 = vld [vmem:[%s5557_s24 + $0x114] ss:$8 sps:$4 sm:$0xff] (%p67_p0)  }
 0x170   : > { %v892_v53 = vadd.f32 %v891_v47, %v890_v44  ;;  %v966_v54 = vadd.f32 %v965_v50, %v964_v36  ;;  %1427 = vmatprep.subr.bf16.mxu0 (%p67_p0), %v3918_v17  ;;  %v1506_v35 = vld [vmem:[%s5533_s5 + $0x8] sm:$0xff] (%p67_p0)  ;;  %v3960_v17 = vld [vmem:[%s5557_s24 + $0x110] ss:$8 sps:$4 sm:$0xff] (%p67_p0)  }
 0x171   : > { %v856_v55 = vrot.slane %v855_v51, 1  ;;  %v930_v56 = vrot.slane %v929_v52, 1  ;;  %v1510_v44 = vld [vmem:[%s5533_s5 + $0x28] sm:$0xff] (%p67_p0) }
 0x172   : > { %v893_v57 = vrot.slane %v892_v53, 1  ;;  %v967_v59 = vrot.slane %v966_v54, 1  ;;  %v3575_v36 = vcombine.high (%p67_p0), %v1506_v35, %v1510_v44  ;;  %v3574_v45 = vcombine.low (%p67_p0), %v1506_v35, %v1510_v44  ;;  %v1514_v46 = vld [vmem:[%s5533_s5 + $0x48] sm:$0xff] (%p67_p0) }
 0x173   : > { %v857_v60 = vadd.f32 %v856_v55, %v855_v51  ;;  %v931_v61 = vadd.f32 %v930_v56, %v929_v52  ;;  %1428 = vmatpush1.bf16.msra.mxu0 (%p67_p0), %v3920_v18  ;;  %v1518_v47 = vld [vmem:[%s5533_s5 + $0x68] sm:$0xff] (%p67_p0)  ;;  %v3948_v52 = vld [vmem:[%s5557_s24 + $0xd4] ss:$8 sps:$4 sm:$0xff] (%p67_p0)   ;;  %v3950_v55 = vld [vmem:[%s5557_s24 + $0xd0] ss:$8 sps:$4 sm:$0xff] (%p67_p0)  }
 0x174   : > { %v894_v62 = vadd.f32 %v893_v57, %v892_v53  ;;  %v968_v63 = vadd.f32 %v967_v59, %v966_v54  ;;  %1429 = vmatprep.subr.bf16.mxu0 (%p67_p0), %v3921_v19  ;;  %v3583_v49 = vcombine.high (%p67_p0), %v1514_v46, %v1518_v47  ;;  %v1522_v50 = vld [vmem:[%s5533_s5 + $0x88] sm:$0xff] (%p67_p0)  ;;  %2314 = vmatprep.subr.bf16.mxu1 (%p67_p0), %v3575_v36  ;;  %v3974_v36 = vld [vmem:[%s5557_s24 + $0x154] ss:$8 sps:$4 sm:$0xff] (%p67_p0)  }
 0x175   : > { %v970_v0 = vmul.f32 0.00390625, %v857_v60  ;;  %v972_v1 = vmul.f32 0.00390625, %v931_v61  ;;  %v1526_v51 = vld [vmem:[%s5533_s5 + $0xa8] sm:$0xff] (%p67_p0)  ;;  %2315 = vmatpush1.bf16.msra.mxu1 (%p67_p0), %v3574_v45  ;;  %v3582_v53 = vcombine.low (%p67_p0), %v1514_v46, %v1518_v47  ;;  %v3972_v46 = vld [vmem:[%s5557_s24 + $0x150] ss:$8 sps:$4 sm:$0xff] (%p67_p0)  }
 0x176   : > { %v971_v2 = vmul.f32 0.00390625, %v894_v62  ;;  %v973_v4 = vmul.f32 0.00390625, %v968_v63  ;;  %2316 = vmatprep.subr.bf16.mxu1 (%p67_p0), %v3583_v49  ;;  %v3591_v54 = vcombine.high (%p67_p0), %v1522_v50, %v1526_v51  ;;  %v1530_v56 = vld [vmem:[%s5533_s5 + $0xc8] sm:$0xff] (%p67_p0)  ;;  %v3590_v59 = vcombine.low (%p67_p0), %v1522_v50, %v1526_v51 }
 0x177   :  { %1430 = vmatpush1.bf16.msra.mxu0 (%p67_p0), %v3923_v20  ;;  %v1534_v57 = vld [vmem:[%s5533_s5 + $0xe8] sm:$0xff] (%p67_p0) }
 0x178   : > { %v978_v5 = vcombine.low %v970_v0, %v971_v2  ;;  %v979_v6 = vcombine.low %v972_v1, %v973_v4  ;;  %1431 = vmatprep.subr.bf16.mxu0 (%p67_p0), %v3924_v21  ;;  %v3599_v60 = vcombine.high (%p67_p0), %v1530_v56, %v1534_v57  ;;  %v3953_v61 = vld [vmem:[%s5557_s24 + $0xe0] ss:$8 sps:$4 sm:$0xff] (%p67_p0)   ;;  %v3954_v0 = vld [vmem:[%s5557_s24 + $0xf4] ss:$8 sps:$4 sm:$0xff] (%p67_p0)   ;;  %v3598_v1 = vcombine.low (%p67_p0), %v1530_v56, %v1534_v57  ;;  %v3956_v2 = vld [vmem:[%s5557_s24 + $0xf0] ss:$8 sps:$4 sm:$0xff] (%p67_p0)  }
 0x179   :  { %2317 = vmatpush1.bf16.msra.mxu1 (%p67_p0), %v3582_v53  ;;  %v1538_v62 = vld [vmem:[%s5533_s5 + $0x108] sm:$0xff] (%p67_p0)  ;;  %v3980_v57 = vld [vmem:[%s5557_s24 + $0x174] ss:$8 sps:$4 sm:$0xff] (%p67_p0)  }
 0x17a   : > { %v986_v7 = vrot.slane %v978_v5, %v985_v3  ;;  %v993_v8 = vrot.slane %v979_v6, %v985_v3  ;;  %69 = sbr.rel (!%p67_p0) target bundleno = 6 (0x6), region = 109  ;;  %2318 = vmatprep.subr.bf16.mxu1 (%p67_p0), %v3591_v54  ;;  %v1542_v63 = vld [vmem:[%s5533_s5 + $0x128] sm:$0xff] (%p67_p0) }
 0x17b   :  { %1432 = vmatpush1.bf16.msra.mxu0 (%p67_p0), %v3926_v22  ;;  %v1546_v5 = vld [vmem:[%s5533_s5 + $0x148] sm:$0xff] (%p67_p0) }
 0x17c   : > { %v994_v9 = vcombine.low %v986_v7, %v993_v8  ;;  %1433 = vmatprep.subr.bf16.mxu0 (%p67_p0), %v3927_v23  ;;  %v1550_v6 = vld [vmem:[%s5533_s5 + $0x168] sm:$0xff] (%p67_p0) }
 0x17d   :  { %2319 = vmatpush1.bf16.msra.mxu1 (%p67_p0), %v3590_v59  ;;  %v3959_v7 = vld [vmem:[%s5557_s24 + $0x104] ss:$8 sps:$4 sm:$0xff] (%p67_p0)   ;;  %v3615_v11 = vcombine.high (%p67_p0), %v1546_v5, %v1550_v6  ;;  %v3614_v18 = vcombine.low (%p67_p0), %v1546_v5, %v1550_v6  ;;  %v3963_v23 = vld [vmem:[%s5557_s24 + $0x120] ss:$8 sps:$4 sm:$0xff] (%p67_p0)   ;;  %v3986_v5 = vld [vmem:[%s5557_s24 + $0x194] ss:$8 sps:$4 sm:$0xff] (%p67_p0)  }
 0x17e   : > { %v1001_v10 = vrot.slane %v994_v9, %v985_v3  ;;  %2320 = vmatprep.subr.bf16.mxu1 (%p67_p0), %v3599_v60  ;;  %v3607_v3 = vcombine.high (%p67_p0), %v1538_v62, %v1542_v63  ;;  %v3606_v9 = vcombine.low (%p67_p0), %v1538_v62, %v1542_v63  ;;  %v1554_v14 = vld [vmem:[%s5533_s5 + $0x188] sm:$0xff] (%p67_p0)  ;;  %v3978_v60 = vld [vmem:[%s5557_s24 + $0x170] ss:$8 sps:$4 sm:$0xff] (%p67_p0)  }
 0x17f   :  { %1434 = vmatpush1.bf16.msra.mxu0 (%p67_p0), %v3929_v29  ;;  %v1558_v15 = vld [vmem:[%s5533_s5 + $0x1a8] sm:$0xff] (%p67_p0) }
 0x180   : > { %1015 = vst.msk [vmem:[%s1014_s2] ss:$8 sm:$0xf] %vm1005_vm1, %v1001_v10  ;;  %1435 = vmatprep.subr.bf16.mxu0 (%p67_p0), %v3930_v30  ;;  %v1562_v19 = vld [vmem:[%s5533_s5 + $0x1c8] sm:$0xff] (%p67_p0)  ;;  %v3623_v22 = vcombine.high (%p67_p0), %v1554_v14, %v1558_v15 }
 0x181   :  { %2321 = vmatpush1.bf16.msra.mxu1 %v3598_v1  ;;  %v1566_v20 = vld [vmem:[%s5533_s5 + $0x1e8] sm:$0xff] }
 0x182   :  { %2322 = vmatprep.subr.bf16.mxu1 %v3607_v3  ;;  %v3965_v21 = vld [vmem:[%s5557_s24 + $0x124] ss:$8 sps:$4 sm:$0xff]  }
 0x183   :  { %1436 = vmatpush1.bf16.msra.mxu0 %v3932_v32  ;;  %v1570_v29 = vld [vmem:[%s5533_s5 + $0x208] sm:$0xff]  ;;  %v3968_v32 = vld [vmem:[%s5557_s24 + $0x134] ss:$8 sps:$4 sm:$0xff]  }
 0x184   :  { %1437 = vmatprep.subr.bf16.mxu0 %v3933_v37  ;;  %v1574_v30 = vld [vmem:[%s5533_s5 + $0x228] sm:$0xff]  ;;  %v3631_v37 = vcombine.high %v1562_v19, %v1566_v20 }
 0x185   :  { %2323 = vmatpush1.bf16.msra.mxu1 %v3606_v9  ;;  %v1586_v35 = vld [vmem:[%s5533_s5 + $0x288] sm:$0xff] }
 0x186   :  { %2324 = vmatprep.subr.bf16.mxu1 %v3615_v11  ;;  %v1590_v44 = vld [vmem:[%s5533_s5 + $0x2a8] sm:$0xff] }
 0x187   :  { %v1018_v24 = vld [vmem:[#allocation2 + $0x8] sm:$0xff]  ;;  %1438 = vmatpush1.bf16.msra.mxu0 %v3935_v33  ;;  %v1017_v4 = vld [vmem:[#allocation2] sm:$0xff]  ;;  %v1020_v8 = vld [vmem:[#allocation2 + $0x18] sm:$0xff]  ;;  %v3655_v51 = vcombine.high %v1586_v35, %v1590_v44  ;;  %v3654_v53 = vcombine.low %v1586_v35, %v1590_v44 }
 0x188   :  { %v4583_v25 = vpack.c.bf16 %v1018_v24, %v1018_v24  ;;  %1439 = vmatprep.subr.bf16.mxu0 %v3936_v38  ;;  %v4682_v10 = vpack.c.bf16 %v1017_v4, %v1017_v4  ;;  %v4687_v13 = vpack.c.bf16 %v1020_v8, %v1020_v8  ;;  %v3622_v24 = vcombine.low %v1554_v14, %v1558_v15  ;;  %v3966_v33 = vld [vmem:[%s5557_s24 + $0x130] ss:$8 sps:$4 sm:$0xff]   ;;  %v1598_v49 = vld [vmem:[%s5533_s5 + $0x2e8] sm:$0xff]  ;;  %v3992_v14 = vld [vmem:[%s5557_s24 + $0x1b4] ss:$8 sps:$4 sm:$0xff]  }
 0x189   :  { %2325 = vmatpush1.bf16.msra.mxu1 %v3614_v18  ;;  %v3630_v38 = vcombine.low %v1562_v19, %v1566_v20  ;;  %v3977_v50 = vld [vmem:[%s5557_s24 + $0x164] ss:$8 sps:$4 sm:$0xff]   ;;  %v3984_v8 = vld [vmem:[%s5557_s24 + $0x190] ss:$8 sps:$4 sm:$0xff]   ;;  %v3998_v18 = vld [vmem:[%s5557_s24 + $0x1d4] ss:$8 sps:$4 sm:$0xff]  }
 0x18a   :  { %1453 = vmatprep.mubr.bf16.mxu0 %v4583_v25  ;;  %2326 = vmatprep.subr.bf16.mxu1 %v3623_v22  ;;  %v1602_v54 = vld [vmem:[%s5533_s5 + $0x308] sm:$0xff]  ;;  %v3990_v15 = vld [vmem:[%s5557_s24 + $0x1b0] ss:$8 sps:$4 sm:$0xff]   ;;  %v4004_v22 = vld [vmem:[%s5557_s24 + $0x1f4] ss:$8 sps:$4 sm:$0xff]  }
 0x18b   :  { %1440 = vmatpush1.bf16.msra.mxu0 %v3938_v34  ;;  %v1578_v34 = vld [vmem:[%s5533_s5 + $0x248] sm:$0xff]  ;;  %v3996_v19 = vld [vmem:[%s5557_s24 + $0x1d0] ss:$8 sps:$4 sm:$0xff]   ;;  %v1529_v35 = vld [vmem:[%s5533_s5 + $0xc0] sm:$0xff] }
 0x18c   :  { %1441 = vmatprep.subr.bf16.mxu0 %v3939_v39  ;;  %v1582_v39 = vld [vmem:[%s5533_s5 + $0x268] sm:$0xff]  ;;  %v1533_v44 = vld [vmem:[%s5533_s5 + $0xe0] sm:$0xff] }
 0x18d   :  { %2327 = vmatpush1.bf16.msra.mxu1 %v3622_v24  ;;  %v3647_v45 = vcombine.high %v1578_v34, %v1582_v39  ;;  %v3646_v47 = vcombine.low %v1578_v34, %v1582_v39  ;;  %v1614_v62 = vld [vmem:[%s5533_s5 + $0x368] sm:$0xff]  ;;  %v1509_v24 = vld [vmem:[%s5533_s5 + $0x20] sm:$0xff] }
 0x18e   :  { %2328 = vmatprep.subr.bf16.mxu1 %v3631_v37  ;;  %v3983_v63 = vld [vmem:[%s5557_s24 + $0x184] ss:$8 sps:$4 sm:$0xff]  }
 0x18f   :  { %1442 = vmatpush1.bf16.msra.mxu0 %v3941_v40  ;;  %v3971_v40 = vld [vmem:[%s5557_s24 + $0x144] ss:$8 sps:$4 sm:$0xff]  }
 0x190   :  { %1443 = vmatprep.subr.bf16.mxu0 %v3942_v41  ;;  %v3639_v41 = vcombine.high %v1570_v29, %v1574_v30  ;;  %v1618_v3 = vld [vmem:[%s5533_s5 + $0x388] sm:$0xff]  ;;  %v1513_v37 = vld [vmem:[%s5533_s5 + $0x40] sm:$0xff] }
 0x191   :  { %2329 = vmatpush1.bf16.msra.mxu1 %v3630_v38  ;;  %v1622_v4 = vld [vmem:[%s5533_s5 + $0x3a8] sm:$0xff] }
 0x192   :  { %2330 = vmatprep.subr.bf16.mxu1 %v3639_v41  ;;  %v3989_v9 = vld [vmem:[%s5557_s24 + $0x1a4] ss:$8 sps:$4 sm:$0xff]   ;;  %v3686_v11 = vcombine.low %v1618_v3, %v1622_v4 }
 0x193   :  { %1444 = vmatpush1.bf16.msra.mxu0 %v3944_v42  ;;  %v3969_v42 = vld [vmem:[%s5557_s24 + $0x140] ss:$8 sps:$4 sm:$0xff]   ;;  %v4001_v20 = vld [vmem:[%s5557_s24 + $0x1e4] ss:$8 sps:$4 sm:$0xff]  }
 0x194   :  { %1445 = vmatprep.subr.bf16.mxu0 %v3945_v43  ;;  %v3638_v43 = vcombine.low %v1570_v29, %v1574_v30  ;;  %v4002_v29 = vld [vmem:[%s5557_s24 + $0x1f0] ss:$8 sps:$4 sm:$0xff]   ;;  %v1525_v41 = vld [vmem:[%s5533_s5 + $0xa0] sm:$0xff] }
 0x195   :  { %v1019_v30 = vld [vmem:[#allocation2 + $0x10] sm:$0xff] }
 0x196   :  { %2331 = vmatpush1.bf16.msra.mxu1 %v3638_v43  ;;  %v4847_v38 = vpack.c.bf16 %v1019_v30, %v1019_v30 }
 0x197   :  { %1446 = vmatpush1.bf16.msra.mxu0 %v3947_v48  ;;  %v1594_v48 = vld [vmem:[%s5533_s5 + $0x2c8] sm:$0xff]  ;;  %2332 = vmatprep.subr.bf16.mxu1 %v3647_v45  ;;  %v3597_v45 = vcombine.high %v1529_v35, %v1533_v44 }
 0x198   :  { %1447 = vmatprep.subr.bf16.mxu0 %v3948_v52  ;;  %v3975_v52 = vld [vmem:[%s5557_s24 + $0x160] ss:$8 sps:$4 sm:$0xff]   ;;  %v3663_v56 = vcombine.high %v1594_v48, %v1598_v49 }
 0x19a   :  { %2333 = vmatpush1.bf16.msra.mxu1 %v3646_v47  ;;  %v1541_v47 = vld [vmem:[%s5533_s5 + $0x120] sm:$0xff] }
 0x19b   :  { %1448 = vmatpush1.bf16.msra.mxu0 %v3950_v55  ;;  %v1606_v55 = vld [vmem:[%s5533_s5 + $0x328] sm:$0xff]  ;;  %2334 = vmatprep.subr.bf16.mxu1 %v3655_v51  ;;  %v1549_v51 = vld [vmem:[%s5533_s5 + $0x160] sm:$0xff] }
 0x19c   :  { %1449 = vmatprep.subr.bf16.mxu0 %v3951_v58  ;;  %v3662_v58 = vcombine.low %v1594_v48, %v1598_v49  ;;  %v3671_v59 = vcombine.high %v1602_v54, %v1606_v55  ;;  %v3596_v48 = vcombine.low %v1529_v35, %v1533_v44  ;;  %v1507_v44 = vld [vmem:[%s5533_s5 + $0x10] sm:$0xff] }
 0x19e   :  { %2335 = vmatpush1.bf16.msra.mxu1 %v3654_v53 }
 0x19f   :  { %1450 = vmatpush1.bf16.msra.mxu0 %v3953_v61  ;;  %2336 = vmatprep.subr.bf16.mxu1 %v3663_v56  ;;  %v1610_v61 = vld [vmem:[%s5533_s5 + $0x348] sm:$0xff] }
 0x1a0   :  { %1451 = vmatprep.subr.bf16.mxu0 %v3954_v0  ;;  %v3670_v0 = vcombine.low %v1602_v54, %v1606_v55  ;;  %v3679_v1 = vcombine.high %v1610_v61, %v1614_v62  ;;  %v3678_v6 = vcombine.low %v1610_v61, %v1614_v62  ;;  %v1553_v54 = vld [vmem:[%s5533_s5 + $0x180] sm:$0xff] }
 0x1a1   :  { %v1557_v55 = vld [vmem:[%s5533_s5 + $0x1a0] sm:$0xff] }
 0x1a2   :  { %2337 = vmatpush1.bf16.msra.mxu1 %v3662_v58  ;;  %v1561_v58 = vld [vmem:[%s5533_s5 + $0x1c0] sm:$0xff] }
 0x1a3   :  { %1452 = vmatpush1.bf16.msra.mxu0 %v3956_v2  ;;  %2338 = vmatprep.subr.bf16.mxu1 %v3671_v59  ;;  %v3981_v2 = vld [vmem:[%s5557_s24 + $0x180] ss:$8 sps:$4 sm:$0xff]  }
 0x1a4   :  { %1462 = vmatprep.subr.bf16.mxu0 %v3959_v7  ;;  %v3687_v7 = vcombine.high %v1618_v3, %v1622_v4  ;;  %v1565_v59 = vld [vmem:[%s5533_s5 + $0x1e0] sm:$0xff] }
 0x1a5   :  { %v3629_v61 = vcombine.high %v1561_v58, %v1565_v59  ;;  %v1569_v62 = vld [vmem:[%s5533_s5 + $0x200] sm:$0xff] }
 0x1a6   :  { %1454 = vmatmul.mubr.bf16.vlgmr.msra.gmra.mrb[0].mxu0 %v4682_v10  ;;  %2339 = vmatpush1.bf16.msra.mxu1 %v3670_v0  ;;  %v3628_v0 = vcombine.low %v1561_v58, %v1565_v59  ;;  %v1581_v3 = vld [vmem:[%s5533_s5 + $0x260] sm:$0xff] }
 0x1a7   :  { %1463 = vmatpush1.bf16.msra.mxu0 %v3957_v12  ;;  %1494 = vmatprep.mubr.bf16.mxu0 %v4687_v13  ;;  %v3987_v12 = vld [vmem:[%s5557_s24 + $0x1a0] ss:$8 sps:$4 sm:$0xff]  }
 0x1a8   :  { %1464 = vmatprep.subr.bf16.mxu0 %v3962_v16  ;;  %2340 = vmatprep.subr.bf16.mxu1 %v3679_v1  ;;  %v3995_v16 = vld [vmem:[%s5557_s24 + $0x1c4] ss:$8 sps:$4 sm:$0xff]  }
 0x1aa   :  { %2341 = vmatpush1.bf16.msra.mxu1 %v3678_v6  ;;  %v1585_v6 = vld [vmem:[%s5533_s5 + $0x280] sm:$0xff] }
 0x1ab   :  { %1465 = vmatpush1.bf16.msra.mxu0 %v3960_v17  ;;  %2342 = vmatprep.subr.bf16.mxu1 %v3687_v7  ;;  %v3993_v17 = vld [vmem:[%s5557_s24 + $0x1c0] ss:$8 sps:$4 sm:$0xff]  }
 0x1ac   :  { %1466 = vmatprep.subr.bf16.mxu0 %v3965_v21  ;;  %v3999_v21 = vld [vmem:[%s5557_s24 + $0x1e0] ss:$8 sps:$4 sm:$0xff]  }
 0x1ad   :  { %v1589_v7 = vld [vmem:[%s5533_s5 + $0x2a0] sm:$0xff] }
 0x1ae   :  { %2343 = vmatpush1.bf16.msra.mxu1 %v3686_v11  ;;  %v1593_v11 = vld [vmem:[%s5533_s5 + $0x2c0] sm:$0xff] }
 0x1af   :  { %1467 = vmatpush1.bf16.msra.mxu0 %v3963_v23  ;;  %v1505_v23 = vld [vmem:[%s5533_s5] sm:$0xff] }
 0x1b0   :  { %1468 = vmatprep.subr.bf16.mxu0 %v3968_v32  ;;  %v3573_v32 = vcombine.high %v1505_v23, %v1509_v24  ;;  %v3572_v34 = vcombine.low %v1505_v23, %v1509_v24  ;;  %v1617_v24 = vld [vmem:[%s5533_s5 + $0x380] sm:$0xff] }
 0x1b3   :  { %1469 = vmatpush1.bf16.msra.mxu0 %v3966_v33  ;;  %v1517_v33 = vld [vmem:[%s5533_s5 + $0x60] sm:$0xff] }
 0x1b4   :  { %1470 = vmatprep.subr.bf16.mxu0 %v3971_v40  ;;  %v3581_v39 = vcombine.high %v1513_v37, %v1517_v33  ;;  %v1521_v40 = vld [vmem:[%s5533_s5 + $0x80] sm:$0xff] }
 0x1b5   :  { %v3589_v43 = vcombine.high %v1521_v40, %v1525_v41 }
 0x1b7   :  { %1471 = vmatpush1.bf16.msra.mxu0 %v3969_v42  ;;  %v3580_v42 = vcombine.low %v1513_v37, %v1517_v33  ;;  %v1625_v33 = vld [vmem:[%s5533_s5 + $0x3c0] sm:$0xff] }
 0x1b8   :  { %1472 = vmatprep.subr.bf16.mxu0 %v3974_v36  ;;  %v3588_v36 = vcombine.low %v1521_v40, %v1525_v41  ;;  %v1630_v41 = vld [vmem:[%s5533_s5 + $0x3e8] sm:$0xff] }
 0x1bb   :  { %1473 = vmatpush1.bf16.msra.mxu0 %v3972_v46  ;;  %v1537_v46 = vld [vmem:[%s5533_s5 + $0x100] sm:$0xff] }
 0x1bc   :  { %1474 = vmatprep.subr.bf16.mxu0 %v3977_v50  ;;  %v3605_v49 = vcombine.high %v1537_v46, %v1541_v47  ;;  %v1545_v50 = vld [vmem:[%s5533_s5 + $0x140] sm:$0xff] }
 0x1bd   :  { %v3613_v53 = vcombine.high %v1545_v50, %v1549_v51  ;;  %v3612_v56 = vcombine.low %v1545_v50, %v1549_v51  ;;  %v4163_v51 = vmov 0  }
 0x1be   :  { %3907 = vset.pattern.permute.xlu0 %v4163_v51  ;;  %3908 = vset.pattern.permute.xlu1 %v4163_v51 }
 0x1bf   :  { %1475 = vmatpush1.bf16.msra.mxu0 %v3975_v52  ;;  %v3604_v52 = vcombine.low %v1537_v46, %v1541_v47  ;;  %v1512_v47 = vld [vmem:[%s5533_s5 + $0x38] sm:$0xff] }
 0x1c0   :  { %1476 = vmatprep.subr.bf16.mxu0 %v3980_v57  ;;  %v3621_v57 = vcombine.high %v1553_v54, %v1557_v55 }
 0x1c3   :  { %1477 = vmatpush1.bf16.msra.mxu0 %v3978_v60  ;;  %v3620_v60 = vcombine.low %v1553_v54, %v1557_v55 }
 0x1c4   :  { %1478 = vmatprep.subr.bf16.mxu0 %v3983_v63  ;;  %v1573_v63 = vld [vmem:[%s5533_s5 + $0x220] sm:$0xff] }
 0x1c5   :  { %v3637_v1 = vcombine.high %v1569_v62, %v1573_v63  ;;  %v3636_v4 = vcombine.low %v1569_v62, %v1573_v63  ;;  %v1519_v62 = vld [vmem:[%s5533_s5 + $0x70] sm:$0xff]  ;;  %v1516_v63 = vld [vmem:[%s5533_s5 + $0x58] sm:$0xff] }
 0x1c7   :  { %1479 = vmatpush1.bf16.msra.mxu0 %v3981_v2  ;;  %v1577_v2 = vld [vmem:[%s5533_s5 + $0x240] sm:$0xff] }
 0x1c8   :  { %1480 = vmatprep.subr.bf16.mxu0 %v3986_v5  ;;  %v3645_v5 = vcombine.high %v1577_v2, %v1581_v3 }
 0x1cb   :  { %1481 = vmatpush1.bf16.msra.mxu0 %v3984_v8  ;;  %v3644_v8 = vcombine.low %v1577_v2, %v1581_v3  ;;  %v1523_v3 = vld [vmem:[%s5533_s5 + $0x90] sm:$0xff] }
 0x1cc   :  { %1482 = vmatprep.subr.bf16.mxu0 %v3989_v9  ;;  %v3653_v9 = vcombine.high %v1585_v6, %v1589_v7 }
 0x1cf   :  { %1483 = vmatpush1.bf16.msra.mxu0 %v3987_v12  ;;  %v1597_v12 = vld [vmem:[%s5533_s5 + $0x2e0] sm:$0xff] }
 0x1d0   :  { %1484 = vmatprep.subr.bf16.mxu0 %v3992_v14  ;;  %v3652_v14 = vcombine.low %v1585_v6, %v1589_v7  ;;  %v1527_v6 = vld [vmem:[%s5533_s5 + $0xb0] sm:$0xff]  ;;  %v1524_v7 = vld [vmem:[%s5533_s5 + $0x98] sm:$0xff] }
 0x1d3   :  { %1485 = vmatpush1.bf16.msra.mxu0 %v3990_v15  ;;  %v3661_v15 = vcombine.high %v1593_v11, %v1597_v12 }
 0x1d4   :  { %1486 = vmatprep.subr.bf16.mxu0 %v3995_v16  ;;  %v1601_v16 = vld [vmem:[%s5533_s5 + $0x300] sm:$0xff] }
 0x1d7   :  { %1487 = vmatpush1.bf16.msra.mxu0 %v3993_v17  ;;  %v1605_v17 = vld [vmem:[%s5533_s5 + $0x320] sm:$0xff] }
 0x1d8   :  { %1488 = vmatprep.subr.bf16.mxu0 %v3998_v18  ;;  %v3660_v18 = vcombine.low %v1593_v11, %v1597_v12  ;;  %v3593_v12 = vcombine.high %v1523_v3, %v1527_v6 }
 0x1db   :  { %1489 = vmatpush1.bf16.msra.mxu0 %v3996_v19  ;;  %v3669_v19 = vcombine.high %v1601_v16, %v1605_v17 }
 0x1dc   :  { %1490 = vmatprep.subr.bf16.mxu0 %v4001_v20  ;;  %v1609_v20 = vld [vmem:[%s5533_s5 + $0x340] sm:$0xff] }
 0x1df   :  { %1491 = vmatpush1.bf16.msra.mxu0 %v3999_v21  ;;  %v1613_v21 = vld [vmem:[%s5533_s5 + $0x360] sm:$0xff] }
 0x1e0   :  { %1492 = vmatprep.subr.bf16.mxu0 %v4004_v22  ;;  %v3668_v22 = vcombine.low %v1601_v16, %v1605_v17  ;;  %v3677_v23 = vcombine.high %v1609_v20, %v1613_v21  ;;  %v3676_v30 = vcombine.low %v1609_v20, %v1613_v21  ;;  %v1535_v16 = vld [vmem:[%s5533_s5 + $0xf0] sm:$0xff]  ;;  %v1532_v17 = vld [vmem:[%s5533_s5 + $0xd8] sm:$0xff] }
 0x1e3   :  { %1493 = vmatpush1.bf16.msra.mxu0 %v4002_v29  ;;  %v1621_v29 = vld [vmem:[%s5533_s5 + $0x3a0] sm:$0xff] }
 0x1e4   :  { %2273 = vmatprep.subr.bf16.mxu0 %v3573_v32  ;;  %v3685_v32 = vcombine.high %v1617_v24, %v1621_v29  ;;  %v3684_v37 = vcombine.low %v1617_v24, %v1621_v29  ;;  %v1543_v24 = vld [vmem:[%s5533_s5 + $0x130] sm:$0xff]  ;;  %v1540_v29 = vld [vmem:[%s5533_s5 + $0x118] sm:$0xff] }
 0x1e6   :  { %1495 = vmatmul.mubr.bf16.vlgmr.msra.gmra.mrb[0].mxu0 %v4847_v38 }
 0x1e7   :  { %2274 = vmatpush1.bf16.msra.mxu0 %v3572_v34  ;;  %v1629_v34 = vld [vmem:[%s5533_s5 + $0x3e0] sm:$0xff] }
 0x1e8   :  { %2275 = vmatprep.subr.bf16.mxu0 %v3581_v39  ;;  %v1626_v39 = vld [vmem:[%s5533_s5 + $0x3c8] sm:$0xff]  ;;  %v3693_v40 = vcombine.high %v1625_v33, %v1629_v34 }
 0x1e9   :  { %v3694_v35 = vcombine.low %v1626_v39, %v1630_v41 }
 0x1eb   :  { %2276 = vmatpush1.bf16.msra.mxu0 %v3580_v42  ;;  %v3692_v42 = vcombine.low %v1625_v33, %v1629_v34 }
 0x1ec   :  { %2277 = vmatprep.subr.bf16.mxu0 %v3589_v43  ;;  %v3695_v43 = vcombine.high %v1626_v39, %v1630_v41  ;;  %v1547_v39 = vld [vmem:[%s5533_s5 + $0x150] sm:$0xff]  ;;  %v1548_v41 = vld [vmem:[%s5533_s5 + $0x158] sm:$0xff] }
 0x1ee   :  { %2344 = vmatprep.subr.bf16.mxu1 %v3695_v43 }
 0x1ef   :  { %2278 = vmatpush1.bf16.msra.mxu0 %v3588_v36  ;;  %v1511_v36 = vld [vmem:[%s5533_s5 + $0x30] sm:$0xff]  ;;  %2345 = vmatpush1.bf16.msra.mxu1 %v3694_v35 }
 0x1f0   :  { %2279 = vmatprep.subr.bf16.mxu0 %v3597_v45  ;;  %v1508_v45 = vld [vmem:[%s5533_s5 + $0x18] sm:$0xff]  ;;  %v3577_v46 = vcombine.high %v1507_v44, %v1511_v36 }
 0x1f1   :  { %v3579_v50 = vcombine.high %v1508_v45, %v1512_v47 }
 0x1f3   :  { %2280 = vmatpush1.bf16.msra.mxu0 %v3596_v48  ;;  %v3576_v48 = vcombine.low %v1507_v44, %v1511_v36  ;;  %2396 = vmatprep.subr.bf16.mxu1 %v3579_v50 }
 0x1f4   :  { %2281 = vmatprep.subr.bf16.mxu0 %v3605_v49  ;;  %v3578_v49 = vcombine.low %v1508_v45, %v1512_v47  ;;  %v1555_v45 = vld [vmem:[%s5533_s5 + $0x190] sm:$0xff]  ;;  %v1556_v47 = vld [vmem:[%s5533_s5 + $0x198] sm:$0xff] }
 0x1f7   :  { %2282 = vmatpush1.bf16.msra.mxu0 %v3604_v52  ;;  %v1089_v52 = vld [vmem:[%s5532_s4] sm:$0x3] }
 0x1f8   :  { %2283 = vmatprep.subr.bf16.mxu0 %v3613_v53  ;;  %v1094_v53 = vrot.slane %v1089_v52, %v4389_v28  ;;  %v1098_v54 = vrot.slane %v1089_v52, %v4396_v31 }
 0x1fb   :  { %2284 = vmatpush1.bf16.msra.mxu0 %v3612_v56 }
 0x1fc   :  { %2285 = vmatprep.subr.bf16.mxu0 %v3621_v57 }
 0x1ff   :  { %2286 = vmatpush1.bf16.msra.mxu0 %v3620_v60  ;;  %v1515_v60 = vld [vmem:[%s5533_s5 + $0x50] sm:$0xff] }
 0x200   :  { %2287 = vmatprep.subr.bf16.mxu0 %v3629_v61 }
 0x203   :  { %2288 = vmatpush1.bf16.msra.mxu0 %v3628_v0  ;;  %v1520_v0 = vld [vmem:[%s5533_s5 + $0x78] sm:$0xff] }
 0x204   :  { %2289 = vmatprep.subr.bf16.mxu0 %v3637_v1  ;;  %v3586_v11 = vcombine.low %v1516_v63, %v1520_v0 }
 0x207   :  { %2290 = vmatpush1.bf16.msra.mxu0 %v3636_v4  ;;  %v3585_v4 = vcombine.high %v1515_v60, %v1519_v62 }
 0x208   :  { %2291 = vmatprep.subr.bf16.mxu0 %v3645_v5  ;;  %v3587_v5 = vcombine.high %v1516_v63, %v1520_v0  ;;  %v1575_v63 = vld [vmem:[%s5533_s5 + $0x230] sm:$0xff]  ;;  %v1572_v0 = vld [vmem:[%s5533_s5 + $0x218] sm:$0xff] }
 0x20b   :  { %2292 = vmatpush1.bf16.msra.mxu0 %v3644_v8  ;;  %v1528_v8 = vld [vmem:[%s5533_s5 + $0xb8] sm:$0xff] }
 0x20c   :  { %2293 = vmatprep.subr.bf16.mxu0 %v3653_v9  ;;  %v3584_v9 = vcombine.low %v1515_v60, %v1519_v62  ;;  %v3594_v20 = vcombine.low %v1524_v7, %v1528_v8  ;;  %v1571_v62 = vld [vmem:[%s5533_s5 + $0x210] sm:$0xff] }
 0x20f   :  { %2294 = vmatpush1.bf16.msra.mxu0 %v3652_v14  ;;  %v3595_v14 = vcombine.high %v1524_v7, %v1528_v8  ;;  %v1579_v8 = vld [vmem:[%s5533_s5 + $0x250] sm:$0xff] }
 0x210   :  { %2295 = vmatprep.subr.bf16.mxu0 %v3661_v15  ;;  %v1531_v15 = vld [vmem:[%s5533_s5 + $0xd0] sm:$0xff] }
 0x211   :  { %v3601_v21 = vcombine.high %v1531_v15, %v1535_v16 }
 0x213   :  { %2296 = vmatpush1.bf16.msra.mxu0 %v3660_v18  ;;  %v1536_v18 = vld [vmem:[%s5533_s5 + $0xf8] sm:$0xff] }
 0x214   :  { %2297 = vmatprep.subr.bf16.mxu0 %v3669_v19  ;;  %v3592_v19 = vcombine.low %v1523_v3, %v1527_v6  ;;  %v3641_v6 = vcombine.high %v1571_v62, %v1575_v63 }
 0x217   :  { %2298 = vmatpush1.bf16.msra.mxu0 %v3668_v22  ;;  %v3603_v22 = vcombine.high %v1532_v17, %v1536_v18 }
 0x218   :  { %2299 = vmatprep.subr.bf16.mxu0 %v3677_v23  ;;  %v1539_v23 = vld [vmem:[%s5533_s5 + $0x110] sm:$0xff] }
 0x219   :  { %v3609_v33 = vcombine.high %v1539_v23, %v1543_v24  ;;  %v3608_v43 = vcombine.low %v1539_v23, %v1543_v24 }
 0x21b   :  { %2300 = vmatpush1.bf16.msra.mxu0 %v3676_v30  ;;  %v1544_v30 = vld [vmem:[%s5533_s5 + $0x138] sm:$0xff] }
 0x21c   :  { %2301 = vmatprep.subr.bf16.mxu0 %v3685_v32  ;;  %v3600_v32 = vcombine.low %v1531_v15, %v1535_v16  ;;  %v3611_v34 = vcombine.high %v1540_v29, %v1544_v30  ;;  %v3610_v35 = vcombine.low %v1540_v29, %v1544_v30  ;;  %v1595_v30 = vld [vmem:[%s5533_s5 + $0x2d0] sm:$0xff] }
 0x21f   :  { %2302 = vmatpush1.bf16.msra.mxu0 %v3684_v37  ;;  %v3602_v37 = vcombine.low %v1532_v17, %v1536_v18  ;;  %v1587_v18 = vld [vmem:[%s5533_s5 + $0x290] sm:$0xff] }
 0x220   :  { %2303 = vmatprep.subr.bf16.mxu0 %v3693_v40  ;;  %v1551_v40 = vld [vmem:[%s5533_s5 + $0x170] sm:$0xff] }
 0x221   :  { %v3617_v44 = vcombine.high %v1547_v39, %v1551_v40 }
 0x223   :  { %2304 = vmatpush1.bf16.msra.mxu0 %v3692_v42  ;;  %v1552_v42 = vld [vmem:[%s5533_s5 + $0x178] sm:$0xff] }
 0x224   :  { %2355 = vmatprep.subr.bf16.mxu0 %v3577_v46  ;;  %v3619_v36 = vcombine.high %v1548_v41, %v1552_v42  ;;  %v1559_v46 = vld [vmem:[%s5533_s5 + $0x1b0] sm:$0xff]  ;;  %v3618_v50 = vcombine.low %v1548_v41, %v1552_v42 }
 0x225   :  { %v3625_v52 = vcombine.high %v1555_v45, %v1559_v46 }
 0x2b9   :  { %v1496_v55 = vpop.f32.mrb[0].mxu0 }
 0x2ba   :  { %v3845_v56 = vadd.f32 %v1496_v55, %v1094_v53  ;;  %v1498_v57 = vpop.f32.mrb[1].mxu0  ;;  %v1567_v55 = vld [vmem:[%s5533_s5 + $0x1f0] sm:$0xff] }
 0x2bb   :  { %v3846_v58 = vadd.f32 %v1498_v57, %v1098_v54  ;;  %v1500_v59 = vpop.f32.mrb[2].mxu0  ;;  %v1563_v54 = vld [vmem:[%s5533_s5 + $0x1d0] sm:$0xff]  ;;  %v1568_v57 = vld [vmem:[%s5533_s5 + $0x1f8] sm:$0xff] }
 0x2bc   :  { %v1501_v61 = vpop.f32.mrb[3].mxu0  ;;  %v4971_v2 = vpack.c.bf16 %v3845_v56, %v3845_v56  ;;  %v1564_v56 = vld [vmem:[%s5533_s5 + $0x1d8] sm:$0xff]  ;;  %v3633_v60 = vcombine.high %v1563_v54, %v1567_v55  ;;  %v3632_v3 = vcombine.low %v1563_v54, %v1567_v55 }
 0x2bd   :  { %v1504_v1 = vpack.c.bf16 %v3846_v58, %v3846_v58  ;;  %v3624_v58 = vcombine.low %v1555_v45, %v1559_v46  ;;  %v3635_v61 = vcombine.high %v1564_v56, %v1568_v57 }
 0x2bf   :  { %2305 = vmatprep.mubr.bf16.mxu0 %v1504_v1  ;;  %2346 = vmatprep.mubr.bf16.mxu1 %v1504_v1 }
 0x2c0   :  { %2306 = vmatmul.mubr.bf16.vlgmr.msra.gmra.mrb[4].mxu0 %v4971_v2  ;;  %2347 = vmatmul.mubr.bf16.vlgmr.msra.gmra.mrb[0].mxu1 %v4971_v2 }
 0x2c1   :  { %2356 = vmatpush1.bf16.msra.mxu0 %v3576_v48  ;;  %2397 = vmatpush1.bf16.msra.mxu1 %v3578_v49  ;;  %v1560_v48 = vld [vmem:[%s5533_s5 + $0x1b8] sm:$0xff]  ;;  %v3616_v49 = vcombine.low %v1547_v39, %v1551_v40 }
 0x2c2   :  { %2387 = vmatprep.mubr.bf16.mxu0 %v1504_v1  ;;  %2428 = vmatprep.mubr.bf16.mxu1 %v1504_v1  ;;  %v3627_v53 = vcombine.high %v1556_v47, %v1560_v48  ;;  %v3626_v59 = vcombine.low %v1556_v47, %v1560_v48  ;;  %v1576_v1 = vld [vmem:[%s5533_s5 + $0x238] sm:$0xff] }
 0x2c3   :  { %2357 = vmatprep.subr.bf16.mxu0 %v3585_v4  ;;  %2398 = vmatprep.subr.bf16.mxu1 %v3587_v5  ;;  %v3634_v4 = vcombine.low %v1564_v56, %v1568_v57  ;;  %v2666_v5 = vld [vmem:[%s5541_s13] sm:$0xff]  ;;  %v3643_v7 = vcombine.high %v1572_v0, %v1576_v1  ;;  %v3642_v15 = vcombine.low %v1572_v0, %v1576_v1  ;;  %s4165_s13 = smov 1.0  }
 0x2c4   :  { %4113 = vrcp.f32 %v2666_v5  ;;  %v1628_v5 = vld [vmem:[%s5533_s5 + $0x3d8] sm:$0xff] }
 0x2c5   :  { %2358 = vmatpush1.bf16.msra.mxu0 %v3584_v9  ;;  %2399 = vmatpush1.bf16.msra.mxu1 %v3586_v11  ;;  %v1583_v9 = vld [vmem:[%s5533_s5 + $0x270] sm:$0xff]  ;;  %v1580_v11 = vld [vmem:[%s5533_s5 + $0x258] sm:$0xff] }
 0x2c6   :  { %2359 = vmatprep.subr.bf16.mxu0 %v3593_v12  ;;  %2400 = vmatprep.subr.bf16.mxu1 %v3595_v14  ;;  %v1584_v12 = vld [vmem:[%s5533_s5 + $0x278] sm:$0xff]  ;;  %v3640_v14 = vcombine.low %v1571_v62, %v1575_v63  ;;  %v3649_v16 = vcombine.high %v1579_v8, %v1583_v9 }
 0x2c7   :  { %v3651_v17 = vcombine.high %v1580_v11, %v1584_v12  ;;  %v3650_v23 = vcombine.low %v1580_v11, %v1584_v12 }
 0x2c9   :  { %2360 = vmatpush1.bf16.msra.mxu0 %v3592_v19  ;;  %2401 = vmatpush1.bf16.msra.mxu1 %v3594_v20  ;;  %v1591_v19 = vld [vmem:[%s5533_s5 + $0x2b0] sm:$0xff]  ;;  %v1588_v20 = vld [vmem:[%s5533_s5 + $0x298] sm:$0xff] }
 0x2ca   :  { %2361 = vmatprep.subr.bf16.mxu0 %v3601_v21  ;;  %2402 = vmatprep.subr.bf16.mxu1 %v3603_v22  ;;  %v1592_v21 = vld [vmem:[%s5533_s5 + $0x2b8] sm:$0xff]  ;;  %v3648_v22 = vcombine.low %v1579_v8, %v1583_v9  ;;  %v3657_v24 = vcombine.high %v1587_v18, %v1591_v19  ;;  %v3656_v39 = vcombine.low %v1587_v18, %v1591_v19  ;;  %v4013_v19 = vld [vmem:[%s5540_s12 + $0x24] ss:$8 sps:$4 sm:$0xff]  }
 0x2cb   :  { %v3659_v29 = vcombine.high %v1588_v20, %v1592_v21  ;;  %v3658_v40 = vcombine.low %v1588_v20, %v1592_v21  ;;  %v4008_v18 = vld [vmem:[%s5540_s12 + $0x10] ss:$8 sps:$4 sm:$0xff]   ;;  %v4011_v20 = vld [vmem:[%s5540_s12 + $0x20] ss:$8 sps:$4 sm:$0xff]   ;;  %v4019_v21 = vld [vmem:[%s5542_s14 + $0x4] ss:$8 sps:$4 sm:$0xff]  }
 0x2cd   :  { %2362 = vmatpush1.bf16.msra.mxu0 %v3600_v32  ;;  %2403 = vmatpush1.bf16.msra.mxu1 %v3602_v37  ;;  %v1599_v32 = vld [vmem:[%s5533_s5 + $0x2f0] sm:$0xff]  ;;  %v1596_v37 = vld [vmem:[%s5533_s5 + $0x2d8] sm:$0xff] }
 0x2ce   :  { %2363 = vmatprep.subr.bf16.mxu0 %v3609_v33  ;;  %2404 = vmatprep.subr.bf16.mxu1 %v3611_v34  ;;  %v1600_v33 = vld [vmem:[%s5533_s5 + $0x2f8] sm:$0xff]  ;;  %v4114_v34 = vpop.eup %4113  ;;  %v3665_v41 = vcombine.high %v1595_v30, %v1599_v32  ;;  %v3664_v45 = vcombine.low %v1595_v30, %v1599_v32  ;;  %v4025_v30 = vld [vmem:[%s5542_s14 + $0x24] ss:$8 sps:$4 sm:$0xff]   ;;  %v4023_v32 = vld [vmem:[%s5542_s14 + $0x20] ss:$8 sps:$4 sm:$0xff]  }
 0x2cf   :  { %v3667_v42 = vcombine.high %v1596_v37, %v1600_v33  ;;  %2764 = vperm.xlu0 %3907, %v4114_v34   ;;  %v3666_v46 = vcombine.low %v1596_v37, %v1600_v33  ;;  %v4028_v37 = vld [vmem:[%s5542_s14 + $0x34] ss:$8 sps:$4 sm:$0xff]   ;;  %v4031_v33 = vld [vmem:[%s5542_s14 + $0x44] ss:$8 sps:$4 sm:$0xff]   ;;  %v4029_v34 = vld [vmem:[%s5542_s14 + $0x40] ss:$8 sps:$4 sm:$0xff]  }
 0x2d1   :  { %2364 = vmatpush1.bf16.msra.mxu0 %v3608_v43  ;;  %2405 = vmatpush1.bf16.msra.mxu1 %v3610_v35  ;;  %v1603_v43 = vld [vmem:[%s5533_s5 + $0x310] sm:$0xff] }
 0x2d2   :  { %2365 = vmatprep.subr.bf16.mxu0 %v3617_v44  ;;  %2406 = vmatprep.subr.bf16.mxu1 %v3619_v36  ;;  %v1607_v35 = vld [vmem:[%s5533_s5 + $0x330] sm:$0xff]  ;;  %v1604_v44 = vld [vmem:[%s5533_s5 + $0x318] sm:$0xff] }
 0x2d3   :  { %v1608_v36 = vld [vmem:[%s5533_s5 + $0x338] sm:$0xff]  ;;  %v3673_v47 = vcombine.high %v1603_v43, %v1607_v35  ;;  %v3672_v54 = vcombine.low %v1603_v43, %v1607_v35 }
 0x2d4   :  { %v3675_v48 = vcombine.high %v1604_v44, %v1608_v36  ;;  %v3674_v55 = vcombine.low %v1604_v44, %v1608_v36  ;;  %v4040_v43 = vld [vmem:[%s5542_s14 + $0x74] ss:$8 sps:$4 sm:$0xff]   ;;  %v4038_v35 = vld [vmem:[%s5542_s14 + $0x70] ss:$8 sps:$4 sm:$0xff]   ;;  %v4043_v44 = vld [vmem:[%s5542_s14 + $0x84] ss:$8 sps:$4 sm:$0xff]  }
 0x2d5   :  { %2366 = vmatpush1.bf16.msra.mxu0 %v3616_v49  ;;  %2407 = vmatpush1.bf16.msra.mxu1 %v3618_v50  ;;  %v1611_v49 = vld [vmem:[%s5533_s5 + $0x350] sm:$0xff]  ;;  %v4041_v36 = vld [vmem:[%s5542_s14 + $0x80] ss:$8 sps:$4 sm:$0xff]  }
 0x2d6   :  { %2367 = vmatprep.subr.bf16.mxu0 %v3625_v52  ;;  %2408 = vmatprep.subr.bf16.mxu1 %v3627_v53  ;;  %v1615_v50 = vld [vmem:[%s5533_s5 + $0x370] sm:$0xff]  ;;  %v1612_v52 = vld [vmem:[%s5533_s5 + $0x358] sm:$0xff] }
 0x2d7   :  { %v1616_v53 = vld [vmem:[%s5533_s5 + $0x378] sm:$0xff]  ;;  %v3681_v56 = vcombine.high %v1611_v49, %v1615_v50  ;;  %v3680_v62 = vcombine.low %v1611_v49, %v1615_v50 }
 0x2d8   :  { %v3683_v57 = vcombine.high %v1612_v52, %v1616_v53  ;;  %v3682_v63 = vcombine.low %v1612_v52, %v1616_v53  ;;  %v4052_v49 = vld [vmem:[%s5542_s14 + $0xb4] ss:$8 sps:$4 sm:$0xff]   ;;  %v4050_v50 = vld [vmem:[%s5542_s14 + $0xb0] ss:$8 sps:$4 sm:$0xff]   ;;  %v4055_v52 = vld [vmem:[%s5542_s14 + $0xc4] ss:$8 sps:$4 sm:$0xff]  }
 0x2d9   :  { %2368 = vmatpush1.bf16.msra.mxu0 %v3624_v58  ;;  %2409 = vmatpush1.bf16.msra.mxu1 %v3626_v59  ;;  %v1619_v58 = vld [vmem:[%s5533_s5 + $0x390] sm:$0xff]  ;;  %v4053_v53 = vld [vmem:[%s5542_s14 + $0xc0] ss:$8 sps:$4 sm:$0xff]  }
 0x2da   :  { %2369 = vmatprep.subr.bf16.mxu0 %v3633_v60  ;;  %2410 = vmatprep.subr.bf16.mxu1 %v3635_v61  ;;  %v1623_v59 = vld [vmem:[%s5533_s5 + $0x3b0] sm:$0xff]  ;;  %v1620_v60 = vld [vmem:[%s5533_s5 + $0x398] sm:$0xff] }
 0x2db   :  { %v1624_v61 = vld [vmem:[%s5533_s5 + $0x3b8] sm:$0xff]  ;;  %v3689_v0 = vcombine.high %v1619_v58, %v1623_v59 }
 0x2dc   :  { %v3691_v1 = vcombine.high %v1620_v60, %v1624_v61  ;;  %v3690_v8 = vcombine.low %v1620_v60, %v1624_v61  ;;  %v4067_v60 = vld [vmem:[%s5542_s14 + $0x104] ss:$8 sps:$4 sm:$0xff]   ;;  %v4065_v61 = vld [vmem:[%s5542_s14 + $0x100] ss:$8 sps:$4 sm:$0xff]  }
 0x2dd   :  { %2370 = vmatpush1.bf16.msra.mxu0 %v3632_v3  ;;  %2411 = vmatpush1.bf16.msra.mxu1 %v3634_v4  ;;  %v1627_v3 = vld [vmem:[%s5533_s5 + $0x3d0] sm:$0xff] }
 0x2de   :  { %2371 = vmatprep.subr.bf16.mxu0 %v3641_v6  ;;  %2412 = vmatprep.subr.bf16.mxu1 %v3643_v7  ;;  %v1631_v4 = vld [vmem:[%s5533_s5 + $0x3f0] sm:$0xff]  ;;  %v1632_v6 = vld [vmem:[%s5533_s5 + $0x3f8] sm:$0xff]  ;;  %v3688_v7 = vcombine.low %v1619_v58, %v1623_v59 }
 0x2df   :  { %v3697_v9 = vcombine.high %v1627_v3, %v1631_v4  ;;  %v3699_v11 = vcombine.high %v1628_v5, %v1632_v6  ;;  %v3696_v12 = vcombine.low %v1627_v3, %v1631_v4  ;;  %v4064_v58 = vld [vmem:[%s5542_s14 + $0xf4] ss:$8 sps:$4 sm:$0xff]   ;;  %v4062_v59 = vld [vmem:[%s5542_s14 + $0xf0] ss:$8 sps:$4 sm:$0xff]   ;;  %v4079_v3 = vld [vmem:[%s5542_s14 + $0x144] ss:$8 sps:$4 sm:$0xff]  }
 0x2e0   :  { %v4077_v4 = vld [vmem:[%s5542_s14 + $0x140] ss:$8 sps:$4 sm:$0xff]  }
 0x2e1   :  { %2372 = vmatpush1.bf16.msra.mxu0 %v3640_v14  ;;  %2413 = vmatpush1.bf16.msra.mxu1 %v3642_v15  ;;  %v3698_v14 = vcombine.low %v1628_v5, %v1632_v6  ;;  %v4007_v15 = vld [vmem:[%s5540_s12 + $0x4] ss:$8 sps:$4 sm:$0xff]   ;;  %v4082_v5 = vld [vmem:[%s5542_s14 + $0x154] ss:$8 sps:$4 sm:$0xff]   ;;  %v4080_v6 = vld [vmem:[%s5542_s14 + $0x150] ss:$8 sps:$4 sm:$0xff]  }
 0x2e2   :  { %2373 = vmatprep.subr.bf16.mxu0 %v3649_v16  ;;  %2414 = vmatprep.subr.bf16.mxu1 %v3651_v17  ;;  %v4005_v16 = vld [vmem:[%s5540_s12] ss:$8 sps:$4 sm:$0xff]   ;;  %v4010_v17 = vld [vmem:[%s5540_s12 + $0x14] ss:$8 sps:$4 sm:$0xff]  }
 0x2e5   :  { %2374 = vmatpush1.bf16.msra.mxu0 %v3648_v22  ;;  %2415 = vmatpush1.bf16.msra.mxu1 %v3650_v23  ;;  %v2668_v22 = vld [vmem:[%s5539_s11] sm:$0xf] }
 0x2e6   :  { %2375 = vmatprep.subr.bf16.mxu0 %v3657_v24  ;;  %2416 = vmatprep.subr.bf16.mxu1 %v3659_v29  ;;  %v4017_v23 = vld [vmem:[%s5542_s14] ss:$8 sps:$4 sm:$0xff]   ;;  %v4022_v24 = vld [vmem:[%s5542_s14 + $0x14] ss:$8 sps:$4 sm:$0xff]   ;;  %v4020_v29 = vld [vmem:[%s5542_s14 + $0x10] ss:$8 sps:$4 sm:$0xff]  }
 0x2e9   :  { %2376 = vmatpush1.bf16.msra.mxu0 %v3656_v39  ;;  %2417 = vmatpush1.bf16.msra.mxu1 %v3658_v40  ;;  %v4034_v39 = vld [vmem:[%s5542_s14 + $0x54] ss:$8 sps:$4 sm:$0xff]   ;;  %v4032_v40 = vld [vmem:[%s5542_s14 + $0x50] ss:$8 sps:$4 sm:$0xff]  }
 0x2ea   :  { %2377 = vmatprep.subr.bf16.mxu0 %v3665_v41  ;;  %2418 = vmatprep.subr.bf16.mxu1 %v3667_v42  ;;  %v4037_v41 = vld [vmem:[%s5542_s14 + $0x64] ss:$8 sps:$4 sm:$0xff]   ;;  %v4035_v42 = vld [vmem:[%s5542_s14 + $0x60] ss:$8 sps:$4 sm:$0xff]  }
 0x2ed   :  { %2378 = vmatpush1.bf16.msra.mxu0 %v3664_v45  ;;  %2419 = vmatpush1.bf16.msra.mxu1 %v3666_v46  ;;  %v4046_v45 = vld [vmem:[%s5542_s14 + $0x94] ss:$8 sps:$4 sm:$0xff]   ;;  %v4044_v46 = vld [vmem:[%s5542_s14 + $0x90] ss:$8 sps:$4 sm:$0xff]  }
 0x2ee   :  { %2379 = vmatprep.subr.bf16.mxu0 %v3673_v47  ;;  %2420 = vmatprep.subr.bf16.mxu1 %v3675_v48  ;;  %v4049_v47 = vld [vmem:[%s5542_s14 + $0xa4] ss:$8 sps:$4 sm:$0xff]   ;;  %v4047_v48 = vld [vmem:[%s5542_s14 + $0xa0] ss:$8 sps:$4 sm:$0xff]  }
 0x2f1   :  { %2380 = vmatpush1.bf16.msra.mxu0 %v3672_v54  ;;  %2421 = vmatpush1.bf16.msra.mxu1 %v3674_v55  ;;  %v4058_v54 = vld [vmem:[%s5542_s14 + $0xd4] ss:$8 sps:$4 sm:$0xff]   ;;  %v4056_v55 = vld [vmem:[%s5542_s14 + $0xd0] ss:$8 sps:$4 sm:$0xff]  }
 0x2f2   :  { %2381 = vmatprep.subr.bf16.mxu0 %v3681_v56  ;;  %2422 = vmatprep.subr.bf16.mxu1 %v3683_v57  ;;  %v4061_v56 = vld [vmem:[%s5542_s14 + $0xe4] ss:$8 sps:$4 sm:$0xff]   ;;  %v4059_v57 = vld [vmem:[%s5542_s14 + $0xe0] ss:$8 sps:$4 sm:$0xff]  }
 0x2f5   :  { %2382 = vmatpush1.bf16.msra.mxu0 %v3680_v62  ;;  %2423 = vmatpush1.bf16.msra.mxu1 %v3682_v63  ;;  %v4070_v62 = vld [vmem:[%s5542_s14 + $0x114] ss:$8 sps:$4 sm:$0xff]   ;;  %v4068_v63 = vld [vmem:[%s5542_s14 + $0x110] ss:$8 sps:$4 sm:$0xff]  }
 0x2f6   :  { %2383 = vmatprep.subr.bf16.mxu0 %v3689_v0  ;;  %2424 = vmatprep.subr.bf16.mxu1 %v3691_v1  ;;  %v4073_v0 = vld [vmem:[%s5542_s14 + $0x124] ss:$8 sps:$4 sm:$0xff]   ;;  %v4071_v1 = vld [vmem:[%s5542_s14 + $0x120] ss:$8 sps:$4 sm:$0xff]  }
 0x2f9   :  { %2384 = vmatpush1.bf16.msra.mxu0 %v3688_v7  ;;  %2425 = vmatpush1.bf16.msra.mxu1 %v3690_v8  ;;  %v4085_v7 = vld [vmem:[%s5542_s14 + $0x164] ss:$8 sps:$4 sm:$0xff]   ;;  %v4083_v8 = vld [vmem:[%s5542_s14 + $0x160] ss:$8 sps:$4 sm:$0xff]  }
 0x2fa   :  { %2385 = vmatprep.subr.bf16.mxu0 %v3697_v9  ;;  %2426 = vmatprep.subr.bf16.mxu1 %v3699_v11  ;;  %v4088_v9 = vld [vmem:[%s5542_s14 + $0x174] ss:$8 sps:$4 sm:$0xff]   ;;  %v4086_v11 = vld [vmem:[%s5542_s14 + $0x170] ss:$8 sps:$4 sm:$0xff]  }
 0x2fd   :  { %2386 = vmatpush1.bf16.msra.mxu0 %v3696_v12  ;;  %2427 = vmatpush1.bf16.msra.mxu1 %v3698_v14  ;;  %v4091_v12 = vld [vmem:[%s5542_s14 + $0x184] ss:$8 sps:$4 sm:$0xff]   ;;  %v4089_v14 = vld [vmem:[%s5542_s14 + $0x180] ss:$8 sps:$4 sm:$0xff]  }
 0x2fe   :  { %2721 = vmatprep.subr.bf16.mxu1 %v4007_v15  ;;  %v4094_v15 = vld [vmem:[%s5542_s14 + $0x194] ss:$8 sps:$4 sm:$0xff]  }
 0x300   :  { %2388 = vmatmul.mubr.bf16.vlgmr.msra.gmra.mrb[8].mxu0 %v4971_v2  ;;  %2429 = vmatmul.mubr.bf16.vlgmr.msra.gmra.mrb[4].mxu1 %v4971_v2  ;;  %v4016_v2 = vld [vmem:[%s5540_s12 + $0x34] ss:$8 sps:$4 sm:$0xff]  }
 0x301   :  { %2722 = vmatpush1.bf16.msra.mxu1 %v4005_v16  ;;  %2753 = vmatprep.mubr.bf16.mxu1 %v4163_v51  ;;  %v4014_v51 = vld [vmem:[%s5540_s12 + $0x30] ss:$8 sps:$4 sm:$0xff]   ;;  %v2565_v16 = vld [vmem:[%s5537_s9 + $0x80] sm:$0xff] }
 0x302   :  { %2723 = vmatprep.subr.bf16.mxu1 %v4010_v17  ;;  %v2566_v17 = vld [vmem:[%s5537_s9 + $0x88] sm:$0xff] }
 0x305   :  { %2724 = vmatpush1.bf16.msra.mxu1 %v4008_v18  ;;  %v4092_v18 = vld [vmem:[%s5542_s14 + $0x190] ss:$8 sps:$4 sm:$0xff]  }
 0x306   :  { %2725 = vmatprep.subr.bf16.mxu1 %v4013_v19  ;;  %v3813_v19 = vpack.c.bf16 %v2566_v17, %v2565_v16  ;;  %v2564_v16 = vld [vmem:[%s5537_s9 + $0x78] sm:$0xff]  ;;  %v2437_v17 = vld [vmem:[%s5534_s6] sm:$0x3] }
 0x308   :  { %3814 = vmatprep.subr.bf16.mxu0 %v3813_v19  ;;  %v2442_v19 = vrot.slane %v2437_v17, %v4389_v28 }
 0x309   :  { %2726 = vmatpush1.bf16.msra.mxu1 %v4011_v20  ;;  %v2549_v20 = vld [vmem:[%s5537_s9] sm:$0xff] }
 0x30a   :  { %2727 = vmatprep.subr.bf16.mxu1 %v4016_v2  ;;  %v2550_v2 = vld [vmem:[%s5537_s9 + $0x8] sm:$0xff] }
 0x30d   :  { %2728 = vmatpush1.bf16.msra.mxu1 %v4014_v51  ;;  %v4097_v51 = vld [vmem:[%s5542_s14 + $0x1a4] ss:$8 sps:$4 sm:$0xff]  }
 0x30e   :  { %3174 = vmatprep.subr.bf16.mxu1 %v4019_v21  ;;  %v3815_v21 = vpack.c.bf16 %v2550_v2, %v2549_v20  ;;  %v2446_v20 = vrot.slane %v2437_v17, %v4396_v31 }
 0x310   :  { %3710 = vmatmul.mubr.msk.bf16.vlgmr.msra.gmra.mrb[8].mxu1 %vm2717_vm2, %v2668_v22  ;;  %3816 = vmatpush3.bf16.msra.mxu0 %v3815_v21  ;;  %v2567_v22 = vld [vmem:[%s5537_s9 + $0x90] sm:$0xff] }
 0x311   :  { %3175 = vmatpush1.bf16.msra.mxu1 %v4017_v23  ;;  %3206 = vmatprep.mubr.bf16.mxu1 %v4583_v25  ;;  %v4026_v25 = vld [vmem:[%s5542_s14 + $0x30] ss:$8 sps:$4 sm:$0xff]  }
 0x312   :  { %3176 = vmatprep.subr.bf16.mxu1 %v4022_v24  ;;  %v2568_v23 = vld [vmem:[%s5537_s9 + $0x98] sm:$0xff]  ;;  %v4095_v24 = vld [vmem:[%s5542_s14 + $0x1a0] ss:$8 sps:$4 sm:$0xff]  }
 0x315   :  { %3177 = vmatpush1.bf16.msra.mxu1 %v4020_v29  ;;  %v3817_v29 = vpack.c.bf16 %v2568_v23, %v2567_v22 }
 0x316   :  { %3178 = vmatprep.subr.bf16.mxu1 %v4025_v30  ;;  %v2551_v30 = vld [vmem:[%s5537_s9 + $0x10] sm:$0xff] }
 0x317   :  { %3818 = vmatprep.subr.bf16.mxu0 %v3817_v29 }
 0x319   :  { %3179 = vmatpush1.bf16.msra.mxu1 %v4023_v32  ;;  %v2552_v32 = vld [vmem:[%s5537_s9 + $0x18] sm:$0xff] }
 0x31a   :  { %3180 = vmatprep.subr.bf16.mxu1 %v4028_v37  ;;  %v4100_v37 = vld [vmem:[%s5542_s14 + $0x1b4] ss:$8 sps:$4 sm:$0xff]  }
 0x31d   :  { %3181 = vmatpush1.bf16.msra.mxu1 %v4026_v25  ;;  %v3819_v25 = vpack.c.bf16 %v2552_v32, %v2551_v30 }
 0x31e   :  { %3182 = vmatprep.subr.bf16.mxu1 %v4031_v33  ;;  %v2569_v33 = vld [vmem:[%s5537_s9 + $0xa0] sm:$0xff] }
 0x31f   :  { %3820 = vmatpush3.bf16.msra.mxu0 %v3819_v25 }
 0x321   :  { %3183 = vmatpush1.bf16.msra.mxu1 %v4029_v34  ;;  %v2570_v34 = vld [vmem:[%s5537_s9 + $0xa8] sm:$0xff] }
 0x322   :  { %3184 = vmatprep.subr.bf16.mxu1 %v4034_v39  ;;  %v4098_v39 = vld [vmem:[%s5542_s14 + $0x1b0] ss:$8 sps:$4 sm:$0xff]  }
 0x325   :  { %3185 = vmatpush1.bf16.msra.mxu1 %v4032_v40  ;;  %v3821_v40 = vpack.c.bf16 %v2570_v34, %v2569_v33 }
 0x326   :  { %3186 = vmatprep.subr.bf16.mxu1 %v4037_v41  ;;  %v2553_v41 = vld [vmem:[%s5537_s9 + $0x20] sm:$0xff] }
 0x327   :  { %3822 = vmatprep.subr.bf16.mxu0 %v3821_v40 }
 0x329   :  { %3187 = vmatpush1.bf16.msra.mxu1 %v4035_v42  ;;  %v2554_v42 = vld [vmem:[%s5537_s9 + $0x28] sm:$0xff] }
 0x32a   :  { %3188 = vmatprep.subr.bf16.mxu1 %v4040_v43  ;;  %v4103_v43 = vld [vmem:[%s5542_s14 + $0x1c4] ss:$8 sps:$4 sm:$0xff]  }
 0x32d   :  { %3189 = vmatpush1.bf16.msra.mxu1 %v4038_v35  ;;  %v3823_v35 = vpack.c.bf16 %v2554_v42, %v2553_v41 }
 0x32e   :  { %3190 = vmatprep.subr.bf16.mxu1 %v4043_v44  ;;  %v2571_v44 = vld [vmem:[%s5537_s9 + $0xb0] sm:$0xff] }
 0x32f   :  { %3824 = vmatpush3.bf16.msra.mxu0 %v3823_v35 }
 0x331   :  { %3191 = vmatpush1.bf16.msra.mxu1 %v4041_v36  ;;  %v2572_v36 = vld [vmem:[%s5537_s9 + $0xb8] sm:$0xff] }
 0x332   :  { %3192 = vmatprep.subr.bf16.mxu1 %v4046_v45  ;;  %v4101_v45 = vld [vmem:[%s5542_s14 + $0x1c0] ss:$8 sps:$4 sm:$0xff]  }
 0x335   :  { %3193 = vmatpush1.bf16.msra.mxu1 %v4044_v46  ;;  %v3825_v46 = vpack.c.bf16 %v2572_v36, %v2571_v44 }
 0x336   :  { %3194 = vmatprep.subr.bf16.mxu1 %v4049_v47  ;;  %v2555_v47 = vld [vmem:[%s5537_s9 + $0x30] sm:$0xff] }
 0x337   :  { %3826 = vmatprep.subr.bf16.mxu0 %v3825_v46 }
 0x339   :  { %3195 = vmatpush1.bf16.msra.mxu1 %v4047_v48  ;;  %v2556_v48 = vld [vmem:[%s5537_s9 + $0x38] sm:$0xff] }
 0x33a   :  { %3196 = vmatprep.subr.bf16.mxu1 %v4052_v49  ;;  %v4106_v49 = vld [vmem:[%s5542_s14 + $0x1d4] ss:$8 sps:$4 sm:$0xff]  }
 0x33d   :  { %3197 = vmatpush1.bf16.msra.mxu1 %v4050_v50  ;;  %v3827_v50 = vpack.c.bf16 %v2556_v48, %v2555_v47 }
 0x33e   :  { %3198 = vmatprep.subr.bf16.mxu1 %v4055_v52  ;;  %v2573_v52 = vld [vmem:[%s5537_s9 + $0xc0] sm:$0xff] }
 0x33f   :  { %3828 = vmatpush3.bf16.msra.mxu0 %v3827_v50 }
 0x341   :  { %3199 = vmatpush1.bf16.msra.mxu1 %v4053_v53  ;;  %v2574_v53 = vld [vmem:[%s5537_s9 + $0xc8] sm:$0xff] }
 0x342   :  { %3200 = vmatprep.subr.bf16.mxu1 %v4058_v54  ;;  %v4104_v54 = vld [vmem:[%s5542_s14 + $0x1d0] ss:$8 sps:$4 sm:$0xff]  }
 0x345   :  { %3201 = vmatpush1.bf16.msra.mxu1 %v4056_v55  ;;  %v3829_v55 = vpack.c.bf16 %v2574_v53, %v2573_v52 }
 0x346   :  { %3202 = vmatprep.subr.bf16.mxu1 %v4061_v56  ;;  %v2557_v56 = vld [vmem:[%s5537_s9 + $0x40] sm:$0xff] }
 0x347   :  { %3830 = vmatprep.subr.bf16.mxu0 %v3829_v55 }
 0x349   :  { %3203 = vmatpush1.bf16.msra.mxu1 %v4059_v57  ;;  %v2558_v57 = vld [vmem:[%s5537_s9 + $0x48] sm:$0xff] }
 0x34a   :  { %3204 = vmatprep.subr.bf16.mxu1 %v4064_v58  ;;  %v4109_v58 = vld [vmem:[%s5542_s14 + $0x1e4] ss:$8 sps:$4 sm:$0xff]  }
 0x34d   :  { %3205 = vmatpush1.bf16.msra.mxu1 %v4062_v59  ;;  %v3831_v59 = vpack.c.bf16 %v2558_v57, %v2557_v56 }
 0x34e   :  { %3215 = vmatprep.subr.bf16.mxu1 %v4067_v60  ;;  %v2575_v60 = vld [vmem:[%s5537_s9 + $0xd0] sm:$0xff] }
 0x34f   :  { %3832 = vmatpush3.bf16.msra.mxu0 %v3831_v59 }
 0x350   :  { %3207 = vmatmul.mubr.bf16.vlgmr.msra.gmra.mrb[12].mxu1 %v4682_v10  ;;  %v4076_v10 = vld [vmem:[%s5542_s14 + $0x134] ss:$8 sps:$4 sm:$0xff]  }
 0x351   :  { %3216 = vmatpush1.bf16.msra.mxu1 %v4065_v61  ;;  %3247 = vmatprep.mubr.bf16.mxu1 %v4687_v13  ;;  %v4074_v13 = vld [vmem:[%s5542_s14 + $0x130] ss:$8 sps:$4 sm:$0xff]  }
 0x352   :  { %3217 = vmatprep.subr.bf16.mxu1 %v4070_v62  ;;  %v2576_v61 = vld [vmem:[%s5537_s9 + $0xd8] sm:$0xff]  ;;  %v4107_v62 = vld [vmem:[%s5542_s14 + $0x1e0] ss:$8 sps:$4 sm:$0xff]  }
 0x355   :  { %3218 = vmatpush1.bf16.msra.mxu1 %v4068_v63  ;;  %v3833_v63 = vpack.c.bf16 %v2576_v61, %v2575_v60 }
 0x356   :  { %3219 = vmatprep.subr.bf16.mxu1 %v4073_v0  ;;  %v2559_v0 = vld [vmem:[%s5537_s9 + $0x50] sm:$0xff] }
 0x357   :  { %3834 = vmatprep.subr.bf16.mxu0 %v3833_v63  ;;  %v2765_v63 = vpop.permute.xlu0 %2764 }
 0x359   :  { %3220 = vmatpush1.bf16.msra.mxu1 %v4071_v1  ;;  %v2560_v1 = vld [vmem:[%s5537_s9 + $0x58] sm:$0xff] }
 0x35a   :  { %3221 = vmatprep.subr.bf16.mxu1 %v4076_v10  ;;  %v4112_v10 = vld [vmem:[%s5542_s14 + $0x1f4] ss:$8 sps:$4 sm:$0xff]  }
 0x35d   :  { %3222 = vmatpush1.bf16.msra.mxu1 %v4074_v13  ;;  %v3835_v13 = vpack.c.bf16 %v2560_v1, %v2559_v0 }
 0x35e   :  { %3223 = vmatprep.subr.bf16.mxu1 %v4079_v3  ;;  %v2577_v3 = vld [vmem:[%s5537_s9 + $0xe0] sm:$0xff] }
 0x35f   :  { %3836 = vmatpush3.bf16.msra.mxu0 %v3835_v13 }
 0x361   :  { %3224 = vmatpush1.bf16.msra.mxu1 %v4077_v4  ;;  %v2578_v4 = vld [vmem:[%s5537_s9 + $0xe8] sm:$0xff] }
 0x362   :  { %3225 = vmatprep.subr.bf16.mxu1 %v4082_v5  ;;  %v4110_v5 = vld [vmem:[%s5542_s14 + $0x1f0] ss:$8 sps:$4 sm:$0xff]   ;;  %s4133_s14 = scalar_lea.vmem %s3429_s10, 32 }
 0x363   :  { %p4135_p3 = scmp.lt.s32.totalorder %s4133_s14, %s4129_s3 }
 0x365   :  { %3226 = vmatpush1.bf16.msra.mxu1 %v4080_v6  ;;  %v3837_v6 = vpack.c.bf16 %v2578_v4, %v2577_v3  ;;  %p4136_p4 = por %p4135_p3, %p4134_p2 }
 0x366   :  { %3227 = vmatprep.subr.bf16.mxu1 %v4085_v7  ;;  %v2561_v7 = vld [vmem:[%s5537_s9 + $0x60] sm:$0xff] }
 0x367   :  { %3838 = vmatprep.subr.bf16.mxu0 %v3837_v6  ;;  %p4137_p5 = pnand %p4136_p4, %p4130_p1 }
 0x369   :  { %3228 = vmatpush1.bf16.msra.mxu1 %v4083_v8  ;;  %v2562_v8 = vld [vmem:[%s5537_s9 + $0x68] sm:$0xff] }
 0x36a   :  { %3229 = vmatprep.subr.bf16.mxu1 %v4088_v9  ;;  %v3839_v9 = vpack.c.bf16 %v2562_v8, %v2561_v7 }
 0x36c   :  { %3840 = vmatpush3.bf16.msra.mxu0 %v3839_v9 }
 0x36d   :  { %3230 = vmatpush1.bf16.msra.mxu1 %v4086_v11  ;;  %v2579_v11 = vld [vmem:[%s5537_s9 + $0xf0] sm:$0xff] }
 0x36e   :  { %3231 = vmatprep.subr.bf16.mxu1 %v4091_v12  ;;  %v2580_v12 = vld [vmem:[%s5537_s9 + $0xf8] sm:$0xff] }
 0x371   :  { %3232 = vmatpush1.bf16.msra.mxu1 %v4089_v14  ;;  %v2563_v14 = vld [vmem:[%s5537_s9 + $0x70] sm:$0xff] }
 0x372   :  { %3233 = vmatprep.subr.bf16.mxu1 %v4094_v15  ;;  %v3841_v15 = vpack.c.bf16 %v2580_v12, %v2579_v11 }
 0x374   :  { %3842 = vmatprep.subr.bf16.mxu0 %v3841_v15 }
 0x375   :  { %3234 = vmatpush1.bf16.msra.mxu1 %v4092_v18  ;;  %v3843_v18 = vpack.c.bf16 %v2564_v16, %v2563_v14 }
 0x376   :  { %3235 = vmatprep.subr.bf16.mxu1 %v4097_v51 }
 0x377   :  { %3844 = vmatpush3.bf16.msra.mxu0 %v3843_v18 }
 0x379   :  { %3236 = vmatpush1.bf16.msra.mxu1 %v4095_v24 }
 0x37a   :  { %3237 = vmatprep.subr.bf16.mxu1 %v4100_v37 }
 0x37d   :  { %3238 = vmatpush1.bf16.msra.mxu1 %v4098_v39 }
 0x37e   :  { %3239 = vmatprep.subr.bf16.mxu1 %v4103_v43 }
 0x381   :  { %3240 = vmatpush1.bf16.msra.mxu1 %v4101_v45 }
 0x382   :  { %3241 = vmatprep.subr.bf16.mxu1 %v4106_v49 }
 0x385   :  { %3242 = vmatpush1.bf16.msra.mxu1 %v4104_v54 }
 0x386   :  { %3243 = vmatprep.subr.bf16.mxu1 %v4109_v58 }
 0x389   :  { %3244 = vmatpush1.bf16.msra.mxu1 %v4107_v62 }
 0x38a   :  { %3245 = vmatprep.subr.bf16.mxu1 %v4112_v10 }
 0x38d   :  { %3246 = vmatpush1.bf16.msra.mxu1 %v4110_v5 }
 0x390   :  { %3248 = vmatmul.mubr.bf16.vlgmr.msra.gmra.mrb[12].mxu1 %v4847_v38 }
 0x393   :  { %v2307_v2 = vpop.f32.mrb[4].mxu0  ;;  %v2348_v51 = vpop.f32.mrb[0].mxu1 }
 0x394   :  { %v2449_v21 = vadd.f32 %v2442_v19, %v2307_v2  ;;  %v2453_v22 = vrot.slane %v2348_v51, 2  ;;  %v2309_v23 = vpop.f32.mrb[5].mxu0  ;;  %v2350_v24 = vpop.f32.mrb[1].mxu1 }
 0x395   :  { %v2450_v29 = vadd.f32 %v2446_v20, %v2309_v23  ;;  %v2454_v30 = vrot.slane %v2350_v24, 2  ;;  %v2311_v32 = vpop.f32.mrb[6].mxu0  ;;  %v2352_v37 = vpop.f32.mrb[2].mxu1 }
 0x396   :  { %v2457_v25 = vadd.f32 %v2453_v22, %v2449_v21  ;;  %v2312_v33 = vpop.f32.mrb[7].mxu0  ;;  %v2353_v34 = vpop.f32.mrb[3].mxu1 }
 0x397   :  { %v2458_v39 = vadd.f32 %v2454_v30, %v2450_v29 }
 0x3d3   :  { %v2389_v38 = vpop.f32.mrb[8].mxu0  ;;  %v2430_v40 = vpop.f32.mrb[4].mxu1 }
 0x3d4   :  { %v2461_v41 = vrot.slane %v2389_v38, 4  ;;  %v2391_v42 = vpop.f32.mrb[9].mxu0  ;;  %v2432_v43 = vpop.f32.mrb[5].mxu1  ;;  %v2469_v46 = vrot.slane %v2430_v40, 6 }
 0x3d5   :  { %v2462_v35 = vrot.slane %v2391_v42, 4  ;;  %v2393_v44 = vpop.f32.mrb[10].mxu0  ;;  %v2434_v36 = vpop.f32.mrb[6].mxu1  ;;  %v2470_v50 = vrot.slane %v2432_v43, 6  ;;  %v2519_v43 = vld [vmem:[%s5535_s7] sm:$0x3] }
 0x3d6   :  { %v2465_v45 = vadd.f32 %v2461_v41, %v2457_v25  ;;  %v2394_v47 = vpop.f32.mrb[11].mxu0  ;;  %v2435_v48 = vpop.f32.mrb[7].mxu1  ;;  %v2524_v44 = vrot.slane %v2519_v43, %v4389_v28 }
 0x3d7   :  { %v2466_v49 = vadd.f32 %v2462_v35, %v2458_v39  ;;  %v2533_v35 = vld [vmem:[%s5536_s8] sm:$0x3] }
 0x3d8   :  { %v2473_v52 = vadd.f32 %v2469_v46, %v2465_v45  ;;  %v2528_v45 = vrot.slane %v2519_v43, %v4396_v31  ;;  %v2538_v48 = vrot.slane %v2533_v35, %v4389_v28 }
 0x3d9   :  { %v2474_v53 = vadd.f32 %v2470_v50, %v2466_v49  ;;  %v2542_v50 = vrot.slane %v2533_v35, %v4396_v31 }
 0x3da   :  { %v2476_v54 = vsel %vm2475_vm3, %v2473_v52, 0.0 }
 0x3db   :  { %v2477_v55 = vrot.slane %v2476_v54, 4  ;;  %v2483_v56 = vsel %vm2475_vm3, %v2474_v53, 0.0 }
 0x3dc   :  { %v2484_v57 = vrot.slane %v2483_v56, 4 }
 0x3dd   :  { %v2478_v58 = vadd.f32 %v2477_v55, %v2476_v54 }
 0x3de   :  { %v2485_v59 = vadd.f32 %v2484_v57, %v2483_v56 }
 0x3df   :  { %v2479_v60 = vrot.slane %v2478_v58, 2 }
 0x3e0   :  { %v2486_v61 = vrot.slane %v2485_v59, 2 }
 0x3e1   :  { %v2480_v62 = vadd.f32 %v2479_v60, %v2478_v58  ;;  %v2842_v58 = vld [vmem:[%s5543_s15] sm:$0x3] }
 0x3e2   :  { %v2487_v0 = vadd.f32 %v2486_v61, %v2485_v59  ;;  %v2847_v59 = vrot.slane %v2842_v58, %v4389_v28  ;;  %v2851_v60 = vrot.slane %v2842_v58, %v4396_v31 }
 0x3e3   :  { %v2481_v1 = vrot.slane %v2480_v62, 1  ;;  %v2755_v10 = vpop.f32.mrb[8].mxu1 }
 0x3e4   :  { %v2488_v13 = vrot.slane %v2487_v0, 1  ;;  %v5475_v3 = vmul.f32 %v2765_v63, %v2755_v10  ;;  %v2757_v4 = vpop.f32.mrb[9].mxu1 }
 0x3e5   :  { %v2482_v5 = vadd.f32 %v2481_v1, %v2480_v62  ;;  %v5477_v6 = vmul.f32 %v2765_v63, %v2757_v4  ;;  %v2759_v7 = vpop.f32.mrb[10].mxu1 }
 0x3e6   :  { %v2489_v8 = vadd.f32 %v2488_v13, %v2487_v0  ;;  %v2760_v9 = vpop.f32.mrb[11].mxu1  ;;  %v2769_v11 = vmul.f32 %v5475_v3, %v5475_v3 }
 0x3e7   :  { %v2491_v12 = vmul.f32 0.5, %v2482_v5  ;;  %v2770_v14 = vmul.f32 %v5477_v6, %v5477_v6 }
 0x3e8   :  { %v2492_v15 = vmul.f32 0.5, %v2489_v8 }
 0x3e9   :  { %v2493_v16 = vsub.f32 %v2473_v52, %v2491_v12  ;;  %v2771_v17 = vadd.f32 %v2770_v14, %v2769_v11  ;;  %v3700_v12 = vld [vmem:[#allocation3] ss:$0 sm:$0xff] }
 0x3ea   :  { %v2494_v18 = vsub.f32 %v2474_v53, %v2492_v15 }
 0x3eb   :  { %v2495_v19 = vmul.f32 %v2493_v16, %v2493_v16  ;;  %2772 = vadd.xlane.f32.xlu1 %v2771_v17 }
 0x3ec   :  { %v2496_v20 = vmul.f32 %v2494_v18, %v2494_v18 }
 0x3ed   :  { %v2497_v2 = vsel %vm2475_vm3, %v2495_v19, 0.0 }
 0x3ee   :  { %v2498_v51 = vrot.slane %v2497_v2, 4  ;;  %v2504_v21 = vsel %vm2475_vm3, %v2496_v20, 0.0 }
 0x3ef   :  { %v2505_v22 = vrot.slane %v2504_v21, 4 }
 0x3f0   :  { %v2499_v23 = vadd.f32 %v2498_v51, %v2497_v2 }
 0x3f1   :  { %v2506_v24 = vadd.f32 %v2505_v22, %v2504_v21 }
 0x3f2   :  { %v2500_v29 = vrot.slane %v2499_v23, 2 }
 0x3f3   :  { %v2507_v30 = vrot.slane %v2506_v24, 2 }
 0x3f4   :  { %v2501_v32 = vadd.f32 %v2500_v29, %v2499_v23  ;;  %v3338_v23 = vand.u32 127, %v118_v26  ;;  %v3354_v26 = vld [vmem:[%s5544_s16] sm:$0xff] }
 0x3f5   :  { %v2508_v37 = vadd.f32 %v2507_v30, %v2506_v24  ;;  %v4164_v24 = vmov 0.0  }
 0x3f6   :  { %v2502_v25 = vrot.slane %v2501_v32, 1  ;;  %vm3339_vm5 = vcmp.eq.s32.totalorder %v4386_v27, %v3338_v23 }
 0x3f7   :  { %v2509_v33 = vrot.slane %v2508_v37, 1  ;;  %v3775_v29 = vsel %vm3339_vm5, 1.0, %v4164_v24 }
 0x3f8   :  { %v2503_v34 = vadd.f32 %v2502_v25, %v2501_v32 }
 0x3f9   :  { %v2510_v39 = vadd.f32 %v2509_v33, %v2508_v37 }
 0x3fa   :  { %v2511_v38 = vmul.f32 0.5, %v2503_v34 }
 0x3fb   :  { %v2512_v40 = vmul.f32 0.5, %v2510_v39 }
 0x3fc   :  { %v2513_v41 = vadd.f32 1e-05, %v2511_v38 }
 0x3fd   :  { %v2514_v42 = vadd.f32 1e-05, %v2512_v40 }
 0x3fe   :  { %4115 = vrsqrt.f32 %v2513_v41 }
 0x3ff   :  { %4117 = vrsqrt.f32 %v2514_v42  ;;  %v3380_v42 = vsel %vm3379_vm7, %v3354_v26, 0.0 }
 0x408   :  { %v4116_v36 = vpop.eup %4115 }
 0x409   :  { %v4118_v46 = vpop.eup %4117  ;;  %v2517_v47 = vmul.f32 %v4116_v36, %v2493_v16 }
 0x40a   :  { %v2518_v49 = vmul.f32 %v4118_v46, %v2494_v18 }
 0x40b   :  { %v2531_v52 = vmul.f32 %v2524_v44, %v2517_v47  ;;  %v3776_v44 = vld [vmem:[%s5545_s17] ss:$0 sm:$0xff] }
 0x40c   :  { %v2532_v53 = vmul.f32 %v2528_v45, %v2518_v49  ;;  %v3353_v45 = vsub.f32 1.0, %v3775_v29 }
 0x40d   :  { %v2545_v54 = vadd.f32 %v2538_v48, %v2531_v52 }
 0x40e   :  { %v2546_v55 = vadd.f32 %v2542_v50, %v2532_v53 }
 0x40f   :  { %v2547_v57 = vmax.f32 %v2545_v54, 0.0 }
 0x410   :  { %v2548_v56 = vmax.f32 %v2546_v55, 0.0 }
 0x412   :  { %2652 = vmatprep.mubr.f32.mxu0 %v2548_v56 }
 0x413   :  { %2653 = vmatmul.mubr.f32.vlgmr.msra.gmra.mrb[12].mxu0 %v2547_v57 }
 0x463   :  { %v3249_v61 = vpop.f32.mrb[12].mxu1 }
 0x464   :  { %v3847_v62 = vadd.f32 %v3249_v61, %v2847_v59  ;;  %v3251_v63 = vpop.f32.mrb[13].mxu1 }
 0x465   :  { %v3848_v0 = vadd.f32 %v3251_v63, %v2851_v60  ;;  %v3253_v1 = vpop.f32.mrb[14].mxu1 }
 0x466   :  { %v3256_v10 = vmul.f32 %v3847_v62, %v3847_v62  ;;  %v3254_v13 = vpop.f32.mrb[15].mxu1 }
 0x467   :  { %v3257_v4 = vmul.f32 %v3848_v0, %v3848_v0 }
 0x469   :  { %v3258_v5 = vadd.f32 %v3257_v4, %v3256_v10 }
 0x46b   :  { %3259 = vadd.xlane.f32.xlu0 %v3258_v5 }
 0x478   :  { %v2773_v7 = vpop.xlane.xlu1 %2772 }
 0x479   :  { %v2774_v8 = vmax.f32 %v2773_v7, 1e-24 }
 0x47b   :  { %4119 = vrsqrt.f32 %v2774_v8 }
 0x485   :  { %v4120_v9 = vpop.eup %4119 }
 0x486   :  { %v2777_v11 = vmul.f32 %v4120_v9, %v5477_v6  ;;  %v2776_v22 = vmul.f32 %v4120_v9, %v5475_v3 }
 0x488   :  { %3329 = vmatprep.mubr.f32.mxu1 %v2777_v11 }
 0x4e6   :  { %v3810_v28 = vpop.f32.mrb[12].mxu0 }
 0x4e7   :  { %v3811_v31 = vpop.f32.mrb[13].mxu0 }
 0x4e8   :  { %v3812_v14 = vadd.f32 %v3811_v31, %v3810_v28 }
 0x4ea   :  { %v2655_v15 = vadd.f32 %v3812_v14, %v3700_v12 }
 0x4ec   :  { %v3701_v16 = vmul.f32 -1.442695, %v2655_v15 }
 0x4ee   :  { %4121 = vpow2.f32 %v3701_v16 }
 0x4f8   :  { %v4122_v17 = vpop.eup %4121  ;;  %v3260_v18 = vpop.xlane.xlu0 %3259 }
 0x4f9   :  { %v2661_v19 = vadd.f32 1.0, %v4122_v17  ;;  %v3261_v20 = vmax.f32 %v3260_v18, 1e-24 }
 0x4fb   :  { %4123 = vrcp.f32 %v2661_v19 }
 0x4fc   :  { %4125 = vrsqrt.f32 %v3261_v20 }
 0x505   :  { %v4124_v2 = vpop.eup %4123 }
 0x506   :  { %v4126_v51 = vpop.eup %4125  ;;  %2665 = vst.msk [vmem:[%s5546_s18] sm:$0x3] %vm2664_vm4, %v4124_v2 }
 0x507   :  { %v3264_v6 = vmul.f32 %v4126_v51, %v3848_v0  ;;  %v3263_v21 = vmul.f32 %v4126_v51, %v3847_v62 }
 0x509   :  { %3265 = vmatprep.subr.mxu1 %v3264_v6 }
 0x50a   :  { %3266 = vmatpush1.xpose.msra.mxu1 %v3263_v21 }
 0x50d   :  { %3330 = vmatmul.mubr.f32.vlgmr.msra.gmra.mrb[16].mxu1 %v2776_v22 }
 0x5e0   :  { %v3331_v30 = vpop.f32.mrb[16].mxu1 }
 0x5e1   :  { %v3342_v32 = vmul.f32 %v3775_v29, %v3331_v30  ;;  %v3333_v37 = vpop.f32.mrb[17].mxu1 }
 0x5e3   :  { %v3344_v25 = vsel %vm3343_vm6, %v3342_v32, 0.0 }
 0x5e4   :  { %3345 = vadd.xlane.f32.xlu1 %v3344_v25  ;;  %v3347_v33 = vrot.slane %v3344_v25, 4 }
 0x5e6   :  { %v3348_v34 = vadd.f32 %v3347_v33, %v3344_v25 }
 0x5e8   :  { %v3349_v39 = vrot.slane %v3348_v34, 2 }
 0x5ea   :  { %v3350_v38 = vadd.f32 %v3349_v39, %v3348_v34 }
 0x5ec   :  { %v3351_v40 = vrot.slane %v3350_v38, 1 }
 0x5ee   :  { %v3352_v3 = vadd.f32 %v3351_v40, %v3350_v38 }
 0x5f0   :  { %v3374_v41 = vsub.f32 0.2, %v3352_v3 }
 0x5f2   :  { %v3375_v27 = vadd.f32 %v3374_v41, %v3331_v30 }
 0x5f4   :  { %v3376_v46 = vmax.f32 %v3375_v27, 0.0 }
 0x5f5   :  { %3358 = vperm.xlu1 %3908, %v3354_v26  }
 0x5f6   :  { %v3377_v53 = vmin.f32 %v3376_v46, 1000000.0 }
 0x619   :  { %3381 = vadd.xlane.f32.xlu1 %v3380_v42 }
 0x671   :  { %v3346_v43 = vpop.xlane.xlu1 %3345 }
 0x672   :  { %v3369_v35 = vsub.f32 0.2, %v3346_v43 }
 0x674   :  { %v3370_v36 = vadd.f32 %v3369_v35, %v3331_v30 }
 0x675   :  { %v3359_v47 = vpop.permute.xlu1 %3358 }
 0x676   :  { %v3371_v48 = vmax.f32 %v3370_v36, 0.0  ;;  %v3367_v49 = vmul.f32 %v3776_v44, %v3359_v47 }
 0x678   :  { %v3372_v50 = vmin.f32 %v3371_v48, 1000000.0  ;;  %v3368_v52 = vmul.f32 %v3367_v49, %v3353_v45 }
 0x67a   :  { %v3373_v54 = vmul.f32 %v3372_v50, %v3368_v52  ;;  %v3378_v55 = vmul.f32 %v3377_v53, %v3368_v52 }
 0x67c   :  { %v3392_v56 = vsel %vm3343_vm6, %v3373_v54, 0.0  ;;  %v3402_v57 = vsel %vm3343_vm6, %v3378_v55, 0.0 }
 0x67d   :  { %3393 = vadd.xlane.f32.xlu0 %v3392_v56 }
 0x681   :  { %3403 = vadd.xlane.f32.xlu0 %v3402_v57 }
 0x6a6   :  { %v3382_v58 = vpop.xlane.xlu1 %3381 }
 0x6a7   :  { %v3383_v59 = vrot.slane %v3382_v58, 4 }
 0x6a9   :  { %v3384_v60 = vadd.f32 %v3383_v59, %v3382_v58 }
 0x6ab   :  { %v3385_v61 = vrot.slane %v3384_v60, 2 }
 0x6ad   :  { %v3386_v62 = vadd.f32 %v3385_v61, %v3384_v60 }
 0x6af   :  { %v3387_v63 = vrot.slane %v3386_v62, 1 }
 0x6b1   :  { %v3388_v0 = vadd.f32 %v3387_v63, %v3386_v62 }
 0x6b3   :  { %3857 = vpush %v3388_v0 }
 0x6e4   :  { %s3858_s16 = spop %3857 }
 0x6e5   :  { %s3390_s17 = smul.f32 %s3858_s16, %s3858_s16 }
 0x6e7   :  { %s3391_s30 = smax.f32 %s4165_s13, %s3390_s17 }
 0x6e8   :  { %v3413_v4 = vstv %s3391_s30 }
 0x6e9   :  { %4127 = vrcp.f32 %v3413_v4 }
 0x6f3   :  { %v4128_v17 = vpop.eup %4127 }
 0x70a   :  { %v3394_v1 = vpop.xlane.xlu0 %3393 }
 0x70b   :  { %v3395_v10 = vrot.slane %v3394_v1, 4 }
 0x70d   :  { %v3396_v13 = vadd.f32 %v3395_v10, %v3394_v1 }
 0x70e   :  { %v3404_v5 = vpop.xlane.xlu0 %3403 }
 0x70f   :  { %v3397_v7 = vrot.slane %v3396_v13, 2  ;;  %v3405_v8 = vrot.slane %v3404_v5, 4 }
 0x711   :  { %v3406_v9 = vadd.f32 %v3405_v8, %v3404_v5  ;;  %v3398_v11 = vadd.f32 %v3397_v7, %v3396_v13 }
 0x713   :  { %v3407_v28 = vrot.slane %v3406_v9, 2  ;;  %v3399_v12 = vrot.slane %v3398_v11, 1 }
 0x715   :  { %v3408_v31 = vadd.f32 %v3407_v28, %v3406_v9  ;;  %v3400_v14 = vadd.f32 %v3399_v12, %v3398_v11 }
 0x717   :  { %3859 = vpush %v3400_v14  ;;  %v3409_v15 = vrot.slane %v3408_v31, 1 }
 0x719   :  { %v3410_v16 = vadd.f32 %v3409_v15, %v3408_v31 }
 0x71b   :  { %3861 = vpush %v3410_v16 }
 0x71c   :  { %3863 = vpush %v4128_v17 }
 0x748   :  { %s3860_s21 = spop %3859 }
 0x74c   :  { %s3862_s1 = spop %3861 }
 0x74d   :  { %s3412_s2 = sadd.f32 %s3862_s1, %s3860_s21  ;;  %s3864_s25 = spop %3863 }
 0x74f   :  { %s3416_s24 = smul.f32 %s3864_s25, %s3412_s2 }
 0x751   :  { %v3417_v18 = vstv %s3416_s24 }
 0x752   :  { %3419 = vst.msk [vmem:[#allocation4] sm:$0x1] %vm3418_vm8, %v3417_v18 }
 0x753   :  { %4140 = shalt.err (!%p4137_p5)
}
 0x754   :  { %s4141_s28 = scalar_lea.hbm %s5547_s19, 16 }
 0x755   :  { %p4142_p6 = scmp.ne.s32.totalorder %s5547_s19, %s4141_s28  ;;  %p4145_p7 = scmp.lt.u32.totalorder %s4141_s28, %s5547_s19 }
 0x757   :  { %p4147_p8 = pnand %p4145_p7, %p4142_p6 }
 0x759   :  { %4150 = shalt.err (!%p4147_p8)
}
 0x75a   :  { %3431 = dma.vmem_to_hbm [thread:$0]  %s3429_s10, 16, %s5547_s19, [#allocation5]  }
 0x75b   :  { %4155 = dma.done.wait [#allocation5], 16  }
 0x75c   :  { %4156 = vsyncadd [#allocation5], 4294967280 }
 0x75d   :  { %3437 = vsyncpa [#allocation5], 1 }

</bundles_post_ra>
